<compile_context>
chip_gen: v7x
topology: tpu7x:2x2x1
jax: 0.10.0
libtpu: 0.0.40
codegen_flags: <defaults>
</compile_context>

<pallas_src>
import functools

import jax
import jax.numpy as jnp
from jax import lax
from jax.experimental import pallas as pl
from jax.experimental.pallas import tpu as pltpu


def _round_up(x, m):
    return (x + m - 1) // m * m


def _fused_conv_kernel(x_ref, w_ref, b_ref, o_ref, *, K, Wp):
    """One image: in-kernel im2col + K accumulated MXU matmuls (f32 accumulation).

    x_ref: (Cin_p, Lpad)      bf16  zero-padded image, spatial flattened row-major (width Wp)
    w_ref: (K, Cout, K*Cin_p) bf16  folded weights, w[dy, co, dx*Cin_p + ci]
    b_ref: (Cout, 1)          f32   folded bias
    o_ref: (Cout, Q_pad)      f32   lane-dense output, flat index q = y*Wp + x
    """
    cout, q_pad = o_ref.shape
    acc = jnp.broadcast_to(b_ref[...], (cout, q_pad))          # bias folded into init
    for dy in range(K):
        base = dy * Wp
        # Patch slab for this dy, built from K static shifted windows of the flat
        # image (no HBM im2col): slab[dx*Cin_p + ci, q] = x[ci, q + dy*Wp + dx].
        slab = jnp.concatenate(
            [x_ref[:, pl.ds(base + dx, q_pad)] for dx in range(K)], axis=0)
        acc = acc + jnp.dot(w_ref[dy], slab, preferred_element_type=jnp.float32)
    o_ref[...] = acc


def inception_block_v1_pallas(x_nchw, kernel_weights, kernel_biases):
    """Forward pass of Inception_Block_V1.

    x_nchw:         (N, Cin, H, W)                  -- PyTorch NCHW
    kernel_weights: list of (Cout, Cin, 2i+1, 2i+1) -- PyTorch OIHW per branch
    kernel_biases:  list of (Cout,)
    returns:        (N, Cout, H, W)                 -- NCHW
    """
    num_kernels = len(kernel_weights)
    N, Cin, H, W = x_nchw.shape
    Cout = kernel_weights[0].shape[0]
    K = 2 * (num_kernels - 1) + 1          # largest kernel size (11 for 6 branches)
    pad = (K - 1) // 2
    Hp, Wp = H + 2 * pad, W + 2 * pad
    Cin_p = _round_up(Cin, 8)              # sublane-align the per-tap channel groups
    KC = K * Cin_p

    # ---- fold branches: mean_i conv_i(x) == conv(x, sum_i center_pad(W_i)/n) + mean(b_i)
    w_eff = jnp.zeros((Cout, Cin_p, K, K), jnp.float32)
    for i, w in enumerate(kernel_weights):
        k = 2 * i + 1
        off = (K - k) // 2
        w_eff = w_eff.at[:, :Cin, off:off + k, off:off + k].add(w.astype(jnp.float32))
    w_eff = w_eff / num_kernels
    # (dy, Cout, dx*Cin_p + ci) ordering matches the in-kernel slab packing.
    w_fold = jnp.transpose(w_eff, (2, 0, 3, 1)).reshape(K, Cout, KC).astype(jnp.bfloat16)
    b_eff = (sum(b.astype(jnp.float32) for b in kernel_biases)
             / num_kernels).reshape(Cout, 1)

    # ---- zero-padded, channel-padded, spatially-flattened image (bf16 up front).
    # Output flat index q = y*Wp + x ; tap (dy, dx) reads flat index q + dy*Wp + dx.
    Q_pad = _round_up(H * Wp, 128)                 # lane-dense, unmasked output stores
    max_shift = (K - 1) * (Wp + 1)
    Lpad = _round_up(max(Hp * Wp, Q_pad + max_shift), 128)
    x_flat = jnp.pad(x_nchw.astype(jnp.bfloat16),
                     ((0, 0), (0, Cin_p - Cin), (pad, pad), (pad, pad)))
    x_flat = x_flat.reshape(N, Cin_p, Hp * Wp)
    x_flat = jnp.pad(x_flat, ((0, 0), (0, 0), (0, Lpad - Hp * Wp)))

    kernel = functools.partial(_fused_conv_kernel, K=K, Wp=Wp)

    # Explicit VMEM budget (default scoped limit is only 16/32 MiB; cap under v7x's
    # 64 MiB physical).  Double-buffered blocks + slab + accumulator, with margin.
    per_step = (2 * Cin_p * Lpad * 2 + 2 * K * Cout * KC * 2 + 2 * Cout * 128 * 4
                + 2 * Cout * Q_pad * 4 + KC * Q_pad * 2 + Cout * Q_pad * 4)
    vmem_limit = int(min(64 * 2 ** 20, max(32 * 2 ** 20, 2 * per_step)))

    # TODO(synk): at production TimesNet widths (Cin=Cout=d_model, long sequences)
    # add a spatial (Q) grid axis (dynamic pl.ds window base) plus an "arbitrary"
    # dy/contraction axis with an f32 VMEM accumulator so slabs + folded weights fit
    # v7x's 64 MiB VMEM; Cout >= 128 there also fills the MXU rows naturally.
    out = pl.pallas_call(
        kernel,
        out_shape=jax.ShapeDtypeStruct((N, Cout, Q_pad), jnp.float32),
        grid=(N,),
        in_specs=[
            pl.BlockSpec((None, Cin_p, Lpad), lambda n: (n, 0, 0)),  # one padded image
            pl.BlockSpec((K, Cout, KC), lambda n: (0, 0, 0)),        # weights (resident)
            pl.BlockSpec((Cout, 1), lambda n: (0, 0)),               # bias (resident)
        ],
        out_specs=pl.BlockSpec((None, Cout, Q_pad), lambda n: (n, 0, 0)),
        compiler_params=pltpu.CompilerParams(
            dimension_semantics=("parallel",),
            vmem_limit_bytes=vmem_limit),
    )(x_flat, w_fold, b_eff)

    # (N, Cout, Q_pad) -> keep the H*Wp valid prefix -> (N, Cout, H, Wp) -> drop the
    # Wp-W garbage columns (they alias row-wrapped reads / padding, never real outputs).
    return out[:, :, :H * Wp].reshape(N, Cout, H, Wp)[:, :, :, :W]


def _kaiming_normal_fan_out(key, shape):
    # nn.init.kaiming_normal_(w, mode='fan_out', nonlinearity='relu')
    cout, _cin, kh, kw = shape
    fan_out = cout * kh * kw
    std = (2.0 / fan_out) ** 0.5
    return std * jax.random.normal(key, shape, jnp.float32)


if __name__ == "__main__":
    N, Cin, Cout, H, W = 2, 4, 8, 16, 16
    num_kernels = 6

    key = jax.random.PRNGKey(0)
    keys = jax.random.split(key, num_kernels + 1)
    x = jax.random.normal(keys[0], (N, Cin, H, W), jnp.float32)

    weights, biases = [], []
    for i in range(num_kernels):
        k = 2 * i + 1
        weights.append(_kaiming_normal_fan_out(keys[i + 1], (Cout, Cin, k, k)))
        biases.append(jnp.zeros((Cout,), jnp.float32))  # nn.init.constant_(bias, 0)

    fwd = jax.jit(inception_block_v1_pallas)
    out = jax.block_until_ready(fwd(x, weights, biases))

    # Reference: 6 separate same-padded convs, stack, mean (mirrors the PyTorch forward).
    ref_branches = []
    for i in range(num_kernels):
        r = lax.conv_general_dilated(
            x, weights[i], window_strides=(1, 1), padding=[(i, i), (i, i)],
            dimension_numbers=("NCHW", "OIHW", "NCHW"),
            precision=lax.Precision.HIGHEST)
        ref_branches.append(r + biases[i][None, :, None, None])
    ref = jnp.mean(jnp.stack(ref_branches, axis=-1), axis=-1)

    assert out.shape == (N, Cout, H, W)
    max_err = float(jnp.max(jnp.abs(out - ref)))
    # bf16 MXU operands (f32 accumulation) -> slightly relaxed tolerance.
    assert jnp.allclose(out, ref, atol=2e-2, rtol=2e-2), max_err
    print("KERNEL_OK")
</pallas_src>

<mosaic_0001>
module attributes {stable_mosaic.version = 11 : i64} {
  func.func @_fused_conv_kernel(%arg0: i32, %arg1: memref<1x8x896xbf16, #tpu.memory_space<vmem>>, %arg2: memref<11x8x88xbf16, #tpu.memory_space<vmem>>, %arg3: memref<8x1xf32, #tpu.memory_space<vmem>>, %arg4: memref<1x8x512xf32, #tpu.memory_space<vmem>>) attributes {dimension_semantics = [#tpu.dimension_semantics<parallel>], iteration_bounds = array<i64: 2>, scalar_prefetch = 0 : i64, scratch_operands = 0 : i64, tpu.core_type = #tpu.core_type<tc>, window_params = [{transform_indices = @transform_0, window_bounds = array<i64: 1, 8, 896>}, {pipeline_mode = #tpu.pipeline_mode<synchronous>, transform_indices = @transform_1, window_bounds = array<i64: 11, 8, 88>}, {pipeline_mode = #tpu.pipeline_mode<synchronous>, transform_indices = @transform_2, window_bounds = array<i64: 8, 1>}, {transform_indices = @transform_3, window_bounds = array<i64: 1, 8, 512>}]} {
    %c0 = arith.constant 0 : index
    %c0_0 = arith.constant 0 : index
    %0 = vector.load %arg3[%c0, %c0_0] : memref<8x1xf32, #tpu.memory_space<vmem>>, vector<8x1xf32>
    %1 = vector.shape_cast %0 : vector<8x1xf32> to vector<8x1xf32>
    %2 = vector.broadcast %1 : vector<8x1xf32> to vector<8x512xf32>
    %c0_1 = arith.constant 0 : index
    %c0_2 = arith.constant 0 : index
    %c0_3 = arith.constant 0 : index
    %3 = vector.load %arg1[%c0_1, %c0_2, %c0_3] : memref<1x8x896xbf16, #tpu.memory_space<vmem>>, vector<1x8x512xbf16>
    %4 = vector.shape_cast %3 : vector<1x8x512xbf16> to vector<8x512xbf16>
    %c0_4 = arith.constant 0 : index
    %c0_5 = arith.constant 0 : index
    %c1 = arith.constant 1 : index
    %5 = vector.load %arg1[%c0_4, %c0_5, %c1] : memref<1x8x896xbf16, #tpu.memory_space<vmem>>, vector<1x8x512xbf16>
    %6 = vector.shape_cast %5 : vector<1x8x512xbf16> to vector<8x512xbf16>
    %c0_6 = arith.constant 0 : index
    %c0_7 = arith.constant 0 : index
    %c2 = arith.constant 2 : index
    %7 = vector.load %arg1[%c0_6, %c0_7, %c2] : memref<1x8x896xbf16, #tpu.memory_space<vmem>>, vector<1x8x512xbf16>
    %8 = vector.shape_cast %7 : vector<1x8x512xbf16> to vector<8x512xbf16>
    %c0_8 = arith.constant 0 : index
    %c0_9 = arith.constant 0 : index
    %c3 = arith.constant 3 : index
    %9 = vector.load %arg1[%c0_8, %c0_9, %c3] : memref<1x8x896xbf16, #tpu.memory_space<vmem>>, vector<1x8x512xbf16>
    %10 = vector.shape_cast %9 : vector<1x8x512xbf16> to vector<8x512xbf16>
    %c0_10 = arith.constant 0 : index
    %c0_11 = arith.constant 0 : index
    %c4 = arith.constant 4 : index
    %11 = vector.load %arg1[%c0_10, %c0_11, %c4] : memref<1x8x896xbf16, #tpu.memory_space<vmem>>, vector<1x8x512xbf16>
    %12 = vector.shape_cast %11 : vector<1x8x512xbf16> to vector<8x512xbf16>
    %c0_12 = arith.constant 0 : index
    %c0_13 = arith.constant 0 : index
    %c5 = arith.constant 5 : index
    %13 = vector.load %arg1[%c0_12, %c0_13, %c5] : memref<1x8x896xbf16, #tpu.memory_space<vmem>>, vector<1x8x512xbf16>
    %14 = vector.shape_cast %13 : vector<1x8x512xbf16> to vector<8x512xbf16>
    %c0_14 = arith.constant 0 : index
    %c0_15 = arith.constant 0 : index
    %c6 = arith.constant 6 : index
    %15 = vector.load %arg1[%c0_14, %c0_15, %c6] : memref<1x8x896xbf16, #tpu.memory_space<vmem>>, vector<1x8x512xbf16>
    %16 = vector.shape_cast %15 : vector<1x8x512xbf16> to vector<8x512xbf16>
    %c0_16 = arith.constant 0 : index
    %c0_17 = arith.constant 0 : index
    %c7 = arith.constant 7 : index
    %17 = vector.load %arg1[%c0_16, %c0_17, %c7] : memref<1x8x896xbf16, #tpu.memory_space<vmem>>, vector<1x8x512xbf16>
    %18 = vector.shape_cast %17 : vector<1x8x512xbf16> to vector<8x512xbf16>
    %c0_18 = arith.constant 0 : index
    %c0_19 = arith.constant 0 : index
    %c8 = arith.constant 8 : index
    %19 = vector.load %arg1[%c0_18, %c0_19, %c8] : memref<1x8x896xbf16, #tpu.memory_space<vmem>>, vector<1x8x512xbf16>
    %20 = vector.shape_cast %19 : vector<1x8x512xbf16> to vector<8x512xbf16>
    %c0_20 = arith.constant 0 : index
    %c0_21 = arith.constant 0 : index
    %c9 = arith.constant 9 : index
    %21 = vector.load %arg1[%c0_20, %c0_21, %c9] : memref<1x8x896xbf16, #tpu.memory_space<vmem>>, vector<1x8x512xbf16>
    %22 = vector.shape_cast %21 : vector<1x8x512xbf16> to vector<8x512xbf16>
    %c0_22 = arith.constant 0 : index
    %c0_23 = arith.constant 0 : index
    %c10 = arith.constant 10 : index
    %23 = vector.load %arg1[%c0_22, %c0_23, %c10] : memref<1x8x896xbf16, #tpu.memory_space<vmem>>, vector<1x8x512xbf16>
    %24 = vector.shape_cast %23 : vector<1x8x512xbf16> to vector<8x512xbf16>
    %25 = tpu.concatenate %4, %6, %8, %10, %12, %14, %16, %18, %20, %22, %24 in 0 : vector<8x512xbf16>, vector<8x512xbf16>, vector<8x512xbf16>, vector<8x512xbf16>, vector<8x512xbf16>, vector<8x512xbf16>, vector<8x512xbf16>, vector<8x512xbf16>, vector<8x512xbf16>, vector<8x512xbf16>, vector<8x512xbf16> -> vector<88x512xbf16>
    %c0_24 = arith.constant 0 : index
    %c0_25 = arith.constant 0 : index
    %c0_26 = arith.constant 0 : index
    %26 = vector.load %arg2[%c0_24, %c0_25, %c0_26] : memref<11x8x88xbf16, #tpu.memory_space<vmem>>, vector<1x8x88xbf16>
    %27 = vector.shape_cast %26 : vector<1x8x88xbf16> to vector<8x88xbf16>
    %cst = arith.constant dense<0.000000e+00> : vector<8x512xf32>
    %28 = tpu.matmul %27, %25, %cst {dimension_numbers = #tpu.dot_dimension_numbers<[1], [0], [0], [1], [0, 0, 1, 1], [], []>} : vector<8x88xbf16>, vector<88x512xbf16>, vector<8x512xf32> -> vector<8x512xf32>
    %29 = arith.addf %2, %28 : vector<8x512xf32>
    %c0_27 = arith.constant 0 : index
    %c0_28 = arith.constant 0 : index
    %c26 = arith.constant 26 : index
    %30 = vector.load %arg1[%c0_27, %c0_28, %c26] : memref<1x8x896xbf16, #tpu.memory_space<vmem>>, vector<1x8x512xbf16>
    %31 = vector.shape_cast %30 : vector<1x8x512xbf16> to vector<8x512xbf16>
    %c0_29 = arith.constant 0 : index
    %c0_30 = arith.constant 0 : index
    %c27 = arith.constant 27 : index
    %32 = vector.load %arg1[%c0_29, %c0_30, %c27] : memref<1x8x896xbf16, #tpu.memory_space<vmem>>, vector<1x8x512xbf16>
    %33 = vector.shape_cast %32 : vector<1x8x512xbf16> to vector<8x512xbf16>
    %c0_31 = arith.constant 0 : index
    %c0_32 = arith.constant 0 : index
    %c28 = arith.constant 28 : index
    %34 = vector.load %arg1[%c0_31, %c0_32, %c28] : memref<1x8x896xbf16, #tpu.memory_space<vmem>>, vector<1x8x512xbf16>
    %35 = vector.shape_cast %34 : vector<1x8x512xbf16> to vector<8x512xbf16>
    %c0_33 = arith.constant 0 : index
    %c0_34 = arith.constant 0 : index
    %c29 = arith.constant 29 : index
    %36 = vector.load %arg1[%c0_33, %c0_34, %c29] : memref<1x8x896xbf16, #tpu.memory_space<vmem>>, vector<1x8x512xbf16>
    %37 = vector.shape_cast %36 : vector<1x8x512xbf16> to vector<8x512xbf16>
    %c0_35 = arith.constant 0 : index
    %c0_36 = arith.constant 0 : index
    %c30 = arith.constant 30 : index
    %38 = vector.load %arg1[%c0_35, %c0_36, %c30] : memref<1x8x896xbf16, #tpu.memory_space<vmem>>, vector<1x8x512xbf16>
    %39 = vector.shape_cast %38 : vector<1x8x512xbf16> to vector<8x512xbf16>
    %c0_37 = arith.constant 0 : index
    %c0_38 = arith.constant 0 : index
    %c31 = arith.constant 31 : index
    %40 = vector.load %arg1[%c0_37, %c0_38, %c31] : memref<1x8x896xbf16, #tpu.memory_space<vmem>>, vector<1x8x512xbf16>
    %41 = vector.shape_cast %40 : vector<1x8x512xbf16> to vector<8x512xbf16>
    %c0_39 = arith.constant 0 : index
    %c0_40 = arith.constant 0 : index
    %c32 = arith.constant 32 : index
    %42 = vector.load %arg1[%c0_39, %c0_40, %c32] : memref<1x8x896xbf16, #tpu.memory_space<vmem>>, vector<1x8x512xbf16>
    %43 = vector.shape_cast %42 : vector<1x8x512xbf16> to vector<8x512xbf16>
    %c0_41 = arith.constant 0 : index
    %c0_42 = arith.constant 0 : index
    %c33 = arith.constant 33 : index
    %44 = vector.load %arg1[%c0_41, %c0_42, %c33] : memref<1x8x896xbf16, #tpu.memory_space<vmem>>, vector<1x8x512xbf16>
    %45 = vector.shape_cast %44 : vector<1x8x512xbf16> to vector<8x512xbf16>
    %c0_43 = arith.constant 0 : index
    %c0_44 = arith.constant 0 : index
    %c34 = arith.constant 34 : index
    %46 = vector.load %arg1[%c0_43, %c0_44, %c34] : memref<1x8x896xbf16, #tpu.memory_space<vmem>>, vector<1x8x512xbf16>
    %47 = vector.shape_cast %46 : vector<1x8x512xbf16> to vector<8x512xbf16>
    %c0_45 = arith.constant 0 : index
    %c0_46 = arith.constant 0 : index
    %c35 = arith.constant 35 : index
    %48 = vector.load %arg1[%c0_45, %c0_46, %c35] : memref<1x8x896xbf16, #tpu.memory_space<vmem>>, vector<1x8x512xbf16>
    %49 = vector.shape_cast %48 : vector<1x8x512xbf16> to vector<8x512xbf16>
    %c0_47 = arith.constant 0 : index
    %c0_48 = arith.constant 0 : index
    %c36 = arith.constant 36 : index
    %50 = vector.load %arg1[%c0_47, %c0_48, %c36] : memref<1x8x896xbf16, #tpu.memory_space<vmem>>, vector<1x8x512xbf16>
    %51 = vector.shape_cast %50 : vector<1x8x512xbf16> to vector<8x512xbf16>
    %52 = tpu.concatenate %31, %33, %35, %37, %39, %41, %43, %45, %47, %49, %51 in 0 : vector<8x512xbf16>, vector<8x512xbf16>, vector<8x512xbf16>, vector<8x512xbf16>, vector<8x512xbf16>, vector<8x512xbf16>, vector<8x512xbf16>, vector<8x512xbf16>, vector<8x512xbf16>, vector<8x512xbf16>, vector<8x512xbf16> -> vector<88x512xbf16>
    %c1_49 = arith.constant 1 : index
    %c0_50 = arith.constant 0 : index
    %c0_51 = arith.constant 0 : index
    %53 = vector.load %arg2[%c1_49, %c0_50, %c0_51] : memref<11x8x88xbf16, #tpu.memory_space<vmem>>, vector<1x8x88xbf16>
    %54 = vector.shape_cast %53 : vector<1x8x88xbf16> to vector<8x88xbf16>
    %cst_52 = arith.constant dense<0.000000e+00> : vector<8x512xf32>
    %55 = tpu.matmul %54, %52, %cst_52 {dimension_numbers = #tpu.dot_dimension_numbers<[1], [0], [0], [1], [0, 0, 1, 1], [], []>} : vector<8x88xbf16>, vector<88x512xbf16>, vector<8x512xf32> -> vector<8x512xf32>
    %56 = arith.addf %29, %55 : vector<8x512xf32>
    %c0_53 = arith.constant 0 : index
    %c0_54 = arith.constant 0 : index
    %c52 = arith.constant 52 : index
    %57 = vector.load %arg1[%c0_53, %c0_54, %c52] : memref<1x8x896xbf16, #tpu.memory_space<vmem>>, vector<1x8x512xbf16>
    %58 = vector.shape_cast %57 : vector<1x8x512xbf16> to vector<8x512xbf16>
    %c0_55 = arith.constant 0 : index
    %c0_56 = arith.constant 0 : index
    %c53 = arith.constant 53 : index
    %59 = vector.load %arg1[%c0_55, %c0_56, %c53] : memref<1x8x896xbf16, #tpu.memory_space<vmem>>, vector<1x8x512xbf16>
    %60 = vector.shape_cast %59 : vector<1x8x512xbf16> to vector<8x512xbf16>
    %c0_57 = arith.constant 0 : index
    %c0_58 = arith.constant 0 : index
    %c54 = arith.constant 54 : index
    %61 = vector.load %arg1[%c0_57, %c0_58, %c54] : memref<1x8x896xbf16, #tpu.memory_space<vmem>>, vector<1x8x512xbf16>
    %62 = vector.shape_cast %61 : vector<1x8x512xbf16> to vector<8x512xbf16>
    %c0_59 = arith.constant 0 : index
    %c0_60 = arith.constant 0 : index
    %c55 = arith.constant 55 : index
    %63 = vector.load %arg1[%c0_59, %c0_60, %c55] : memref<1x8x896xbf16, #tpu.memory_space<vmem>>, vector<1x8x512xbf16>
    %64 = vector.shape_cast %63 : vector<1x8x512xbf16> to vector<8x512xbf16>
    %c0_61 = arith.constant 0 : index
    %c0_62 = arith.constant 0 : index
    %c56 = arith.constant 56 : index
    %65 = vector.load %arg1[%c0_61, %c0_62, %c56] : memref<1x8x896xbf16, #tpu.memory_space<vmem>>, vector<1x8x512xbf16>
    %66 = vector.shape_cast %65 : vector<1x8x512xbf16> to vector<8x512xbf16>
    %c0_63 = arith.constant 0 : index
    %c0_64 = arith.constant 0 : index
    %c57 = arith.constant 57 : index
    %67 = vector.load %arg1[%c0_63, %c0_64, %c57] : memref<1x8x896xbf16, #tpu.memory_space<vmem>>, vector<1x8x512xbf16>
    %68 = vector.shape_cast %67 : vector<1x8x512xbf16> to vector<8x512xbf16>
    %c0_65 = arith.constant 0 : index
    %c0_66 = arith.constant 0 : index
    %c58 = arith.constant 58 : index
    %69 = vector.load %arg1[%c0_65, %c0_66, %c58] : memref<1x8x896xbf16, #tpu.memory_space<vmem>>, vector<1x8x512xbf16>
    %70 = vector.shape_cast %69 : vector<1x8x512xbf16> to vector<8x512xbf16>
    %c0_67 = arith.constant 0 : index
    %c0_68 = arith.constant 0 : index
    %c59 = arith.constant 59 : index
    %71 = vector.load %arg1[%c0_67, %c0_68, %c59] : memref<1x8x896xbf16, #tpu.memory_space<vmem>>, vector<1x8x512xbf16>
    %72 = vector.shape_cast %71 : vector<1x8x512xbf16> to vector<8x512xbf16>
    %c0_69 = arith.constant 0 : index
    %c0_70 = arith.constant 0 : index
    %c60 = arith.constant 60 : index
    %73 = vector.load %arg1[%c0_69, %c0_70, %c60] : memref<1x8x896xbf16, #tpu.memory_space<vmem>>, vector<1x8x512xbf16>
    %74 = vector.shape_cast %73 : vector<1x8x512xbf16> to vector<8x512xbf16>
    %c0_71 = arith.constant 0 : index
    %c0_72 = arith.constant 0 : index
    %c61 = arith.constant 61 : index
    %75 = vector.load %arg1[%c0_71, %c0_72, %c61] : memref<1x8x896xbf16, #tpu.memory_space<vmem>>, vector<1x8x512xbf16>
    %76 = vector.shape_cast %75 : vector<1x8x512xbf16> to vector<8x512xbf16>
    %c0_73 = arith.constant 0 : index
    %c0_74 = arith.constant 0 : index
    %c62 = arith.constant 62 : index
    %77 = vector.load %arg1[%c0_73, %c0_74, %c62] : memref<1x8x896xbf16, #tpu.memory_space<vmem>>, vector<1x8x512xbf16>
    %78 = vector.shape_cast %77 : vector<1x8x512xbf16> to vector<8x512xbf16>
    %79 = tpu.concatenate %58, %60, %62, %64, %66, %68, %70, %72, %74, %76, %78 in 0 : vector<8x512xbf16>, vector<8x512xbf16>, vector<8x512xbf16>, vector<8x512xbf16>, vector<8x512xbf16>, vector<8x512xbf16>, vector<8x512xbf16>, vector<8x512xbf16>, vector<8x512xbf16>, vector<8x512xbf16>, vector<8x512xbf16> -> vector<88x512xbf16>
    %c2_75 = arith.constant 2 : index
    %c0_76 = arith.constant 0 : index
    %c0_77 = arith.constant 0 : index
    %80 = vector.load %arg2[%c2_75, %c0_76, %c0_77] : memref<11x8x88xbf16, #tpu.memory_space<vmem>>, vector<1x8x88xbf16>
    %81 = vector.shape_cast %80 : vector<1x8x88xbf16> to vector<8x88xbf16>
    %cst_78 = arith.constant dense<0.000000e+00> : vector<8x512xf32>
    %82 = tpu.matmul %81, %79, %cst_78 {dimension_numbers = #tpu.dot_dimension_numbers<[1], [0], [0], [1], [0, 0, 1, 1], [], []>} : vector<8x88xbf16>, vector<88x512xbf16>, vector<8x512xf32> -> vector<8x512xf32>
    %83 = arith.addf %56, %82 : vector<8x512xf32>
    %c0_79 = arith.constant 0 : index
    %c0_80 = arith.constant 0 : index
    %c78 = arith.constant 78 : index
    %84 = vector.load %arg1[%c0_79, %c0_80, %c78] : memref<1x8x896xbf16, #tpu.memory_space<vmem>>, vector<1x8x512xbf16>
    %85 = vector.shape_cast %84 : vector<1x8x512xbf16> to vector<8x512xbf16>
    %c0_81 = arith.constant 0 : index
    %c0_82 = arith.constant 0 : index
    %c79 = arith.constant 79 : index
    %86 = vector.load %arg1[%c0_81, %c0_82, %c79] : memref<1x8x896xbf16, #tpu.memory_space<vmem>>, vector<1x8x512xbf16>
    %87 = vector.shape_cast %86 : vector<1x8x512xbf16> to vector<8x512xbf16>
    %c0_83 = arith.constant 0 : index
    %c0_84 = arith.constant 0 : index
    %c80 = arith.constant 80 : index
    %88 = vector.load %arg1[%c0_83, %c0_84, %c80] : memref<1x8x896xbf16, #tpu.memory_space<vmem>>, vector<1x8x512xbf16>
    %89 = vector.shape_cast %88 : vector<1x8x512xbf16> to vector<8x512xbf16>
    %c0_85 = arith.constant 0 : index
    %c0_86 = arith.constant 0 : index
    %c81 = arith.constant 81 : index
    %90 = vector.load %arg1[%c0_85, %c0_86, %c81] : memref<1x8x896xbf16, #tpu.memory_space<vmem>>, vector<1x8x512xbf16>
    %91 = vector.shape_cast %90 : vector<1x8x512xbf16> to vector<8x512xbf16>
    %c0_87 = arith.constant 0 : index
    %c0_88 = arith.constant 0 : index
    %c82 = arith.constant 82 : index
    %92 = vector.load %arg1[%c0_87, %c0_88, %c82] : memref<1x8x896xbf16, #tpu.memory_space<vmem>>, vector<1x8x512xbf16>
    %93 = vector.shape_cast %92 : vector<1x8x512xbf16> to vector<8x512xbf16>
    %c0_89 = arith.constant 0 : index
    %c0_90 = arith.constant 0 : index
    %c83 = arith.constant 83 : index
    %94 = vector.load %arg1[%c0_89, %c0_90, %c83] : memref<1x8x896xbf16, #tpu.memory_space<vmem>>, vector<1x8x512xbf16>
    %95 = vector.shape_cast %94 : vector<1x8x512xbf16> to vector<8x512xbf16>
    %c0_91 = arith.constant 0 : index
    %c0_92 = arith.constant 0 : index
    %c84 = arith.constant 84 : index
    %96 = vector.load %arg1[%c0_91, %c0_92, %c84] : memref<1x8x896xbf16, #tpu.memory_space<vmem>>, vector<1x8x512xbf16>
    %97 = vector.shape_cast %96 : vector<1x8x512xbf16> to vector<8x512xbf16>
    %c0_93 = arith.constant 0 : index
    %c0_94 = arith.constant 0 : index
    %c85 = arith.constant 85 : index
    %98 = vector.load %arg1[%c0_93, %c0_94, %c85] : memref<1x8x896xbf16, #tpu.memory_space<vmem>>, vector<1x8x512xbf16>
    %99 = vector.shape_cast %98 : vector<1x8x512xbf16> to vector<8x512xbf16>
    %c0_95 = arith.constant 0 : index
    %c0_96 = arith.constant 0 : index
    %c86 = arith.constant 86 : index
    %100 = vector.load %arg1[%c0_95, %c0_96, %c86] : memref<1x8x896xbf16, #tpu.memory_space<vmem>>, vector<1x8x512xbf16>
    %101 = vector.shape_cast %100 : vector<1x8x512xbf16> to vector<8x512xbf16>
    %c0_97 = arith.constant 0 : index
    %c0_98 = arith.constant 0 : index
    %c87 = arith.constant 87 : index
    %102 = vector.load %arg1[%c0_97, %c0_98, %c87] : memref<1x8x896xbf16, #tpu.memory_space<vmem>>, vector<1x8x512xbf16>
    %103 = vector.shape_cast %102 : vector<1x8x512xbf16> to vector<8x512xbf16>
    %c0_99 = arith.constant 0 : index
    %c0_100 = arith.constant 0 : index
    %c88 = arith.constant 88 : index
    %104 = vector.load %arg1[%c0_99, %c0_100, %c88] : memref<1x8x896xbf16, #tpu.memory_space<vmem>>, vector<1x8x512xbf16>
    %105 = vector.shape_cast %104 : vector<1x8x512xbf16> to vector<8x512xbf16>
    %106 = tpu.concatenate %85, %87, %89, %91, %93, %95, %97, %99, %101, %103, %105 in 0 : vector<8x512xbf16>, vector<8x512xbf16>, vector<8x512xbf16>, vector<8x512xbf16>, vector<8x512xbf16>, vector<8x512xbf16>, vector<8x512xbf16>, vector<8x512xbf16>, vector<8x512xbf16>, vector<8x512xbf16>, vector<8x512xbf16> -> vector<88x512xbf16>
    %c3_101 = arith.constant 3 : index
    %c0_102 = arith.constant 0 : index
    %c0_103 = arith.constant 0 : index
    %107 = vector.load %arg2[%c3_101, %c0_102, %c0_103] : memref<11x8x88xbf16, #tpu.memory_space<vmem>>, vector<1x8x88xbf16>
    %108 = vector.shape_cast %107 : vector<1x8x88xbf16> to vector<8x88xbf16>
    %cst_104 = arith.constant dense<0.000000e+00> : vector<8x512xf32>
    %109 = tpu.matmul %108, %106, %cst_104 {dimension_numbers = #tpu.dot_dimension_numbers<[1], [0], [0], [1], [0, 0, 1, 1], [], []>} : vector<8x88xbf16>, vector<88x512xbf16>, vector<8x512xf32> -> vector<8x512xf32>
    %110 = arith.addf %83, %109 : vector<8x512xf32>
    %c0_105 = arith.constant 0 : index
    %c0_106 = arith.constant 0 : index
    %c104 = arith.constant 104 : index
    %111 = vector.load %arg1[%c0_105, %c0_106, %c104] : memref<1x8x896xbf16, #tpu.memory_space<vmem>>, vector<1x8x512xbf16>
    %112 = vector.shape_cast %111 : vector<1x8x512xbf16> to vector<8x512xbf16>
    %c0_107 = arith.constant 0 : index
    %c0_108 = arith.constant 0 : index
    %c105 = arith.constant 105 : index
    %113 = vector.load %arg1[%c0_107, %c0_108, %c105] : memref<1x8x896xbf16, #tpu.memory_space<vmem>>, vector<1x8x512xbf16>
    %114 = vector.shape_cast %113 : vector<1x8x512xbf16> to vector<8x512xbf16>
    %c0_109 = arith.constant 0 : index
    %c0_110 = arith.constant 0 : index
    %c106 = arith.constant 106 : index
    %115 = vector.load %arg1[%c0_109, %c0_110, %c106] : memref<1x8x896xbf16, #tpu.memory_space<vmem>>, vector<1x8x512xbf16>
    %116 = vector.shape_cast %115 : vector<1x8x512xbf16> to vector<8x512xbf16>
    %c0_111 = arith.constant 0 : index
    %c0_112 = arith.constant 0 : index
    %c107 = arith.constant 107 : index
    %117 = vector.load %arg1[%c0_111, %c0_112, %c107] : memref<1x8x896xbf16, #tpu.memory_space<vmem>>, vector<1x8x512xbf16>
    %118 = vector.shape_cast %117 : vector<1x8x512xbf16> to vector<8x512xbf16>
    %c0_113 = arith.constant 0 : index
    %c0_114 = arith.constant 0 : index
    %c108 = arith.constant 108 : index
    %119 = vector.load %arg1[%c0_113, %c0_114, %c108] : memref<1x8x896xbf16, #tpu.memory_space<vmem>>, vector<1x8x512xbf16>
    %120 = vector.shape_cast %119 : vector<1x8x512xbf16> to vector<8x512xbf16>
    %c0_115 = arith.constant 0 : index
    %c0_116 = arith.constant 0 : index
    %c109 = arith.constant 109 : index
    %121 = vector.load %arg1[%c0_115, %c0_116, %c109] : memref<1x8x896xbf16, #tpu.memory_space<vmem>>, vector<1x8x512xbf16>
    %122 = vector.shape_cast %121 : vector<1x8x512xbf16> to vector<8x512xbf16>
    %c0_117 = arith.constant 0 : index
    %c0_118 = arith.constant 0 : index
    %c110 = arith.constant 110 : index
    %123 = vector.load %arg1[%c0_117, %c0_118, %c110] : memref<1x8x896xbf16, #tpu.memory_space<vmem>>, vector<1x8x512xbf16>
    %124 = vector.shape_cast %123 : vector<1x8x512xbf16> to vector<8x512xbf16>
    %c0_119 = arith.constant 0 : index
    %c0_120 = arith.constant 0 : index
    %c111 = arith.constant 111 : index
    %125 = vector.load %arg1[%c0_119, %c0_120, %c111] : memref<1x8x896xbf16, #tpu.memory_space<vmem>>, vector<1x8x512xbf16>
    %126 = vector.shape_cast %125 : vector<1x8x512xbf16> to vector<8x512xbf16>
    %c0_121 = arith.constant 0 : index
    %c0_122 = arith.constant 0 : index
    %c112 = arith.constant 112 : index
    %127 = vector.load %arg1[%c0_121, %c0_122, %c112] : memref<1x8x896xbf16, #tpu.memory_space<vmem>>, vector<1x8x512xbf16>
    %128 = vector.shape_cast %127 : vector<1x8x512xbf16> to vector<8x512xbf16>
    %c0_123 = arith.constant 0 : index
    %c0_124 = arith.constant 0 : index
    %c113 = arith.constant 113 : index
    %129 = vector.load %arg1[%c0_123, %c0_124, %c113] : memref<1x8x896xbf16, #tpu.memory_space<vmem>>, vector<1x8x512xbf16>
    %130 = vector.shape_cast %129 : vector<1x8x512xbf16> to vector<8x512xbf16>
    %c0_125 = arith.constant 0 : index
    %c0_126 = arith.constant 0 : index
    %c114 = arith.constant 114 : index
    %131 = vector.load %arg1[%c0_125, %c0_126, %c114] : memref<1x8x896xbf16, #tpu.memory_space<vmem>>, vector<1x8x512xbf16>
    %132 = vector.shape_cast %131 : vector<1x8x512xbf16> to vector<8x512xbf16>
    %133 = tpu.concatenate %112, %114, %116, %118, %120, %122, %124, %126, %128, %130, %132 in 0 : vector<8x512xbf16>, vector<8x512xbf16>, vector<8x512xbf16>, vector<8x512xbf16>, vector<8x512xbf16>, vector<8x512xbf16>, vector<8x512xbf16>, vector<8x512xbf16>, vector<8x512xbf16>, vector<8x512xbf16>, vector<8x512xbf16> -> vector<88x512xbf16>
    %c4_127 = arith.constant 4 : index
    %c0_128 = arith.constant 0 : index
    %c0_129 = arith.constant 0 : index
    %134 = vector.load %arg2[%c4_127, %c0_128, %c0_129] : memref<11x8x88xbf16, #tpu.memory_space<vmem>>, vector<1x8x88xbf16>
    %135 = vector.shape_cast %134 : vector<1x8x88xbf16> to vector<8x88xbf16>
    %cst_130 = arith.constant dense<0.000000e+00> : vector<8x512xf32>
    %136 = tpu.matmul %135, %133, %cst_130 {dimension_numbers = #tpu.dot_dimension_numbers<[1], [0], [0], [1], [0, 0, 1, 1], [], []>} : vector<8x88xbf16>, vector<88x512xbf16>, vector<8x512xf32> -> vector<8x512xf32>
    %137 = arith.addf %110, %136 : vector<8x512xf32>
    %c0_131 = arith.constant 0 : index
    %c0_132 = arith.constant 0 : index
    %c130 = arith.constant 130 : index
    %138 = vector.load %arg1[%c0_131, %c0_132, %c130] : memref<1x8x896xbf16, #tpu.memory_space<vmem>>, vector<1x8x512xbf16>
    %139 = vector.shape_cast %138 : vector<1x8x512xbf16> to vector<8x512xbf16>
    %c0_133 = arith.constant 0 : index
    %c0_134 = arith.constant 0 : index
    %c131 = arith.constant 131 : index
    %140 = vector.load %arg1[%c0_133, %c0_134, %c131] : memref<1x8x896xbf16, #tpu.memory_space<vmem>>, vector<1x8x512xbf16>
    %141 = vector.shape_cast %140 : vector<1x8x512xbf16> to vector<8x512xbf16>
    %c0_135 = arith.constant 0 : index
    %c0_136 = arith.constant 0 : index
    %c132 = arith.constant 132 : index
    %142 = vector.load %arg1[%c0_135, %c0_136, %c132] : memref<1x8x896xbf16, #tpu.memory_space<vmem>>, vector<1x8x512xbf16>
    %143 = vector.shape_cast %142 : vector<1x8x512xbf16> to vector<8x512xbf16>
    %c0_137 = arith.constant 0 : index
    %c0_138 = arith.constant 0 : index
    %c133 = arith.constant 133 : index
    %144 = vector.load %arg1[%c0_137, %c0_138, %c133] : memref<1x8x896xbf16, #tpu.memory_space<vmem>>, vector<1x8x512xbf16>
    %145 = vector.shape_cast %144 : vector<1x8x512xbf16> to vector<8x512xbf16>
    %c0_139 = arith.constant 0 : index
    %c0_140 = arith.constant 0 : index
    %c134 = arith.constant 134 : index
    %146 = vector.load %arg1[%c0_139, %c0_140, %c134] : memref<1x8x896xbf16, #tpu.memory_space<vmem>>, vector<1x8x512xbf16>
    %147 = vector.shape_cast %146 : vector<1x8x512xbf16> to vector<8x512xbf16>
    %c0_141 = arith.constant 0 : index
    %c0_142 = arith.constant 0 : index
    %c135 = arith.constant 135 : index
    %148 = vector.load %arg1[%c0_141, %c0_142, %c135] : memref<1x8x896xbf16, #tpu.memory_space<vmem>>, vector<1x8x512xbf16>
    %149 = vector.shape_cast %148 : vector<1x8x512xbf16> to vector<8x512xbf16>
    %c0_143 = arith.constant 0 : index
    %c0_144 = arith.constant 0 : index
    %c136 = arith.constant 136 : index
    %150 = vector.load %arg1[%c0_143, %c0_144, %c136] : memref<1x8x896xbf16, #tpu.memory_space<vmem>>, vector<1x8x512xbf16>
    %151 = vector.shape_cast %150 : vector<1x8x512xbf16> to vector<8x512xbf16>
    %c0_145 = arith.constant 0 : index
    %c0_146 = arith.constant 0 : index
    %c137 = arith.constant 137 : index
    %152 = vector.load %arg1[%c0_145, %c0_146, %c137] : memref<1x8x896xbf16, #tpu.memory_space<vmem>>, vector<1x8x512xbf16>
    %153 = vector.shape_cast %152 : vector<1x8x512xbf16> to vector<8x512xbf16>
    %c0_147 = arith.constant 0 : index
    %c0_148 = arith.constant 0 : index
    %c138 = arith.constant 138 : index
    %154 = vector.load %arg1[%c0_147, %c0_148, %c138] : memref<1x8x896xbf16, #tpu.memory_space<vmem>>, vector<1x8x512xbf16>
    %155 = vector.shape_cast %154 : vector<1x8x512xbf16> to vector<8x512xbf16>
    %c0_149 = arith.constant 0 : index
    %c0_150 = arith.constant 0 : index
    %c139 = arith.constant 139 : index
    %156 = vector.load %arg1[%c0_149, %c0_150, %c139] : memref<1x8x896xbf16, #tpu.memory_space<vmem>>, vector<1x8x512xbf16>
    %157 = vector.shape_cast %156 : vector<1x8x512xbf16> to vector<8x512xbf16>
    %c0_151 = arith.constant 0 : index
    %c0_152 = arith.constant 0 : index
    %c140 = arith.constant 140 : index
    %158 = vector.load %arg1[%c0_151, %c0_152, %c140] : memref<1x8x896xbf16, #tpu.memory_space<vmem>>, vector<1x8x512xbf16>
    %159 = vector.shape_cast %158 : vector<1x8x512xbf16> to vector<8x512xbf16>
    %160 = tpu.concatenate %139, %141, %143, %145, %147, %149, %151, %153, %155, %157, %159 in 0 : vector<8x512xbf16>, vector<8x512xbf16>, vector<8x512xbf16>, vector<8x512xbf16>, vector<8x512xbf16>, vector<8x512xbf16>, vector<8x512xbf16>, vector<8x512xbf16>, vector<8x512xbf16>, vector<8x512xbf16>, vector<8x512xbf16> -> vector<88x512xbf16>
    %c5_153 = arith.constant 5 : index
    %c0_154 = arith.constant 0 : index
    %c0_155 = arith.constant 0 : index
    %161 = vector.load %arg2[%c5_153, %c0_154, %c0_155] : memref<11x8x88xbf16, #tpu.memory_space<vmem>>, vector<1x8x88xbf16>
    %162 = vector.shape_cast %161 : vector<1x8x88xbf16> to vector<8x88xbf16>
    %cst_156 = arith.constant dense<0.000000e+00> : vector<8x512xf32>
    %163 = tpu.matmul %162, %160, %cst_156 {dimension_numbers = #tpu.dot_dimension_numbers<[1], [0], [0], [1], [0, 0, 1, 1], [], []>} : vector<8x88xbf16>, vector<88x512xbf16>, vector<8x512xf32> -> vector<8x512xf32>
    %164 = arith.addf %137, %163 : vector<8x512xf32>
    %c0_157 = arith.constant 0 : index
    %c0_158 = arith.constant 0 : index
    %c156 = arith.constant 156 : index
    %165 = vector.load %arg1[%c0_157, %c0_158, %c156] : memref<1x8x896xbf16, #tpu.memory_space<vmem>>, vector<1x8x512xbf16>
    %166 = vector.shape_cast %165 : vector<1x8x512xbf16> to vector<8x512xbf16>
    %c0_159 = arith.constant 0 : index
    %c0_160 = arith.constant 0 : index
    %c157 = arith.constant 157 : index
    %167 = vector.load %arg1[%c0_159, %c0_160, %c157] : memref<1x8x896xbf16, #tpu.memory_space<vmem>>, vector<1x8x512xbf16>
    %168 = vector.shape_cast %167 : vector<1x8x512xbf16> to vector<8x512xbf16>
    %c0_161 = arith.constant 0 : index
    %c0_162 = arith.constant 0 : index
    %c158 = arith.constant 158 : index
    %169 = vector.load %arg1[%c0_161, %c0_162, %c158] : memref<1x8x896xbf16, #tpu.memory_space<vmem>>, vector<1x8x512xbf16>
    %170 = vector.shape_cast %169 : vector<1x8x512xbf16> to vector<8x512xbf16>
    %c0_163 = arith.constant 0 : index
    %c0_164 = arith.constant 0 : index
    %c159 = arith.constant 159 : index
    %171 = vector.load %arg1[%c0_163, %c0_164, %c159] : memref<1x8x896xbf16, #tpu.memory_space<vmem>>, vector<1x8x512xbf16>
    %172 = vector.shape_cast %171 : vector<1x8x512xbf16> to vector<8x512xbf16>
    %c0_165 = arith.constant 0 : index
    %c0_166 = arith.constant 0 : index
    %c160 = arith.constant 160 : index
    %173 = vector.load %arg1[%c0_165, %c0_166, %c160] : memref<1x8x896xbf16, #tpu.memory_space<vmem>>, vector<1x8x512xbf16>
    %174 = vector.shape_cast %173 : vector<1x8x512xbf16> to vector<8x512xbf16>
    %c0_167 = arith.constant 0 : index
    %c0_168 = arith.constant 0 : index
    %c161 = arith.constant 161 : index
    %175 = vector.load %arg1[%c0_167, %c0_168, %c161] : memref<1x8x896xbf16, #tpu.memory_space<vmem>>, vector<1x8x512xbf16>
    %176 = vector.shape_cast %175 : vector<1x8x512xbf16> to vector<8x512xbf16>
    %c0_169 = arith.constant 0 : index
    %c0_170 = arith.constant 0 : index
    %c162 = arith.constant 162 : index
    %177 = vector.load %arg1[%c0_169, %c0_170, %c162] : memref<1x8x896xbf16, #tpu.memory_space<vmem>>, vector<1x8x512xbf16>
    %178 = vector.shape_cast %177 : vector<1x8x512xbf16> to vector<8x512xbf16>
    %c0_171 = arith.constant 0 : index
    %c0_172 = arith.constant 0 : index
    %c163 = arith.constant 163 : index
    %179 = vector.load %arg1[%c0_171, %c0_172, %c163] : memref<1x8x896xbf16, #tpu.memory_space<vmem>>, vector<1x8x512xbf16>
    %180 = vector.shape_cast %179 : vector<1x8x512xbf16> to vector<8x512xbf16>
    %c0_173 = arith.constant 0 : index
    %c0_174 = arith.constant 0 : index
    %c164 = arith.constant 164 : index
    %181 = vector.load %arg1[%c0_173, %c0_174, %c164] : memref<1x8x896xbf16, #tpu.memory_space<vmem>>, vector<1x8x512xbf16>
    %182 = vector.shape_cast %181 : vector<1x8x512xbf16> to vector<8x512xbf16>
    %c0_175 = arith.constant 0 : index
    %c0_176 = arith.constant 0 : index
    %c165 = arith.constant 165 : index
    %183 = vector.load %arg1[%c0_175, %c0_176, %c165] : memref<1x8x896xbf16, #tpu.memory_space<vmem>>, vector<1x8x512xbf16>
    %184 = vector.shape_cast %183 : vector<1x8x512xbf16> to vector<8x512xbf16>
    %c0_177 = arith.constant 0 : index
    %c0_178 = arith.constant 0 : index
    %c166 = arith.constant 166 : index
    %185 = vector.load %arg1[%c0_177, %c0_178, %c166] : memref<1x8x896xbf16, #tpu.memory_space<vmem>>, vector<1x8x512xbf16>
    %186 = vector.shape_cast %185 : vector<1x8x512xbf16> to vector<8x512xbf16>
    %187 = tpu.concatenate %166, %168, %170, %172, %174, %176, %178, %180, %182, %184, %186 in 0 : vector<8x512xbf16>, vector<8x512xbf16>, vector<8x512xbf16>, vector<8x512xbf16>, vector<8x512xbf16>, vector<8x512xbf16>, vector<8x512xbf16>, vector<8x512xbf16>, vector<8x512xbf16>, vector<8x512xbf16>, vector<8x512xbf16> -> vector<88x512xbf16>
    %c6_179 = arith.constant 6 : index
    %c0_180 = arith.constant 0 : index
    %c0_181 = arith.constant 0 : index
    %188 = vector.load %arg2[%c6_179, %c0_180, %c0_181] : memref<11x8x88xbf16, #tpu.memory_space<vmem>>, vector<1x8x88xbf16>
    %189 = vector.shape_cast %188 : vector<1x8x88xbf16> to vector<8x88xbf16>
    %cst_182 = arith.constant dense<0.000000e+00> : vector<8x512xf32>
    %190 = tpu.matmul %189, %187, %cst_182 {dimension_numbers = #tpu.dot_dimension_numbers<[1], [0], [0], [1], [0, 0, 1, 1], [], []>} : vector<8x88xbf16>, vector<88x512xbf16>, vector<8x512xf32> -> vector<8x512xf32>
    %191 = arith.addf %164, %190 : vector<8x512xf32>
    %c0_183 = arith.constant 0 : index
    %c0_184 = arith.constant 0 : index
    %c182 = arith.constant 182 : index
    %192 = vector.load %arg1[%c0_183, %c0_184, %c182] : memref<1x8x896xbf16, #tpu.memory_space<vmem>>, vector<1x8x512xbf16>
    %193 = vector.shape_cast %192 : vector<1x8x512xbf16> to vector<8x512xbf16>
    %c0_185 = arith.constant 0 : index
    %c0_186 = arith.constant 0 : index
    %c183 = arith.constant 183 : index
    %194 = vector.load %arg1[%c0_185, %c0_186, %c183] : memref<1x8x896xbf16, #tpu.memory_space<vmem>>, vector<1x8x512xbf16>
    %195 = vector.shape_cast %194 : vector<1x8x512xbf16> to vector<8x512xbf16>
    %c0_187 = arith.constant 0 : index
    %c0_188 = arith.constant 0 : index
    %c184 = arith.constant 184 : index
    %196 = vector.load %arg1[%c0_187, %c0_188, %c184] : memref<1x8x896xbf16, #tpu.memory_space<vmem>>, vector<1x8x512xbf16>
    %197 = vector.shape_cast %196 : vector<1x8x512xbf16> to vector<8x512xbf16>
    %c0_189 = arith.constant 0 : index
    %c0_190 = arith.constant 0 : index
    %c185 = arith.constant 185 : index
    %198 = vector.load %arg1[%c0_189, %c0_190, %c185] : memref<1x8x896xbf16, #tpu.memory_space<vmem>>, vector<1x8x512xbf16>
    %199 = vector.shape_cast %198 : vector<1x8x512xbf16> to vector<8x512xbf16>
    %c0_191 = arith.constant 0 : index
    %c0_192 = arith.constant 0 : index
    %c186 = arith.constant 186 : index
    %200 = vector.load %arg1[%c0_191, %c0_192, %c186] : memref<1x8x896xbf16, #tpu.memory_space<vmem>>, vector<1x8x512xbf16>
    %201 = vector.shape_cast %200 : vector<1x8x512xbf16> to vector<8x512xbf16>
    %c0_193 = arith.constant 0 : index
    %c0_194 = arith.constant 0 : index
    %c187 = arith.constant 187 : index
    %202 = vector.load %arg1[%c0_193, %c0_194, %c187] : memref<1x8x896xbf16, #tpu.memory_space<vmem>>, vector<1x8x512xbf16>
    %203 = vector.shape_cast %202 : vector<1x8x512xbf16> to vector<8x512xbf16>
    %c0_195 = arith.constant 0 : index
    %c0_196 = arith.constant 0 : index
    %c188 = arith.constant 188 : index
    %204 = vector.load %arg1[%c0_195, %c0_196, %c188] : memref<1x8x896xbf16, #tpu.memory_space<vmem>>, vector<1x8x512xbf16>
    %205 = vector.shape_cast %204 : vector<1x8x512xbf16> to vector<8x512xbf16>
    %c0_197 = arith.constant 0 : index
    %c0_198 = arith.constant 0 : index
    %c189 = arith.constant 189 : index
    %206 = vector.load %arg1[%c0_197, %c0_198, %c189] : memref<1x8x896xbf16, #tpu.memory_space<vmem>>, vector<1x8x512xbf16>
    %207 = vector.shape_cast %206 : vector<1x8x512xbf16> to vector<8x512xbf16>
    %c0_199 = arith.constant 0 : index
    %c0_200 = arith.constant 0 : index
    %c190 = arith.constant 190 : index
    %208 = vector.load %arg1[%c0_199, %c0_200, %c190] : memref<1x8x896xbf16, #tpu.memory_space<vmem>>, vector<1x8x512xbf16>
    %209 = vector.shape_cast %208 : vector<1x8x512xbf16> to vector<8x512xbf16>
    %c0_201 = arith.constant 0 : index
    %c0_202 = arith.constant 0 : index
    %c191 = arith.constant 191 : index
    %210 = vector.load %arg1[%c0_201, %c0_202, %c191] : memref<1x8x896xbf16, #tpu.memory_space<vmem>>, vector<1x8x512xbf16>
    %211 = vector.shape_cast %210 : vector<1x8x512xbf16> to vector<8x512xbf16>
    %c0_203 = arith.constant 0 : index
    %c0_204 = arith.constant 0 : index
    %c192 = arith.constant 192 : index
    %212 = vector.load %arg1[%c0_203, %c0_204, %c192] : memref<1x8x896xbf16, #tpu.memory_space<vmem>>, vector<1x8x512xbf16>
    %213 = vector.shape_cast %212 : vector<1x8x512xbf16> to vector<8x512xbf16>
    %214 = tpu.concatenate %193, %195, %197, %199, %201, %203, %205, %207, %209, %211, %213 in 0 : vector<8x512xbf16>, vector<8x512xbf16>, vector<8x512xbf16>, vector<8x512xbf16>, vector<8x512xbf16>, vector<8x512xbf16>, vector<8x512xbf16>, vector<8x512xbf16>, vector<8x512xbf16>, vector<8x512xbf16>, vector<8x512xbf16> -> vector<88x512xbf16>
    %c7_205 = arith.constant 7 : index
    %c0_206 = arith.constant 0 : index
    %c0_207 = arith.constant 0 : index
    %215 = vector.load %arg2[%c7_205, %c0_206, %c0_207] : memref<11x8x88xbf16, #tpu.memory_space<vmem>>, vector<1x8x88xbf16>
    %216 = vector.shape_cast %215 : vector<1x8x88xbf16> to vector<8x88xbf16>
    %cst_208 = arith.constant dense<0.000000e+00> : vector<8x512xf32>
    %217 = tpu.matmul %216, %214, %cst_208 {dimension_numbers = #tpu.dot_dimension_numbers<[1], [0], [0], [1], [0, 0, 1, 1], [], []>} : vector<8x88xbf16>, vector<88x512xbf16>, vector<8x512xf32> -> vector<8x512xf32>
    %218 = arith.addf %191, %217 : vector<8x512xf32>
    %c0_209 = arith.constant 0 : index
    %c0_210 = arith.constant 0 : index
    %c208 = arith.constant 208 : index
    %219 = vector.load %arg1[%c0_209, %c0_210, %c208] : memref<1x8x896xbf16, #tpu.memory_space<vmem>>, vector<1x8x512xbf16>
    %220 = vector.shape_cast %219 : vector<1x8x512xbf16> to vector<8x512xbf16>
    %c0_211 = arith.constant 0 : index
    %c0_212 = arith.constant 0 : index
    %c209 = arith.constant 209 : index
    %221 = vector.load %arg1[%c0_211, %c0_212, %c209] : memref<1x8x896xbf16, #tpu.memory_space<vmem>>, vector<1x8x512xbf16>
    %222 = vector.shape_cast %221 : vector<1x8x512xbf16> to vector<8x512xbf16>
    %c0_213 = arith.constant 0 : index
    %c0_214 = arith.constant 0 : index
    %c210 = arith.constant 210 : index
    %223 = vector.load %arg1[%c0_213, %c0_214, %c210] : memref<1x8x896xbf16, #tpu.memory_space<vmem>>, vector<1x8x512xbf16>
    %224 = vector.shape_cast %223 : vector<1x8x512xbf16> to vector<8x512xbf16>
    %c0_215 = arith.constant 0 : index
    %c0_216 = arith.constant 0 : index
    %c211 = arith.constant 211 : index
    %225 = vector.load %arg1[%c0_215, %c0_216, %c211] : memref<1x8x896xbf16, #tpu.memory_space<vmem>>, vector<1x8x512xbf16>
    %226 = vector.shape_cast %225 : vector<1x8x512xbf16> to vector<8x512xbf16>
    %c0_217 = arith.constant 0 : index
    %c0_218 = arith.constant 0 : index
    %c212 = arith.constant 212 : index
    %227 = vector.load %arg1[%c0_217, %c0_218, %c212] : memref<1x8x896xbf16, #tpu.memory_space<vmem>>, vector<1x8x512xbf16>
    %228 = vector.shape_cast %227 : vector<1x8x512xbf16> to vector<8x512xbf16>
    %c0_219 = arith.constant 0 : index
    %c0_220 = arith.constant 0 : index
    %c213 = arith.constant 213 : index
    %229 = vector.load %arg1[%c0_219, %c0_220, %c213] : memref<1x8x896xbf16, #tpu.memory_space<vmem>>, vector<1x8x512xbf16>
    %230 = vector.shape_cast %229 : vector<1x8x512xbf16> to vector<8x512xbf16>
    %c0_221 = arith.constant 0 : index
    %c0_222 = arith.constant 0 : index
    %c214 = arith.constant 214 : index
    %231 = vector.load %arg1[%c0_221, %c0_222, %c214] : memref<1x8x896xbf16, #tpu.memory_space<vmem>>, vector<1x8x512xbf16>
    %232 = vector.shape_cast %231 : vector<1x8x512xbf16> to vector<8x512xbf16>
    %c0_223 = arith.constant 0 : index
    %c0_224 = arith.constant 0 : index
    %c215 = arith.constant 215 : index
    %233 = vector.load %arg1[%c0_223, %c0_224, %c215] : memref<1x8x896xbf16, #tpu.memory_space<vmem>>, vector<1x8x512xbf16>
    %234 = vector.shape_cast %233 : vector<1x8x512xbf16> to vector<8x512xbf16>
    %c0_225 = arith.constant 0 : index
    %c0_226 = arith.constant 0 : index
    %c216 = arith.constant 216 : index
    %235 = vector.load %arg1[%c0_225, %c0_226, %c216] : memref<1x8x896xbf16, #tpu.memory_space<vmem>>, vector<1x8x512xbf16>
    %236 = vector.shape_cast %235 : vector<1x8x512xbf16> to vector<8x512xbf16>
    %c0_227 = arith.constant 0 : index
    %c0_228 = arith.constant 0 : index
    %c217 = arith.constant 217 : index
    %237 = vector.load %arg1[%c0_227, %c0_228, %c217] : memref<1x8x896xbf16, #tpu.memory_space<vmem>>, vector<1x8x512xbf16>
    %238 = vector.shape_cast %237 : vector<1x8x512xbf16> to vector<8x512xbf16>
    %c0_229 = arith.constant 0 : index
    %c0_230 = arith.constant 0 : index
    %c218 = arith.constant 218 : index
    %239 = vector.load %arg1[%c0_229, %c0_230, %c218] : memref<1x8x896xbf16, #tpu.memory_space<vmem>>, vector<1x8x512xbf16>
    %240 = vector.shape_cast %239 : vector<1x8x512xbf16> to vector<8x512xbf16>
    %241 = tpu.concatenate %220, %222, %224, %226, %228, %230, %232, %234, %236, %238, %240 in 0 : vector<8x512xbf16>, vector<8x512xbf16>, vector<8x512xbf16>, vector<8x512xbf16>, vector<8x512xbf16>, vector<8x512xbf16>, vector<8x512xbf16>, vector<8x512xbf16>, vector<8x512xbf16>, vector<8x512xbf16>, vector<8x512xbf16> -> vector<88x512xbf16>
    %c8_231 = arith.constant 8 : index
    %c0_232 = arith.constant 0 : index
    %c0_233 = arith.constant 0 : index
    %242 = vector.load %arg2[%c8_231, %c0_232, %c0_233] : memref<11x8x88xbf16, #tpu.memory_space<vmem>>, vector<1x8x88xbf16>
    %243 = vector.shape_cast %242 : vector<1x8x88xbf16> to vector<8x88xbf16>
    %cst_234 = arith.constant dense<0.000000e+00> : vector<8x512xf32>
    %244 = tpu.matmul %243, %241, %cst_234 {dimension_numbers = #tpu.dot_dimension_numbers<[1], [0], [0], [1], [0, 0, 1, 1], [], []>} : vector<8x88xbf16>, vector<88x512xbf16>, vector<8x512xf32> -> vector<8x512xf32>
    %245 = arith.addf %218, %244 : vector<8x512xf32>
    %c0_235 = arith.constant 0 : index
    %c0_236 = arith.constant 0 : index
    %c234 = arith.constant 234 : index
    %246 = vector.load %arg1[%c0_235, %c0_236, %c234] : memref<1x8x896xbf16, #tpu.memory_space<vmem>>, vector<1x8x512xbf16>
    %247 = vector.shape_cast %246 : vector<1x8x512xbf16> to vector<8x512xbf16>
    %c0_237 = arith.constant 0 : index
    %c0_238 = arith.constant 0 : index
    %c235 = arith.constant 235 : index
    %248 = vector.load %arg1[%c0_237, %c0_238, %c235] : memref<1x8x896xbf16, #tpu.memory_space<vmem>>, vector<1x8x512xbf16>
    %249 = vector.shape_cast %248 : vector<1x8x512xbf16> to vector<8x512xbf16>
    %c0_239 = arith.constant 0 : index
    %c0_240 = arith.constant 0 : index
    %c236 = arith.constant 236 : index
    %250 = vector.load %arg1[%c0_239, %c0_240, %c236] : memref<1x8x896xbf16, #tpu.memory_space<vmem>>, vector<1x8x512xbf16>
    %251 = vector.shape_cast %250 : vector<1x8x512xbf16> to vector<8x512xbf16>
    %c0_241 = arith.constant 0 : index
    %c0_242 = arith.constant 0 : index
    %c237 = arith.constant 237 : index
    %252 = vector.load %arg1[%c0_241, %c0_242, %c237] : memref<1x8x896xbf16, #tpu.memory_space<vmem>>, vector<1x8x512xbf16>
    %253 = vector.shape_cast %252 : vector<1x8x512xbf16> to vector<8x512xbf16>
    %c0_243 = arith.constant 0 : index
    %c0_244 = arith.constant 0 : index
    %c238 = arith.constant 238 : index
    %254 = vector.load %arg1[%c0_243, %c0_244, %c238] : memref<1x8x896xbf16, #tpu.memory_space<vmem>>, vector<1x8x512xbf16>
    %255 = vector.shape_cast %254 : vector<1x8x512xbf16> to vector<8x512xbf16>
    %c0_245 = arith.constant 0 : index
    %c0_246 = arith.constant 0 : index
    %c239 = arith.constant 239 : index
    %256 = vector.load %arg1[%c0_245, %c0_246, %c239] : memref<1x8x896xbf16, #tpu.memory_space<vmem>>, vector<1x8x512xbf16>
    %257 = vector.shape_cast %256 : vector<1x8x512xbf16> to vector<8x512xbf16>
    %c0_247 = arith.constant 0 : index
    %c0_248 = arith.constant 0 : index
    %c240 = arith.constant 240 : index
    %258 = vector.load %arg1[%c0_247, %c0_248, %c240] : memref<1x8x896xbf16, #tpu.memory_space<vmem>>, vector<1x8x512xbf16>
    %259 = vector.shape_cast %258 : vector<1x8x512xbf16> to vector<8x512xbf16>
    %c0_249 = arith.constant 0 : index
    %c0_250 = arith.constant 0 : index
    %c241 = arith.constant 241 : index
    %260 = vector.load %arg1[%c0_249, %c0_250, %c241] : memref<1x8x896xbf16, #tpu.memory_space<vmem>>, vector<1x8x512xbf16>
    %261 = vector.shape_cast %260 : vector<1x8x512xbf16> to vector<8x512xbf16>
    %c0_251 = arith.constant 0 : index
    %c0_252 = arith.constant 0 : index
    %c242 = arith.constant 242 : index
    %262 = vector.load %arg1[%c0_251, %c0_252, %c242] : memref<1x8x896xbf16, #tpu.memory_space<vmem>>, vector<1x8x512xbf16>
    %263 = vector.shape_cast %262 : vector<1x8x512xbf16> to vector<8x512xbf16>
    %c0_253 = arith.constant 0 : index
    %c0_254 = arith.constant 0 : index
    %c243 = arith.constant 243 : index
    %264 = vector.load %arg1[%c0_253, %c0_254, %c243] : memref<1x8x896xbf16, #tpu.memory_space<vmem>>, vector<1x8x512xbf16>
    %265 = vector.shape_cast %264 : vector<1x8x512xbf16> to vector<8x512xbf16>
    %c0_255 = arith.constant 0 : index
    %c0_256 = arith.constant 0 : index
    %c244 = arith.constant 244 : index
    %266 = vector.load %arg1[%c0_255, %c0_256, %c244] : memref<1x8x896xbf16, #tpu.memory_space<vmem>>, vector<1x8x512xbf16>
    %267 = vector.shape_cast %266 : vector<1x8x512xbf16> to vector<8x512xbf16>
    %268 = tpu.concatenate %247, %249, %251, %253, %255, %257, %259, %261, %263, %265, %267 in 0 : vector<8x512xbf16>, vector<8x512xbf16>, vector<8x512xbf16>, vector<8x512xbf16>, vector<8x512xbf16>, vector<8x512xbf16>, vector<8x512xbf16>, vector<8x512xbf16>, vector<8x512xbf16>, vector<8x512xbf16>, vector<8x512xbf16> -> vector<88x512xbf16>
    %c9_257 = arith.constant 9 : index
    %c0_258 = arith.constant 0 : index
    %c0_259 = arith.constant 0 : index
    %269 = vector.load %arg2[%c9_257, %c0_258, %c0_259] : memref<11x8x88xbf16, #tpu.memory_space<vmem>>, vector<1x8x88xbf16>
    %270 = vector.shape_cast %269 : vector<1x8x88xbf16> to vector<8x88xbf16>
    %cst_260 = arith.constant dense<0.000000e+00> : vector<8x512xf32>
    %271 = tpu.matmul %270, %268, %cst_260 {dimension_numbers = #tpu.dot_dimension_numbers<[1], [0], [0], [1], [0, 0, 1, 1], [], []>} : vector<8x88xbf16>, vector<88x512xbf16>, vector<8x512xf32> -> vector<8x512xf32>
    %272 = arith.addf %245, %271 : vector<8x512xf32>
    %c0_261 = arith.constant 0 : index
    %c0_262 = arith.constant 0 : index
    %c260 = arith.constant 260 : index
    %273 = vector.load %arg1[%c0_261, %c0_262, %c260] : memref<1x8x896xbf16, #tpu.memory_space<vmem>>, vector<1x8x512xbf16>
    %274 = vector.shape_cast %273 : vector<1x8x512xbf16> to vector<8x512xbf16>
    %c0_263 = arith.constant 0 : index
    %c0_264 = arith.constant 0 : index
    %c261 = arith.constant 261 : index
    %275 = vector.load %arg1[%c0_263, %c0_264, %c261] : memref<1x8x896xbf16, #tpu.memory_space<vmem>>, vector<1x8x512xbf16>
    %276 = vector.shape_cast %275 : vector<1x8x512xbf16> to vector<8x512xbf16>
    %c0_265 = arith.constant 0 : index
    %c0_266 = arith.constant 0 : index
    %c262 = arith.constant 262 : index
    %277 = vector.load %arg1[%c0_265, %c0_266, %c262] : memref<1x8x896xbf16, #tpu.memory_space<vmem>>, vector<1x8x512xbf16>
    %278 = vector.shape_cast %277 : vector<1x8x512xbf16> to vector<8x512xbf16>
    %c0_267 = arith.constant 0 : index
    %c0_268 = arith.constant 0 : index
    %c263 = arith.constant 263 : index
    %279 = vector.load %arg1[%c0_267, %c0_268, %c263] : memref<1x8x896xbf16, #tpu.memory_space<vmem>>, vector<1x8x512xbf16>
    %280 = vector.shape_cast %279 : vector<1x8x512xbf16> to vector<8x512xbf16>
    %c0_269 = arith.constant 0 : index
    %c0_270 = arith.constant 0 : index
    %c264 = arith.constant 264 : index
    %281 = vector.load %arg1[%c0_269, %c0_270, %c264] : memref<1x8x896xbf16, #tpu.memory_space<vmem>>, vector<1x8x512xbf16>
    %282 = vector.shape_cast %281 : vector<1x8x512xbf16> to vector<8x512xbf16>
    %c0_271 = arith.constant 0 : index
    %c0_272 = arith.constant 0 : index
    %c265 = arith.constant 265 : index
    %283 = vector.load %arg1[%c0_271, %c0_272, %c265] : memref<1x8x896xbf16, #tpu.memory_space<vmem>>, vector<1x8x512xbf16>
    %284 = vector.shape_cast %283 : vector<1x8x512xbf16> to vector<8x512xbf16>
    %c0_273 = arith.constant 0 : index
    %c0_274 = arith.constant 0 : index
    %c266 = arith.constant 266 : index
    %285 = vector.load %arg1[%c0_273, %c0_274, %c266] : memref<1x8x896xbf16, #tpu.memory_space<vmem>>, vector<1x8x512xbf16>
    %286 = vector.shape_cast %285 : vector<1x8x512xbf16> to vector<8x512xbf16>
    %c0_275 = arith.constant 0 : index
    %c0_276 = arith.constant 0 : index
    %c267 = arith.constant 267 : index
    %287 = vector.load %arg1[%c0_275, %c0_276, %c267] : memref<1x8x896xbf16, #tpu.memory_space<vmem>>, vector<1x8x512xbf16>
    %288 = vector.shape_cast %287 : vector<1x8x512xbf16> to vector<8x512xbf16>
    %c0_277 = arith.constant 0 : index
    %c0_278 = arith.constant 0 : index
    %c268 = arith.constant 268 : index
    %289 = vector.load %arg1[%c0_277, %c0_278, %c268] : memref<1x8x896xbf16, #tpu.memory_space<vmem>>, vector<1x8x512xbf16>
    %290 = vector.shape_cast %289 : vector<1x8x512xbf16> to vector<8x512xbf16>
    %c0_279 = arith.constant 0 : index
    %c0_280 = arith.constant 0 : index
    %c269 = arith.constant 269 : index
    %291 = vector.load %arg1[%c0_279, %c0_280, %c269] : memref<1x8x896xbf16, #tpu.memory_space<vmem>>, vector<1x8x512xbf16>
    %292 = vector.shape_cast %291 : vector<1x8x512xbf16> to vector<8x512xbf16>
    %c0_281 = arith.constant 0 : index
    %c0_282 = arith.constant 0 : index
    %c270 = arith.constant 270 : index
    %293 = vector.load %arg1[%c0_281, %c0_282, %c270] : memref<1x8x896xbf16, #tpu.memory_space<vmem>>, vector<1x8x512xbf16>
    %294 = vector.shape_cast %293 : vector<1x8x512xbf16> to vector<8x512xbf16>
    %295 = tpu.concatenate %274, %276, %278, %280, %282, %284, %286, %288, %290, %292, %294 in 0 : vector<8x512xbf16>, vector<8x512xbf16>, vector<8x512xbf16>, vector<8x512xbf16>, vector<8x512xbf16>, vector<8x512xbf16>, vector<8x512xbf16>, vector<8x512xbf16>, vector<8x512xbf16>, vector<8x512xbf16>, vector<8x512xbf16> -> vector<88x512xbf16>
    %c10_283 = arith.constant 10 : index
    %c0_284 = arith.constant 0 : index
    %c0_285 = arith.constant 0 : index
    %296 = vector.load %arg2[%c10_283, %c0_284, %c0_285] : memref<11x8x88xbf16, #tpu.memory_space<vmem>>, vector<1x8x88xbf16>
    %297 = vector.shape_cast %296 : vector<1x8x88xbf16> to vector<8x88xbf16>
    %cst_286 = arith.constant dense<0.000000e+00> : vector<8x512xf32>
    %298 = tpu.matmul %297, %295, %cst_286 {dimension_numbers = #tpu.dot_dimension_numbers<[1], [0], [0], [1], [0, 0, 1, 1], [], []>} : vector<8x88xbf16>, vector<88x512xbf16>, vector<8x512xf32> -> vector<8x512xf32>
    %299 = arith.addf %272, %298 : vector<8x512xf32>
    %c0_287 = arith.constant 0 : index
    %c0_288 = arith.constant 0 : index
    %c0_289 = arith.constant 0 : index
    %300 = vector.load %arg4[%c0_287, %c0_288, %c0_289] : memref<1x8x512xf32, #tpu.memory_space<vmem>>, vector<1x8x512xf32>
    %301 = vector.shape_cast %300 : vector<1x8x512xf32> to vector<8x512xf32>
    %302 = vector.shape_cast %299 : vector<8x512xf32> to vector<1x8x512xf32>
    tpu.vector_store %arg4[%c0_287, %c0_288, %c0_289], %302 {strides = array<i32>} : memref<1x8x512xf32, #tpu.memory_space<vmem>>, vector<1x8x512xf32>,
    return
  }
  func.func @transform_0(%arg0: i32) -> (i32, i32, i32) {
    %c0_i32 = arith.constant 0 : i32
    %c0_i32_0 = arith.constant 0 : i32
    %c0_i32_1 = arith.constant 0 : i32
    return %arg0, %c0_i32, %c0_i32_0 : i32, i32, i32
  }
  func.func @transform_1(%arg0: i32) -> (i32, i32, i32) {
    %c0_i32 = arith.constant 0 : i32
    %c0_i32_0 = arith.constant 0 : i32
    %c0_i32_1 = arith.constant 0 : i32
    %c0_i32_2 = arith.constant 0 : i32
    return %c0_i32, %c0_i32_0, %c0_i32_1 : i32, i32, i32
  }
  func.func @transform_2(%arg0: i32) -> (i32, i32) {
    %c0_i32 = arith.constant 0 : i32
    %c0_i32_0 = arith.constant 0 : i32
    %c0_i32_1 = arith.constant 0 : i32
    return %c0_i32, %c0_i32_0 : i32, i32
  }
  func.func @transform_3(%arg0: i32) -> (i32, i32, i32) {
    %c0_i32 = arith.constant 0 : i32
    %c0_i32_0 = arith.constant 0 : i32
    %c0_i32_1 = arith.constant 0 : i32
    return %arg0, %c0_i32, %c0_i32_0 : i32, i32, i32
  }
}

</mosaic_0001>

<bundles_post_ra>
// kernel: inception_block_v1_pallas.1
= control target key start
LH: loop header
LB: loop body
LE: loop exit
PB: predicated region body
PF: predicated region fallthrough
CT: control target
= control target key end

     0   :  { %s3472_s12 = smov 0   ;;  %s5321_s0 = inlined_call_operand.vmem [shape: bf16[2,8,896], index: 0, kind: input, shape index: {}]   ;;  %s5322_s1 = inlined_call_operand.vmem [shape: bf16[11,8,88], index: 1, kind: input, shape index: {}]   ;;  %s5323_s2 = inlined_call_operand.vmem [shape: f32[8,1], index: 2, kind: input, shape index: {}]   ;;  %s5324_s3 = inlined_call_operand.vmem [shape: f32[2,8,512], index: 3, kind: output, shape index: {}]  }
   0x1 LB: > { %s3217_s13 = sadd.s32 4294967295, %s3431_s12   ;;  %p3221_p0 = scmp.ge.s32.totalorder %s3431_s12, 1  ;;  %s3431_s12 = sphi %s3472_s12, %s13_s12  }
   0x2   : > { %p137_p1 = scmp.lt.s32.totalorder %s3431_s12, 3 }
   0x4   : > { %p138_p2 = pnand %p3221_p0, %p137_p1 }
   0x6   : > { %141 = sbr.rel (%p138_p2) target bundleno = 1383 (0x567), region = 32 }
   0xd   : > { %v172_v0 = vld [vmem:[%s5323_s2] sm:$0xff]  ;;  %p161_p3 = scmp.lt.s32.totalorder %s3217_s13, 1  ;;  %v5325_v1 = vmov 0   ;;  %s3434_s20 = smov 127   ;;  %vm204_vm0 = vcmask 1039360   ;;  %vm344_vm1 = vcmask 1043456  }
   0xe   : > { %3409 = vset.pattern.permute.xlu0 %v5325_v1  ;;  %474 = vmatprep.mubr.bf16.mxu0 %v5325_v1  ;;  %s3435_s21 = smov 126   ;;  %s3436_s22 = smov 125   ;;  %vm219_vm2 = vcmask 1031168   ;;  %vm234_vm3 = vcmask 1022976   ;;  %vm249_vm4 = vcmask 1014784   ;;  %vm264_vm5 = vcmask 1006592  }
   0xf   : > { %175 = vperm.xlu0 %3409, %v172_v0   ;;  %s5334_s13 = smov (!%p161_p3, %s3217_s13), 1  ;;  %515 = vmatprep.mubr.bf16.mxu1 %v5325_v1  ;;  %s3437_s23 = smov 124   ;;  %vm279_vm6 = vcmask 998400   ;;  %vm294_vm7 = vcmask 990208   ;;  %vm309_vm8 = vcmask 982016   ;;  %vm324_vm9 = vcmask 973824  }
  0x10   : > { %s3381_s16 = smul.u32 28, %s5334_s13  ;;  %s3438_s24 = smov 123   ;;  %vm339_vm10 = vcmask 965632   ;;  %vm426_vm11 = vcmask 719872   ;;  %vm630_vm12 = vcmask 834560   ;;  %vm838_vm13 = vcmask 621568  }
  0x11   : > { %s3439_s25 = smov 122   ;;  %s3440_s26 = smov 121   ;;  %vm1046_vm14 = vcmask 408576   ;;  %vm1254_vm15 = vcmask 195584  }
  0x12   : > { %s3492_s19 = scalar_lea.vmem %s5321_s0, %s3381_s16  ;;  %s3441_s27 = smov 120  }
  0x13   : > { %v178_v2 = vld [vmem:[%s3492_s19] sm:$0xff]  ;;  %v179_v3 = vld [vmem:[%s3492_s19 + $0x8] sm:$0xff]  ;;  %v3511_v8 = vld [vmem:[%s3492_s19 + $0x10] ss:$0 sps:$4 sm:$0xff]   ;;  %s3442_s28 = smov 119   ;;  %s3443_s29 = smov 118  }
  0x14   : > { %v3496_v4 = vcombine.high %v178_v2, %v178_v2  ;;  %v3498_v5 = vcombine.low %v178_v2, %v178_v2  ;;  %v3502_v6 = vcombine.low %v179_v3, %v179_v3  ;;  %v3506_v7 = vcombine.high %v179_v3, %v179_v3  ;;  %s3444_s30 = smov 102   ;;  %s3445_s6 = smov 76  }
  0x15   : > { %s3446_s7 = smov 50   ;;  %s3447_s10 = smov 24  }
  0x16   : > { %196 = vrot.lane.b32.xlu1 %v3496_v4, %s3434_s20  ;;  %194 = vrot.lane.b32.xlu0 %v3498_v5, %s3434_s20  ;;  %s3449_s4 = smov 74   ;;  %s3296_s8 = sshll.u32 %s5334_s13, 5 }
  0x17   : > { %s170_s11 = scalar_lea.vmem %s5324_s3, %s3296_s8 }
  0x1a   : > { %198 = vrot.lane.b32.xlu1 %v3502_v6, %s3434_s20  ;;  %200 = vrot.lane.b32.xlu0 %v3506_v7, %s3434_s20 }
  0x1e   : > { %202 = vrot.lane.b32.xlu1 %v3511_v8, %s3434_s20  ;;  %209 = vrot.lane.b32.xlu0 %v3498_v5, %s3435_s21 }
  0x22   : > { %211 = vrot.lane.b32.xlu1 %v3496_v4, %s3435_s21  ;;  %213 = vrot.lane.b32.xlu0 %v3502_v6, %s3435_s21 }
  0x26   : > { %215 = vrot.lane.b32.xlu1 %v3506_v7, %s3435_s21  ;;  %217 = vrot.lane.b32.xlu0 %v3511_v8, %s3435_s21 }
  0x2a   : > { %224 = vrot.lane.b32.xlu1 %v3498_v5, %s3436_s22  ;;  %226 = vrot.lane.b32.xlu0 %v3496_v4, %s3436_s22 }
  0x2e   : > { %228 = vrot.lane.b32.xlu1 %v3502_v6, %s3436_s22  ;;  %230 = vrot.lane.b32.xlu0 %v3506_v7, %s3436_s22 }
  0x32   : > { %232 = vrot.lane.b32.xlu1 %v3511_v8, %s3436_s22  ;;  %239 = vrot.lane.b32.xlu0 %v3498_v5, %s3437_s23 }
  0x36   : > { %241 = vrot.lane.b32.xlu1 %v3496_v4, %s3437_s23  ;;  %243 = vrot.lane.b32.xlu0 %v3502_v6, %s3437_s23 }
  0x3a   : > { %245 = vrot.lane.b32.xlu1 %v3506_v7, %s3437_s23  ;;  %247 = vrot.lane.b32.xlu0 %v3511_v8, %s3437_s23 }
  0x3e   : > { %254 = vrot.lane.b32.xlu1 %v3498_v5, %s3438_s24  ;;  %256 = vrot.lane.b32.xlu0 %v3496_v4, %s3438_s24 }
  0x42   : > { %258 = vrot.lane.b32.xlu1 %v3502_v6, %s3438_s24  ;;  %260 = vrot.lane.b32.xlu0 %v3506_v7, %s3438_s24 }
  0x46   : > { %262 = vrot.lane.b32.xlu1 %v3511_v8, %s3438_s24  ;;  %269 = vrot.lane.b32.xlu0 %v3498_v5, %s3439_s25 }
  0x4a   : > { %271 = vrot.lane.b32.xlu1 %v3496_v4, %s3439_s25  ;;  %273 = vrot.lane.b32.xlu0 %v3502_v6, %s3439_s25 }
  0x4e   : > { %275 = vrot.lane.b32.xlu1 %v3506_v7, %s3439_s25  ;;  %277 = vrot.lane.b32.xlu0 %v3511_v8, %s3439_s25 }
  0x52   : > { %284 = vrot.lane.b32.xlu1 %v3498_v5, %s3440_s26  ;;  %286 = vrot.lane.b32.xlu0 %v3496_v4, %s3440_s26 }
  0x56   : > { %288 = vrot.lane.b32.xlu1 %v3502_v6, %s3440_s26  ;;  %290 = vrot.lane.b32.xlu0 %v3506_v7, %s3440_s26 }
  0x5a   : > { %292 = vrot.lane.b32.xlu1 %v3511_v8, %s3440_s26  ;;  %299 = vrot.lane.b32.xlu0 %v3498_v5, %s3441_s27 }
  0x5e   : > { %301 = vrot.lane.b32.xlu1 %v3496_v4, %s3441_s27  ;;  %303 = vrot.lane.b32.xlu0 %v3502_v6, %s3441_s27 }
  0x62   : > { %305 = vrot.lane.b32.xlu1 %v3506_v7, %s3441_s27  ;;  %307 = vrot.lane.b32.xlu0 %v3511_v8, %s3441_s27 }
  0x66   : > { %314 = vrot.lane.b32.xlu1 %v3498_v5, %s3442_s28  ;;  %316 = vrot.lane.b32.xlu0 %v3496_v4, %s3442_s28 }
  0x6a   : > { %318 = vrot.lane.b32.xlu1 %v3502_v6, %s3442_s28  ;;  %320 = vrot.lane.b32.xlu0 %v3506_v7, %s3442_s28 }
  0x6e   : > { %322 = vrot.lane.b32.xlu1 %v3511_v8, %s3442_s28  ;;  %329 = vrot.lane.b32.xlu0 %v3498_v5, %s3443_s29 }
  0x72   : > { %331 = vrot.lane.b32.xlu1 %v3496_v4, %s3443_s29  ;;  %333 = vrot.lane.b32.xlu0 %v3502_v6, %s3443_s29 }
  0x76   : > { %335 = vrot.lane.b32.xlu1 %v3506_v7, %s3443_s29  ;;  %337 = vrot.lane.b32.xlu0 %v3511_v8, %s3443_s29 }
  0x88   : > { %v197_v9 = vpop.permute.xlu1 %196 }
  0x8c   : > { %v199_v10 = vpop.permute.xlu1 %198 }
  0x8d   : > { %v206_v11 = vsel %vm204_vm0, %v197_v9, %v199_v10 }
  0x8e   : > { %v3608_v12 = vpop.permute.xlu0 %175  ;;  %v3612_v13 = vsel %vm344_vm1, %v3496_v4, %v206_v11 }
  0x8f   : > { %5328 = vst [vmem:[#allocation2_spill] sm:$0xff] %v3608_v12  ;;  %442 = vmatprep.subr.bf16.mxu0 %v3612_v13 }
  0x90   : > { %v203_v14 = vpop.permute.xlu1 %202 }
  0x91   : > { %v3617_v16 = vsel %vm344_vm1, %v3511_v8, %v203_v14 }
  0x92   : > { %v195_v15 = vpop.permute.xlu0 %194  ;;  %578 = vrot.lane.b32.xlu1 %v3617_v16, %s3444_s30 }
  0x93   : > { %v205_v17 = vsel %vm204_vm0, %v195_v15, %v197_v9 }
  0x94   : > { %v3624_v18 = vsel %vm344_vm1, %v3498_v5, %v205_v17  ;;  %v212_v19 = vpop.permute.xlu1 %211 }
  0x95   : > { %443 = vmatpush1.bf16.msra.mxu0 %v3624_v18 }
  0x96   : > { %v201_v20 = vpop.permute.xlu0 %200  ;;  %570 = vrot.lane.b32.xlu1 %v3624_v18, %s3444_s30 }
  0x97   : > { %v207_v21 = vsel %vm204_vm0, %v199_v10, %v201_v20  ;;  %v208_v22 = vsel %vm204_vm0, %v201_v20, %v203_v14 }
  0x98   : > { %v3633_v23 = vsel %vm344_vm1, %v3506_v7, %v208_v22  ;;  %v3637_v24 = vsel %vm344_vm1, %v3502_v6, %v207_v21  ;;  %v216_v25 = vpop.permute.xlu1 %215 }
  0x99   : > { %483 = vmatprep.subr.bf16.mxu1 %v3633_v23 }
  0x9a   : > { %484 = vmatpush1.bf16.msra.mxu1 %v3637_v24  ;;  %v210_v26 = vpop.permute.xlu0 %209  ;;  %574 = vrot.lane.b32.xlu1 %v3637_v24, %s3444_s30 }
  0x9b   : > { %v220_v34 = vsel %vm219_vm2, %v210_v26, %v212_v19 }
  0x9c   : > { %v225_v27 = vpop.permute.xlu1 %224 }
  0x9e   : > { %v214_v28 = vpop.permute.xlu0 %213 }
  0x9f   : > { %v221_v35 = vsel %vm219_vm2, %v212_v19, %v214_v28  ;;  %v222_v42 = vsel %vm219_vm2, %v214_v28, %v216_v25 }
  0xa0   : > { %v229_v29 = vpop.permute.xlu1 %228 }
  0xa2   : > { %v218_v30 = vpop.permute.xlu0 %217 }
  0xa3   : > { %v223_v43 = vsel %vm219_vm2, %v216_v25, %v218_v30 }
  0xa4   : > { %v233_v31 = vpop.permute.xlu1 %232 }
  0xa5   : > { %v3644_v33 = vsel %vm344_vm1, %v218_v30, %v233_v31 }
  0xa6   : > { %v227_v32 = vpop.permute.xlu0 %226  ;;  %588 = vrot.lane.b32.xlu0 %v3644_v33, %s3444_s30 }
  0xa7   : > { %v235_v36 = vsel %vm234_vm3, %v225_v27, %v227_v32  ;;  %v236_v37 = vsel %vm234_vm3, %v227_v32, %v229_v29 }
  0xa8   : > { %v3653_v38 = vsel %vm344_vm1, %v221_v35, %v236_v37  ;;  %v3656_v39 = vsel %vm344_vm1, %v220_v34, %v235_v36  ;;  %v242_v40 = vpop.permute.xlu1 %241 }
  0xa9   : > { %582 = vrot.lane.b32.xlu1 %v3653_v38, %s3444_s30  ;;  %444 = vmatprep.subr.bf16.mxu0 %v3653_v38 }
  0xaa   : > { %445 = vmatpush1.bf16.msra.mxu0 %v3656_v39  ;;  %v231_v41 = vpop.permute.xlu0 %230  ;;  %572 = vrot.lane.b32.xlu0 %v3612_v13, %s3444_s30 }
  0xab   : > { %v237_v44 = vsel %vm234_vm3, %v229_v29, %v231_v41  ;;  %v238_v45 = vsel %vm234_vm3, %v231_v41, %v233_v31 }
  0xac   : > { %v3669_v46 = vsel %vm344_vm1, %v223_v43, %v238_v45  ;;  %v3672_v47 = vsel %vm344_vm1, %v222_v42, %v237_v44  ;;  %v246_v48 = vpop.permute.xlu1 %245 }
  0xad   : > { %586 = vrot.lane.b32.xlu1 %v3669_v46, %s3444_s30  ;;  %485 = vmatprep.subr.bf16.mxu1 %v3669_v46 }
  0xae   : > { %486 = vmatpush1.bf16.msra.mxu1 %v3672_v47  ;;  %v240_v49 = vpop.permute.xlu0 %239  ;;  %576 = vrot.lane.b32.xlu0 %v3633_v23, %s3444_s30 }
  0xaf   : > { %v250_v56 = vsel %vm249_vm4, %v240_v49, %v242_v40 }
  0xb0   : > { %v255_v50 = vpop.permute.xlu1 %254 }
  0xb2   : > { %v244_v51 = vpop.permute.xlu0 %243  ;;  %580 = vrot.lane.b32.xlu0 %v3656_v39, %s3444_s30 }
  0xb3   : > { %v251_v57 = vsel %vm249_vm4, %v242_v40, %v244_v51  ;;  %v252_v0 = vsel %vm249_vm4, %v244_v51, %v246_v48 }
  0xb4   : > { %v259_v52 = vpop.permute.xlu1 %258 }
  0xb6   : > { %v248_v53 = vpop.permute.xlu0 %247  ;;  %584 = vrot.lane.b32.xlu0 %v3672_v47, %s3444_s30 }
  0xb7   : > { %v253_v2 = vsel %vm249_vm4, %v246_v48, %v248_v53 }
  0xb8   : > { %v263_v54 = vpop.permute.xlu1 %262 }
  0xb9   : > { %v3717_v10 = vsel %vm344_vm1, %v248_v53, %v263_v54 }
  0xba   : > { %v257_v55 = vpop.permute.xlu0 %256 }
  0xbb   : > { %v265_v58 = vsel %vm264_vm5, %v255_v50, %v257_v55  ;;  %v266_v59 = vsel %vm264_vm5, %v257_v55, %v259_v52 }
  0xbc   : > { %v3689_v60 = vsel %vm344_vm1, %v251_v57, %v266_v59  ;;  %v3692_v61 = vsel %vm344_vm1, %v250_v56, %v265_v58  ;;  %v272_v62 = vpop.permute.xlu1 %271 }
  0xbd   : > { %592 = vrot.lane.b32.xlu0 %v3689_v60, %s3444_s30  ;;  %446 = vmatprep.subr.bf16.mxu0 %v3689_v60 }
  0xbe   : > { %590 = vrot.lane.b32.xlu1 %v3692_v61, %s3444_s30  ;;  %447 = vmatpush1.bf16.msra.mxu0 %v3692_v61  ;;  %v261_v63 = vpop.permute.xlu0 %260 }
  0xbf   : > { %v267_v3 = vsel %vm264_vm5, %v259_v52, %v261_v63  ;;  %v268_v4 = vsel %vm264_vm5, %v261_v63, %v263_v54 }
  0xc0   : > { %v3705_v5 = vsel %vm344_vm1, %v253_v2, %v268_v4  ;;  %v3708_v6 = vsel %vm344_vm1, %v252_v0, %v267_v3  ;;  %v276_v7 = vpop.permute.xlu1 %275 }
  0xc1   : > { %596 = vrot.lane.b32.xlu0 %v3705_v5, %s3444_s30  ;;  %487 = vmatprep.subr.bf16.mxu1 %v3705_v5 }
  0xc2   : > { %594 = vrot.lane.b32.xlu1 %v3708_v6, %s3444_s30  ;;  %488 = vmatpush1.bf16.msra.mxu1 %v3708_v6  ;;  %v270_v8 = vpop.permute.xlu0 %269 }
  0xc3   : > { %v280_v20 = vsel %vm279_vm6, %v270_v8, %v272_v62 }
  0xc4   : > { %v285_v9 = vpop.permute.xlu1 %284 }
  0xc6   : > { %598 = vrot.lane.b32.xlu1 %v3717_v10, %s3444_s30  ;;  %v274_v11 = vpop.permute.xlu0 %273 }
  0xc7   : > { %v281_v21 = vsel %vm279_vm6, %v272_v62, %v274_v11  ;;  %v282_v30 = vsel %vm279_vm6, %v274_v11, %v276_v7 }
  0xc8   : > { %v289_v14 = vpop.permute.xlu1 %288 }
  0xca   : > { %v278_v15 = vpop.permute.xlu0 %277 }
  0xcb   : > { %v283_v31 = vsel %vm279_vm6, %v276_v7, %v278_v15 }
  0xcc   : > { %v293_v17 = vpop.permute.xlu1 %292 }
  0xcd   : > { %v3754_v42 = vsel %vm344_vm1, %v278_v15, %v293_v17 }
  0xce   : > { %v287_v19 = vpop.permute.xlu0 %286 }
  0xcf   : > { %v295_v22 = vsel %vm294_vm7, %v285_v9, %v287_v19  ;;  %v296_v25 = vsel %vm294_vm7, %v287_v19, %v289_v14 }
  0xd0   : > { %v3726_v26 = vsel %vm344_vm1, %v281_v21, %v296_v25  ;;  %v3729_v27 = vsel %vm344_vm1, %v280_v20, %v295_v22  ;;  %v302_v28 = vpop.permute.xlu1 %301 }
  0xd1   : > { %602 = vrot.lane.b32.xlu1 %v3726_v26, %s3444_s30  ;;  %448 = vmatprep.subr.bf16.mxu0 %v3726_v26 }
  0xd2   : > { %600 = vrot.lane.b32.xlu0 %v3729_v27, %s3444_s30  ;;  %449 = vmatpush1.bf16.msra.mxu0 %v3729_v27  ;;  %v291_v29 = vpop.permute.xlu0 %290 }
  0xd3   : > { %v297_v32 = vsel %vm294_vm7, %v289_v14, %v291_v29  ;;  %v298_v34 = vsel %vm294_vm7, %v291_v29, %v293_v17  ;;  %v425_v17 = vld [vmem:[%s5322_s1] sm:$0xf] }
  0xd4   : > { %v3742_v35 = vsel %vm344_vm1, %v283_v31, %v298_v34  ;;  %v3745_v36 = vsel %vm344_vm1, %v282_v30, %v297_v32  ;;  %v306_v37 = vpop.permute.xlu1 %305 }
  0xd5   : > { %606 = vrot.lane.b32.xlu1 %v3742_v35, %s3444_s30  ;;  %489 = vmatprep.subr.bf16.mxu1 %v3742_v35 }
  0xd6   : > { %604 = vrot.lane.b32.xlu0 %v3745_v36, %s3444_s30  ;;  %490 = vmatpush1.bf16.msra.mxu1 %v3745_v36  ;;  %v300_v40 = vpop.permute.xlu0 %299 }
  0xd7   : > { %v310_v50 = vsel %vm309_vm8, %v300_v40, %v302_v28 }
  0xd8   : > { %v315_v41 = vpop.permute.xlu1 %314 }
  0xda   : > { %608 = vrot.lane.b32.xlu0 %v3754_v42, %s3444_s30  ;;  %v304_v43 = vpop.permute.xlu0 %303 }
  0xdb   : > { %v311_v51 = vsel %vm309_vm8, %v302_v28, %v304_v43  ;;  %v312_v58 = vsel %vm309_vm8, %v304_v43, %v306_v37 }
  0xdc   : > { %v319_v44 = vpop.permute.xlu1 %318 }
  0xde   : > { %v308_v45 = vpop.permute.xlu0 %307 }
  0xdf   : > { %v313_v59 = vsel %vm309_vm8, %v306_v37, %v308_v45 }
  0xe0   : > { %v323_v48 = vpop.permute.xlu1 %322 }
  0xe1   : > { %v3794_v8 = vsel %vm344_vm1, %v308_v45, %v323_v48 }
  0xe2   : > { %v317_v49 = vpop.permute.xlu0 %316 }
  0xe3   : > { %v325_v52 = vsel %vm324_vm9, %v315_v41, %v317_v49  ;;  %v326_v53 = vsel %vm324_vm9, %v317_v49, %v319_v44 }
  0xe4   : > { %v3763_v54 = vsel %vm344_vm1, %v311_v51, %v326_v53  ;;  %v3766_v55 = vsel %vm344_vm1, %v310_v50, %v325_v52  ;;  %v332_v57 = vpop.permute.xlu1 %331 }
  0xe5   : > { %612 = vrot.lane.b32.xlu0 %v3763_v54, %s3444_s30  ;;  %450 = vmatprep.subr.bf16.mxu0 %v3763_v54 }
  0xe6   : > { %610 = vrot.lane.b32.xlu1 %v3766_v55, %s3444_s30  ;;  %451 = vmatpush1.bf16.msra.mxu0 %v3766_v55  ;;  %v321_v56 = vpop.permute.xlu0 %320 }
  0xe7   : > { %v327_v62 = vsel %vm324_vm9, %v319_v44, %v321_v56  ;;  %v328_v63 = vsel %vm324_vm9, %v321_v56, %v323_v48 }
  0xe8   : > { %v3779_v0 = vsel %vm344_vm1, %v313_v59, %v328_v63  ;;  %v3782_v2 = vsel %vm344_vm1, %v312_v58, %v327_v62  ;;  %v336_v7 = vpop.permute.xlu1 %335 }
  0xe9   : > { %616 = vrot.lane.b32.xlu0 %v3779_v0, %s3444_s30  ;;  %491 = vmatprep.subr.bf16.mxu1 %v3779_v0 }
  0xea   : > { %614 = vrot.lane.b32.xlu1 %v3782_v2, %s3444_s30  ;;  %492 = vmatpush1.bf16.msra.mxu1 %v3782_v2  ;;  %v330_v3 = vpop.permute.xlu0 %329 }
  0xeb   : > { %v3791_v4 = vsel %vm339_vm10, %v330_v3, %v332_v57 }
  0xec   : > { %v431_v15 = vsel %vm344_vm1, %v3791_v4, 0 }
  0xed   : > { %620 = vrot.lane.b32.xlu0 %v3791_v4, %s3444_s30 }
  0xee   : > { %618 = vrot.lane.b32.xlu1 %v3794_v8, %s3444_s30  ;;  %v334_v9 = vpop.permute.xlu0 %333 }
  0xef   : > { %v3801_v11 = vsel %vm339_vm10, %v332_v57, %v334_v9  ;;  %v3804_v14 = vsel %vm339_vm10, %v334_v9, %v336_v7 }
  0xf0   : > { %3230 = vmatprep.subr.msk.bf16.mxu0 %vm344_vm1, %v3801_v11  ;;  %v437_v21 = vsel %vm344_vm1, %v3804_v14, 0 }
  0xf1   : > { %624 = vrot.lane.b32.xlu0 %v3804_v14, %s3444_s30  ;;  %453 = vmatpush1.bf16.msra.mxu0 %v431_v15 }
  0xf2   : > { %622 = vrot.lane.b32.xlu1 %v3801_v11, %s3444_s30  ;;  %v3817_v19 = vpop.permute.xlu0 %337 }
  0xf3   : > { %v3821_v20 = vsel %vm339_vm10, %v336_v7, %v3817_v19 }
  0xf4   : > { %3232 = vmatprep.subr.msk.bf16.mxu1 %vm344_vm1, %v3821_v20  ;;  %3231 = vmatmul.mubr.msk.bf16.vlgmr.msra.gmra.mrb[0].mxu0 %vm426_vm11, %v425_v17 }
  0xf5   : > { %494 = vmatpush1.bf16.msra.mxu1 %v437_v21  ;;  %628 = vrot.lane.b32.xlu0 %v3817_v19, %s3444_s30 }
  0xf6   : > { %626 = vrot.lane.b32.xlu1 %v3821_v20, %s3444_s30  ;;  %722 = vmatprep.mubr.bf16.mxu0 %v5325_v1  ;;  %s3448_s30 = smov 100  }
  0xf8   : > { %3233 = vmatmul.mubr.msk.bf16.vlgmr.msra.gmra.mrb[0].mxu1 %vm426_vm11, %v425_v17 }
  0xf9   : > { %780 = vrot.lane.b32.xlu0 %v3612_v13, %s3445_s6  ;;  %763 = vmatprep.mubr.bf16.mxu1 %v5325_v1 }
  0xfa   : > { %778 = vrot.lane.b32.xlu1 %v3624_v18, %s3445_s6 }
  0xfd   : > { %784 = vrot.lane.b32.xlu0 %v3633_v23, %s3445_s6 }
  0xfe   : > { %782 = vrot.lane.b32.xlu1 %v3637_v24, %s3445_s6 }
 0x101   : > { %788 = vrot.lane.b32.xlu0 %v3656_v39, %s3445_s6 }
 0x102   : > { %786 = vrot.lane.b32.xlu1 %v3617_v16, %s3445_s6 }
 0x104   : > { %v579_v22 = vpop.permute.xlu1 %578 }
 0x105   : > { %792 = vrot.lane.b32.xlu0 %v3672_v47, %s3445_s6 }
 0x106   : > { %790 = vrot.lane.b32.xlu1 %v3653_v38, %s3445_s6 }
 0x108   : > { %v571_v25 = vpop.permute.xlu1 %570 }
 0x109   : > { %796 = vrot.lane.b32.xlu0 %v3644_v33, %s3445_s6 }
 0x10a   : > { %794 = vrot.lane.b32.xlu1 %v3669_v46, %s3445_s6 }
 0x10c   : > { %v575_v28 = vpop.permute.xlu1 %574 }
 0x10d   : > { %800 = vrot.lane.b32.xlu0 %v3689_v60, %s3445_s6 }
 0x10e   : > { %798 = vrot.lane.b32.xlu1 %v3692_v61, %s3445_s6 }
 0x111   : > { %804 = vrot.lane.b32.xlu0 %v3705_v5, %s3445_s6 }
 0x112   : > { %802 = vrot.lane.b32.xlu1 %v3708_v6, %s3445_s6 }
 0x115   : > { %808 = vrot.lane.b32.xlu0 %v3729_v27, %s3445_s6 }
 0x116   : > { %806 = vrot.lane.b32.xlu1 %v3717_v10, %s3445_s6 }
 0x118   : > { %v589_v29 = vpop.permute.xlu0 %588 }
 0x119   : > { %812 = vrot.lane.b32.xlu0 %v3745_v36, %s3445_s6 }
 0x11a   : > { %810 = vrot.lane.b32.xlu1 %v3726_v26, %s3445_s6 }
 0x11b   : > { %v583_v30 = vpop.permute.xlu1 %582 }
 0x11c   : > { %v573_v31 = vpop.permute.xlu0 %572 }
 0x11d   : > { %816 = vrot.lane.b32.xlu0 %v3754_v42, %s3445_s6  ;;  %v632_v32 = vsel %vm630_vm12, %v573_v31, %v575_v28  ;;  %v631_v34 = vsel %vm630_vm12, %v571_v25, %v573_v31 }
 0x11e   : > { %814 = vrot.lane.b32.xlu1 %v3742_v35, %s3445_s6  ;;  %690 = vmatprep.subr.bf16.mxu0 %v632_v32 }
 0x11f   : > { %691 = vmatpush1.bf16.msra.mxu0 %v631_v34  ;;  %v587_v37 = vpop.permute.xlu1 %586 }
 0x120   : > { %v577_v40 = vpop.permute.xlu0 %576  ;;  %v638_v44 = vsel %vm630_vm12, %v587_v37, %v589_v29 }
 0x121   : > { %820 = vrot.lane.b32.xlu0 %v3763_v54, %s3445_s6  ;;  %v634_v41 = vsel %vm630_vm12, %v577_v40, %v579_v22  ;;  %v633_v43 = vsel %vm630_vm12, %v575_v28, %v577_v40 }
 0x122   : > { %818 = vrot.lane.b32.xlu1 %v3766_v55, %s3445_s6  ;;  %731 = vmatprep.subr.bf16.mxu1 %v634_v41 }
 0x123   : > { %732 = vmatpush1.bf16.msra.mxu1 %v633_v43 }
 0x124   : > { %733 = vmatprep.subr.bf16.mxu1 %v638_v44  ;;  %v581_v45 = vpop.permute.xlu0 %580 }
 0x125   : > { %824 = vrot.lane.b32.xlu0 %v3779_v0, %s3445_s6  ;;  %v635_v51 = vsel %vm630_vm12, %v581_v45, %v583_v30 }
 0x126   : > { %822 = vrot.lane.b32.xlu1 %v3782_v2, %s3445_s6 }
 0x128   : > { %v585_v48 = vpop.permute.xlu0 %584 }
 0x129   : > { %828 = vrot.lane.b32.xlu0 %v3791_v4, %s3445_s6  ;;  %v636_v49 = vsel %vm630_vm12, %v583_v30, %v585_v48  ;;  %v637_v50 = vsel %vm630_vm12, %v585_v48, %v587_v37 }
 0x12a   : > { %826 = vrot.lane.b32.xlu1 %v3794_v8, %s3445_s6  ;;  %692 = vmatprep.subr.bf16.mxu0 %v636_v49 }
 0x12b   : > { %734 = vmatpush1.bf16.msra.mxu1 %v637_v50  ;;  %693 = vmatpush1.bf16.msra.mxu0 %v635_v51 }
 0x12d   : > { %832 = vrot.lane.b32.xlu0 %v3804_v14, %s3445_s6 }
 0x12e   : > { %830 = vrot.lane.b32.xlu1 %v3801_v11, %s3445_s6 }
 0x12f   : > { %v593_v53 = vpop.permute.xlu0 %592 }
 0x130   : > { %v591_v52 = vpop.permute.xlu1 %590 }
 0x131   : > { %836 = vrot.lane.b32.xlu0 %v3817_v19, %s3445_s6  ;;  %v639_v58 = vsel %vm630_vm12, %v591_v52, %v593_v53 }
 0x132   : > { %834 = vrot.lane.b32.xlu1 %v3821_v20, %s3445_s6 }
 0x133   : > { %v597_v59 = vpop.permute.xlu0 %596 }
 0x134   : > { %v595_v56 = vpop.permute.xlu1 %594 }
 0x135   : > { %988 = vrot.lane.b32.xlu0 %v3612_v13, %s3446_s7  ;;  %v640_v57 = vsel %vm630_vm12, %v593_v53, %v595_v56  ;;  %v641_v3 = vsel %vm630_vm12, %v595_v56, %v597_v59 }
 0x136   : > { %986 = vrot.lane.b32.xlu1 %v3624_v18, %s3446_s7  ;;  %694 = vmatprep.subr.bf16.mxu0 %v640_v57  ;;  %v3234_v57 = vld [vmem:[%s5322_s1 + $0x4] sm:$0xf] }
 0x137   : > { %695 = vmatpush1.bf16.msra.mxu0 %v639_v58 }
 0x138   : > { %v599_v62 = vpop.permute.xlu1 %598 }
 0x139   : > { %992 = vrot.lane.b32.xlu0 %v3633_v23, %s3446_s7  ;;  %v642_v63 = vsel %vm630_vm12, %v597_v59, %v599_v62 }
 0x13a   : > { %990 = vrot.lane.b32.xlu1 %v3637_v24, %s3446_s7  ;;  %735 = vmatprep.subr.bf16.mxu1 %v642_v63 }
 0x13b   : > { %736 = vmatpush1.bf16.msra.mxu1 %v641_v3 }
 0x13d   : > { %996 = vrot.lane.b32.xlu0 %v3656_v39, %s3446_s7 }
 0x13e   : > { %994 = vrot.lane.b32.xlu1 %v3617_v16, %s3446_s7 }
 0x141   : > { %1000 = vrot.lane.b32.xlu0 %v3672_v47, %s3446_s7 }
 0x142   : > { %998 = vrot.lane.b32.xlu1 %v3653_v38, %s3446_s7 }
 0x143   : > { %v603_v9 = vpop.permute.xlu1 %602 }
 0x144   : > { %v601_v7 = vpop.permute.xlu0 %600 }
 0x145   : > { %1004 = vrot.lane.b32.xlu0 %v3644_v33, %s3446_s7  ;;  %v643_v21 = vsel %vm630_vm12, %v601_v7, %v603_v9 }
 0x146   : > { %1002 = vrot.lane.b32.xlu1 %v3669_v46, %s3446_s7 }
 0x147   : > { %v607_v22 = vpop.permute.xlu1 %606 }
 0x148   : > { %v605_v15 = vpop.permute.xlu0 %604 }
 0x149   : > { %1008 = vrot.lane.b32.xlu0 %v3689_v60, %s3446_s7  ;;  %v644_v17 = vsel %vm630_vm12, %v603_v9, %v605_v15  ;;  %v645_v29 = vsel %vm630_vm12, %v605_v15, %v607_v22 }
 0x14a   : > { %1006 = vrot.lane.b32.xlu1 %v3692_v61, %s3446_s7  ;;  %696 = vmatprep.subr.bf16.mxu0 %v644_v17 }
 0x14b   : > { %697 = vmatpush1.bf16.msra.mxu0 %v643_v21 }
 0x14c   : > { %v609_v25 = vpop.permute.xlu0 %608 }
 0x14d   : > { %1012 = vrot.lane.b32.xlu0 %v3705_v5, %s3446_s7  ;;  %v646_v28 = vsel %vm630_vm12, %v607_v22, %v609_v25 }
 0x14e   : > { %1010 = vrot.lane.b32.xlu1 %v3708_v6, %s3446_s7  ;;  %737 = vmatprep.subr.bf16.mxu1 %v646_v28 }
 0x14f   : > { %738 = vmatpush1.bf16.msra.mxu1 %v645_v29 }
 0x151   : > { %1016 = vrot.lane.b32.xlu0 %v3729_v27, %s3446_s7 }
 0x152   : > { %1014 = vrot.lane.b32.xlu1 %v3717_v10, %s3446_s7 }
 0x155   : > { %1020 = vrot.lane.b32.xlu0 %v3745_v36, %s3446_s7 }
 0x156   : > { %1018 = vrot.lane.b32.xlu1 %v3726_v26, %s3446_s7 }
 0x157   : > { %v613_v30 = vpop.permute.xlu0 %612 }
 0x158   : > { %v611_v31 = vpop.permute.xlu1 %610 }
 0x159   : > { %1024 = vrot.lane.b32.xlu0 %v3754_v42, %s3446_s7  ;;  %v647_v40 = vsel %vm630_vm12, %v611_v31, %v613_v30 }
 0x15a   : > { %1022 = vrot.lane.b32.xlu1 %v3742_v35, %s3446_s7 }
 0x15b   : > { %v617_v32 = vpop.permute.xlu0 %616 }
 0x15c   : > { %v615_v34 = vpop.permute.xlu1 %614 }
 0x15d   : > { %1028 = vrot.lane.b32.xlu0 %v3763_v54, %s3446_s7  ;;  %v648_v37 = vsel %vm630_vm12, %v613_v30, %v615_v34  ;;  %v649_v45 = vsel %vm630_vm12, %v615_v34, %v617_v32 }
 0x15e   : > { %1026 = vrot.lane.b32.xlu1 %v3766_v55, %s3446_s7  ;;  %698 = vmatprep.subr.bf16.mxu0 %v648_v37 }
 0x15f   : > { %699 = vmatpush1.bf16.msra.mxu0 %v647_v40  ;;  %v621_v41 = vpop.permute.xlu0 %620 }
 0x160   : > { %v619_v43 = vpop.permute.xlu1 %618 }
 0x161   : > { %1032 = vrot.lane.b32.xlu0 %v3779_v0, %s3446_s7  ;;  %v650_v44 = vsel %vm630_vm12, %v617_v32, %v619_v43 }
 0x162   : > { %1030 = vrot.lane.b32.xlu1 %v3782_v2, %s3446_s7  ;;  %739 = vmatprep.subr.bf16.mxu1 %v650_v44 }
 0x163   : > { %740 = vmatpush1.bf16.msra.mxu1 %v649_v45  ;;  %v625_v48 = vpop.permute.xlu0 %624 }
 0x164   : > { %v623_v49 = vpop.permute.xlu1 %622 }
 0x165   : > { %v651_v50 = vsel %vm630_vm12, %v621_v41, %v623_v49  ;;  %1036 = vrot.lane.b32.xlu0 %v3791_v4, %s3446_s7  ;;  %v652_v51 = vsel %vm630_vm12, %v623_v49, %v625_v48 }
 0x166   : > { %1034 = vrot.lane.b32.xlu1 %v3794_v8, %s3446_s7  ;;  %3235 = vmatprep.subr.msk.bf16.mxu0 %vm344_vm1, %v652_v51  ;;  %v679_v52 = vsel %vm344_vm1, %v651_v50, 0 }
 0x167   : > { %701 = vmatpush1.bf16.msra.mxu0 %v679_v52  ;;  %v629_v53 = vpop.permute.xlu0 %628 }
 0x168   : > { %v627_v56 = vpop.permute.xlu1 %626 }
 0x169   : > { %v653_v58 = vsel %vm630_vm12, %v625_v48, %v627_v56  ;;  %v654_v59 = vsel %vm630_vm12, %v627_v56, %v629_v53  ;;  %1040 = vrot.lane.b32.xlu0 %v3804_v14, %s3446_s7  ;;  %vm1925_vm12 = vcmask 818176  }
 0x16a   : > { %1038 = vrot.lane.b32.xlu1 %v3801_v11, %s3446_s7  ;;  %3237 = vmatprep.subr.msk.bf16.mxu1 %vm344_vm1, %v654_v59  ;;  %v685_v62 = vsel %vm344_vm1, %v653_v58, 0  ;;  %v3239_v58 = vld [vmem:[%s5322_s1 + $0x8] sm:$0xf] }
 0x16b   : > { %742 = vmatpush1.bf16.msra.mxu1 %v685_v62  ;;  %v781_v63 = vpop.permute.xlu0 %780  ;;  %3236 = vmatmul.mubr.msk.bf16.vlgmr.msra.gmra.mrb[0].mxu0 %vm426_vm11, %v3234_v57  ;;  %v1400_v62 = vld [vmem:[%s3492_s19 + $0x4] sm:$0xff] }
 0x16c   : > { %v779_v3 = vpop.permute.xlu1 %778  ;;  %930 = vmatprep.mubr.bf16.mxu0 %v5325_v1 }
 0x16d   : > { %1044 = vrot.lane.b32.xlu0 %v3817_v19, %s3446_s7  ;;  %v839_v17 = vsel %vm838_vm13, %v779_v3, %v781_v63 }
 0x16e   : > { %1042 = vrot.lane.b32.xlu1 %v3821_v20, %s3446_s7  ;;  %3238 = vmatmul.mubr.msk.bf16.vlgmr.msra.gmra.mrb[0].mxu1 %vm426_vm11, %v3234_v57 }
 0x16f   : > { %v785_v7 = vpop.permute.xlu0 %784  ;;  %971 = vmatprep.mubr.bf16.mxu1 %v5325_v1 }
 0x170   : > { %v783_v9 = vpop.permute.xlu1 %782 }
 0x171   : > { %1196 = vrot.lane.b32.xlu0 %v3612_v13, %s3447_s10  ;;  %v840_v15 = vsel %vm838_vm13, %v781_v63, %v783_v9  ;;  %v841_v13 = vsel %vm838_vm13, %v783_v9, %v785_v7 }
 0x172   : > { %1194 = vrot.lane.b32.xlu1 %v3624_v18, %s3447_s10  ;;  %898 = vmatprep.subr.bf16.mxu0 %v840_v15 }
 0x173   : > { %899 = vmatpush1.bf16.msra.mxu0 %v839_v17  ;;  %v789_v21 = vpop.permute.xlu0 %788 }
 0x174   : > { %v787_v22 = vpop.permute.xlu1 %786 }
 0x175   : > { %1200 = vrot.lane.b32.xlu0 %v3633_v23, %s3447_s10  ;;  %v842_v25 = vsel %vm838_vm13, %v785_v7, %v787_v22  ;;  %v4082_v7 = vcombine.high %v1400_v62, %v1400_v62 }
 0x176   : > { %1198 = vrot.lane.b32.xlu1 %v3637_v24, %s3447_s10  ;;  %939 = vmatprep.subr.bf16.mxu1 %v842_v25 }
 0x177   : > { %940 = vmatpush1.bf16.msra.mxu1 %v841_v13  ;;  %v793_v28 = vpop.permute.xlu0 %792 }
 0x178   : > { %v791_v18 = vpop.permute.xlu1 %790 }
 0x179   : > { %1204 = vrot.lane.b32.xlu0 %v3656_v39, %s3447_s10  ;;  %v844_v29 = vsel %vm838_vm13, %v791_v18, %v793_v28  ;;  %v843_v30 = vsel %vm838_vm13, %v789_v21, %v791_v18  ;;  %v4108_v18 = vld [vmem:[%s3492_s19 + $0x14] ss:$0 sps:$4 sm:$0xff]  }
 0x17a   : > { %1202 = vrot.lane.b32.xlu1 %v3617_v16, %s3447_s10  ;;  %900 = vmatprep.subr.bf16.mxu0 %v844_v29 }
 0x17b   : > { %901 = vmatpush1.bf16.msra.mxu0 %v843_v30  ;;  %v797_v23 = vpop.permute.xlu0 %796 }
 0x17c   : > { %v795_v24 = vpop.permute.xlu1 %794 }
 0x17d   : > { %1208 = vrot.lane.b32.xlu0 %v3672_v47, %s3447_s10  ;;  %v846_v31 = vsel %vm838_vm13, %v795_v24, %v797_v23  ;;  %v845_v32 = vsel %vm838_vm13, %v793_v28, %v795_v24 }
 0x17e   : > { %1206 = vrot.lane.b32.xlu1 %v3653_v38, %s3447_s10  ;;  %941 = vmatprep.subr.bf16.mxu1 %v846_v31 }
 0x17f   : > { %942 = vmatpush1.bf16.msra.mxu1 %v845_v32  ;;  %v801_v39 = vpop.permute.xlu0 %800 }
 0x180   : > { %v799_v34 = vpop.permute.xlu1 %798 }
 0x181   : > { %1212 = vrot.lane.b32.xlu0 %v3644_v33, %s3447_s10  ;;  %v847_v38 = vsel %vm838_vm13, %v799_v34, %v801_v39 }
 0x182   : > { %1210 = vrot.lane.b32.xlu1 %v3669_v46, %s3447_s10 }
 0x183   : > { %v805_v16 = vpop.permute.xlu0 %804 }
 0x184   : > { %v803_v37 = vpop.permute.xlu1 %802 }
 0x185   : > { %1216 = vrot.lane.b32.xlu0 %v3689_v60, %s3447_s10  ;;  %v848_v47 = vsel %vm838_vm13, %v801_v39, %v803_v37  ;;  %v849_v46 = vsel %vm838_vm13, %v803_v37, %v805_v16 }
 0x186   : > { %1214 = vrot.lane.b32.xlu1 %v3692_v61, %s3447_s10  ;;  %902 = vmatprep.subr.bf16.mxu0 %v848_v47 }
 0x187   : > { %903 = vmatpush1.bf16.msra.mxu0 %v847_v38  ;;  %v809_v40 = vpop.permute.xlu0 %808 }
 0x188   : > { %v807_v41 = vpop.permute.xlu1 %806 }
 0x189   : > { %1220 = vrot.lane.b32.xlu0 %v3705_v5, %s3447_s10  ;;  %v850_v33 = vsel %vm838_vm13, %v805_v16, %v807_v41 }
 0x18a   : > { %1218 = vrot.lane.b32.xlu1 %v3708_v6, %s3447_s10  ;;  %943 = vmatprep.subr.bf16.mxu1 %v850_v33 }
 0x18b   : > { %944 = vmatpush1.bf16.msra.mxu1 %v849_v46  ;;  %v813_v60 = vpop.permute.xlu0 %812 }
 0x18c   : > { %v811_v61 = vpop.permute.xlu1 %810 }
 0x18d   : > { %1224 = vrot.lane.b32.xlu0 %v3729_v27, %s3447_s10  ;;  %v852_v43 = vsel %vm838_vm13, %v811_v61, %v813_v60  ;;  %v851_v44 = vsel %vm838_vm13, %v809_v40, %v811_v61 }
 0x18e   : > { %1222 = vrot.lane.b32.xlu1 %v3717_v10, %s3447_s10  ;;  %904 = vmatprep.subr.bf16.mxu0 %v852_v43 }
 0x18f   : > { %905 = vmatpush1.bf16.msra.mxu0 %v851_v44  ;;  %v817_v5 = vpop.permute.xlu0 %816 }
 0x190   : > { %v815_v6 = vpop.permute.xlu1 %814 }
 0x191   : > { %1228 = vrot.lane.b32.xlu0 %v3745_v36, %s3447_s10  ;;  %v854_v45 = vsel %vm838_vm13, %v815_v6, %v817_v5  ;;  %v853_v48 = vsel %vm838_vm13, %v813_v60, %v815_v6 }
 0x192   : > { %1226 = vrot.lane.b32.xlu1 %v3726_v26, %s3447_s10  ;;  %945 = vmatprep.subr.bf16.mxu1 %v854_v45 }
 0x193   : > { %946 = vmatpush1.bf16.msra.mxu1 %v853_v48  ;;  %v821_v27 = vpop.permute.xlu0 %820 }
 0x194   : > { %v819_v49 = vpop.permute.xlu1 %818 }
 0x195   : > { %1232 = vrot.lane.b32.xlu0 %v3754_v42, %s3447_s10  ;;  %v855_v26 = vsel %vm838_vm13, %v819_v49, %v821_v27 }
 0x196   : > { %1230 = vrot.lane.b32.xlu1 %v3742_v35, %s3447_s10 }
 0x197   : > { %v825_v10 = vpop.permute.xlu0 %824 }
 0x198   : > { %v823_v50 = vpop.permute.xlu1 %822 }
 0x199   : > { %1236 = vrot.lane.b32.xlu0 %v3763_v54, %s3447_s10  ;;  %v856_v36 = vsel %vm838_vm13, %v821_v27, %v823_v50  ;;  %v857_v42 = vsel %vm838_vm13, %v823_v50, %v825_v10 }
 0x19a   : > { %1234 = vrot.lane.b32.xlu1 %v3766_v55, %s3447_s10  ;;  %906 = vmatprep.subr.bf16.mxu0 %v856_v36 }
 0x19b   : > { %907 = vmatpush1.bf16.msra.mxu0 %v855_v26  ;;  %v829_v51 = vpop.permute.xlu0 %828 }
 0x19c   : > { %v827_v52 = vpop.permute.xlu1 %826 }
 0x19d   : > { %1240 = vrot.lane.b32.xlu0 %v3779_v0, %s3447_s10  ;;  %v858_v35 = vsel %vm838_vm13, %v825_v10, %v827_v52 }
 0x19e   : > { %1238 = vrot.lane.b32.xlu1 %v3782_v2, %s3447_s10  ;;  %947 = vmatprep.subr.bf16.mxu1 %v858_v35 }
 0x19f   : > { %948 = vmatpush1.bf16.msra.mxu1 %v857_v42  ;;  %v833_v54 = vpop.permute.xlu0 %832 }
 0x1a0   : > { %v831_v55 = vpop.permute.xlu1 %830 }
 0x1a1   : > { %v859_v53 = vsel %vm838_vm13, %v829_v51, %v831_v55  ;;  %1244 = vrot.lane.b32.xlu0 %v3791_v4, %s3447_s10  ;;  %v860_v56 = vsel %vm838_vm13, %v831_v55, %v833_v54 }
 0x1a2   : > { %1242 = vrot.lane.b32.xlu1 %v3794_v8, %s3447_s10  ;;  %3240 = vmatprep.subr.msk.bf16.mxu0 %vm344_vm1, %v860_v56  ;;  %v887_v0 = vsel %vm344_vm1, %v859_v53, 0 }
 0x1a3   : > { %909 = vmatpush1.bf16.msra.mxu0 %v887_v0  ;;  %v837_v2 = vpop.permute.xlu0 %836 }
 0x1a4   : > { %v835_v57 = vpop.permute.xlu1 %834 }
 0x1a5   : > { %v861_v59 = vsel %vm838_vm13, %v833_v54, %v835_v57  ;;  %v862_v4 = vsel %vm838_vm13, %v835_v57, %v837_v2  ;;  %1248 = vrot.lane.b32.xlu0 %v3804_v14, %s3447_s10  ;;  %v1401_v14 = vld [vmem:[%s3492_s19 + $0xc] sm:$0xff]  ;;  %vm2133_vm13 = vcmask 605184  }
 0x1a6   : > { %1246 = vrot.lane.b32.xlu1 %v3801_v11, %s3447_s10  ;;  %3242 = vmatprep.subr.msk.bf16.mxu1 %vm344_vm1, %v862_v4  ;;  %v893_v8 = vsel %vm344_vm1, %v861_v59, 0  ;;  %v4086_v11 = vcombine.low %v1400_v62, %v1400_v62  ;;  %v4094_v17 = vcombine.high %v1401_v14, %v1401_v14  ;;  %v4099_v21 = vcombine.low %v1401_v14, %v1401_v14  ;;  %v3244_v4 = vld [vmem:[%s5322_s1 + $0xc] sm:$0xf] }
 0x1a7   : > { %950 = vmatpush1.bf16.msra.mxu1 %v893_v8  ;;  %v989_v63 = vpop.permute.xlu0 %988  ;;  %3241 = vmatmul.mubr.msk.bf16.vlgmr.msra.gmra.mrb[0].mxu0 %vm426_vm11, %v3239_v58 }
 0x1a8   : > { %v987_v3 = vpop.permute.xlu1 %986  ;;  %1138 = vmatprep.mubr.bf16.mxu0 %v5325_v1 }
 0x1a9   : > { %1252 = vrot.lane.b32.xlu0 %v3817_v19, %s3447_s10 }
 0x1aa   : > { %1250 = vrot.lane.b32.xlu1 %v3821_v20, %s3447_s10  ;;  %3243 = vmatmul.mubr.msk.bf16.vlgmr.msra.gmra.mrb[0].mxu1 %vm426_vm11, %v3239_v58  ;;  %v1047_v20 = vsel %vm1046_vm14, %v987_v3, %v989_v63 }
 0x1ab   : > { %v993_v9 = vpop.permute.xlu0 %992  ;;  %1179 = vmatprep.mubr.bf16.mxu1 %v5325_v1 }
 0x1ac   : > { %v991_v15 = vpop.permute.xlu1 %990 }
 0x1ad   : > { %1418 = vrot.lane.b32.xlu0 %v4082_v7, %s3434_s20  ;;  %v1048_v19 = vsel %vm1046_vm14, %v989_v63, %v991_v15  ;;  %v1049_v28 = vsel %vm1046_vm14, %v991_v15, %v993_v9 }
 0x1ae   : > { %1416 = vrot.lane.b32.xlu1 %v4086_v11, %s3434_s20  ;;  %1106 = vmatprep.subr.bf16.mxu0 %v1048_v19 }
 0x1af   : > { %1107 = vmatpush1.bf16.msra.mxu0 %v1047_v20  ;;  %v997_v22 = vpop.permute.xlu0 %996 }
 0x1b0   : > { %v995_v25 = vpop.permute.xlu1 %994 }
 0x1b1   : > { %1422 = vrot.lane.b32.xlu0 %v4094_v17, %s3434_s20  ;;  %v1050_v13 = vsel %vm1046_vm14, %v993_v9, %v995_v25 }
 0x1b2   : > { %1420 = vrot.lane.b32.xlu1 %v4099_v21, %s3434_s20  ;;  %1147 = vmatprep.subr.bf16.mxu1 %v1050_v13 }
 0x1b3   : > { %1148 = vmatpush1.bf16.msra.mxu1 %v1049_v28  ;;  %v1001_v29 = vpop.permute.xlu0 %1000 }
 0x1b4   : > { %v999_v30 = vpop.permute.xlu1 %998 }
 0x1b5   : > { %1430 = vrot.lane.b32.xlu0 %v4086_v11, %s3435_s21  ;;  %v1052_v23 = vsel %vm1046_vm14, %v999_v30, %v1001_v29  ;;  %v1051_v24 = vsel %vm1046_vm14, %v997_v22, %v999_v30 }
 0x1b6   : > { %1424 = vrot.lane.b32.xlu1 %v4108_v18, %s3434_s20  ;;  %1108 = vmatprep.subr.bf16.mxu0 %v1052_v23 }
 0x1b7   : > { %1109 = vmatpush1.bf16.msra.mxu0 %v1051_v24  ;;  %v1005_v31 = vpop.permute.xlu0 %1004 }
 0x1b8   : > { %v1003_v32 = vpop.permute.xlu1 %1002 }
 0x1b9   : > { %1434 = vrot.lane.b32.xlu0 %v4099_v21, %s3435_s21  ;;  %v1054_v39 = vsel %vm1046_vm14, %v1003_v32, %v1005_v31  ;;  %v1053_v34 = vsel %vm1046_vm14, %v1001_v29, %v1003_v32 }
 0x1ba   : > { %1432 = vrot.lane.b32.xlu1 %v4082_v7, %s3435_s21  ;;  %1149 = vmatprep.subr.bf16.mxu1 %v1054_v39 }
 0x1bb   : > { %1150 = vmatpush1.bf16.msra.mxu1 %v1053_v34  ;;  %v1009_v16 = vpop.permute.xlu0 %1008 }
 0x1bc   : > { %v1007_v37 = vpop.permute.xlu1 %1006 }
 0x1bd   : > { %1438 = vrot.lane.b32.xlu0 %v4108_v18, %s3435_s21  ;;  %v1055_v41 = vsel %vm1046_vm14, %v1007_v37, %v1009_v16 }
 0x1be   : > { %1436 = vrot.lane.b32.xlu1 %v4094_v17, %s3435_s21 }
 0x1bf   : > { %v1013_v47 = vpop.permute.xlu0 %1012 }
 0x1c0   : > { %v1011_v38 = vpop.permute.xlu1 %1010 }
 0x1c1   : > { %1446 = vrot.lane.b32.xlu0 %v4082_v7, %s3436_s22  ;;  %v1056_v40 = vsel %vm1046_vm14, %v1009_v16, %v1011_v38  ;;  %v1057_v61 = vsel %vm1046_vm14, %v1011_v38, %v1013_v47 }
 0x1c2   : > { %1444 = vrot.lane.b32.xlu1 %v4086_v11, %s3436_s22  ;;  %1110 = vmatprep.subr.bf16.mxu0 %v1056_v40 }
 0x1c3   : > { %1111 = vmatpush1.bf16.msra.mxu0 %v1055_v41  ;;  %v1017_v33 = vpop.permute.xlu0 %1016 }
 0x1c4   : > { %v1015_v46 = vpop.permute.xlu1 %1014 }
 0x1c5   : > { %1450 = vrot.lane.b32.xlu0 %v4094_v17, %s3436_s22  ;;  %v1058_v60 = vsel %vm1046_vm14, %v1013_v47, %v1015_v46 }
 0x1c6   : > { %1448 = vrot.lane.b32.xlu1 %v4099_v21, %s3436_s22  ;;  %1151 = vmatprep.subr.bf16.mxu1 %v1058_v60 }
 0x1c7   : > { %1152 = vmatpush1.bf16.msra.mxu1 %v1057_v61  ;;  %v1021_v43 = vpop.permute.xlu0 %1020 }
 0x1c8   : > { %v1019_v44 = vpop.permute.xlu1 %1018 }
 0x1c9   : > { %1458 = vrot.lane.b32.xlu0 %v4086_v11, %s3437_s23  ;;  %v1060_v5 = vsel %vm1046_vm14, %v1019_v44, %v1021_v43  ;;  %v1059_v6 = vsel %vm1046_vm14, %v1017_v33, %v1019_v44 }
 0x1ca   : > { %1452 = vrot.lane.b32.xlu1 %v4108_v18, %s3436_s22  ;;  %1112 = vmatprep.subr.bf16.mxu0 %v1060_v5 }
 0x1cb   : > { %1113 = vmatpush1.bf16.msra.mxu0 %v1059_v6  ;;  %v1025_v45 = vpop.permute.xlu0 %1024 }
 0x1cc   : > { %v1023_v48 = vpop.permute.xlu1 %1022 }
 0x1cd   : > { %1462 = vrot.lane.b32.xlu0 %v4099_v21, %s3437_s23  ;;  %v1062_v27 = vsel %vm1046_vm14, %v1023_v48, %v1025_v45  ;;  %v1061_v49 = vsel %vm1046_vm14, %v1021_v43, %v1023_v48 }
 0x1ce   : > { %1460 = vrot.lane.b32.xlu1 %v4082_v7, %s3437_s23  ;;  %1153 = vmatprep.subr.bf16.mxu1 %v1062_v27 }
 0x1cf   : > { %1154 = vmatpush1.bf16.msra.mxu1 %v1061_v49  ;;  %v1029_v10 = vpop.permute.xlu0 %1028 }
 0x1d0   : > { %v1027_v50 = vpop.permute.xlu1 %1026 }
 0x1d1   : > { %1466 = vrot.lane.b32.xlu0 %v4108_v18, %s3437_s23  ;;  %v1063_v52 = vsel %vm1046_vm14, %v1027_v50, %v1029_v10 }
 0x1d2   : > { %1464 = vrot.lane.b32.xlu1 %v4094_v17, %s3437_s23 }
 0x1d3   : > { %v1033_v36 = vpop.permute.xlu0 %1032 }
 0x1d4   : > { %v1031_v26 = vpop.permute.xlu1 %1030 }
 0x1d5   : > { %1474 = vrot.lane.b32.xlu0 %v4082_v7, %s3438_s24  ;;  %v1064_v51 = vsel %vm1046_vm14, %v1029_v10, %v1031_v26  ;;  %v1065_v55 = vsel %vm1046_vm14, %v1031_v26, %v1033_v36 }
 0x1d6   : > { %1472 = vrot.lane.b32.xlu1 %v4086_v11, %s3438_s24  ;;  %1114 = vmatprep.subr.bf16.mxu0 %v1064_v51 }
 0x1d7   : > { %1115 = vmatpush1.bf16.msra.mxu0 %v1063_v52  ;;  %v1037_v35 = vpop.permute.xlu0 %1036 }
 0x1d8   : > { %v1035_v42 = vpop.permute.xlu1 %1034 }
 0x1d9   : > { %1478 = vrot.lane.b32.xlu0 %v4094_v17, %s3438_s24  ;;  %v1066_v54 = vsel %vm1046_vm14, %v1033_v36, %v1035_v42 }
 0x1da   : > { %1476 = vrot.lane.b32.xlu1 %v4099_v21, %s3438_s24  ;;  %1155 = vmatprep.subr.bf16.mxu1 %v1066_v54 }
 0x1db   : > { %1156 = vmatpush1.bf16.msra.mxu1 %v1065_v55  ;;  %v1041_v53 = vpop.permute.xlu0 %1040 }
 0x1dc   : > { %v1039_v56 = vpop.permute.xlu1 %1038 }
 0x1dd   : > { %v1067_v0 = vsel %vm1046_vm14, %v1037_v35, %v1039_v56  ;;  %1486 = vrot.lane.b32.xlu0 %v4086_v11, %s3439_s25  ;;  %v1068_v2 = vsel %vm1046_vm14, %v1039_v56, %v1041_v53 }
 0x1de   : > { %1480 = vrot.lane.b32.xlu1 %v4108_v18, %s3438_s24  ;;  %3245 = vmatprep.subr.msk.bf16.mxu0 %vm344_vm1, %v1068_v2  ;;  %v1095_v57 = vsel %vm344_vm1, %v1067_v0, 0 }
 0x1df   : > { %1117 = vmatpush1.bf16.msra.mxu0 %v1095_v57  ;;  %v1045_v58 = vpop.permute.xlu0 %1044 }
 0x1e0   : > { %v1043_v59 = vpop.permute.xlu1 %1042 }
 0x1e1   : > { %v1069_v8 = vsel %vm1046_vm14, %v1041_v53, %v1043_v59  ;;  %v1070_v62 = vsel %vm1046_vm14, %v1043_v59, %v1045_v58  ;;  %1490 = vrot.lane.b32.xlu0 %v4099_v21, %s3439_s25  ;;  %vm2341_vm14 = vcmask 392192  }
 0x1e2   : > { %1488 = vrot.lane.b32.xlu1 %v4082_v7, %s3439_s25  ;;  %3247 = vmatprep.subr.msk.bf16.mxu1 %vm344_vm1, %v1070_v62  ;;  %v1101_v63 = vsel %vm344_vm1, %v1069_v8, 0 }
 0x1e3   : > { %1158 = vmatpush1.bf16.msra.mxu1 %v1101_v63  ;;  %v1197_v3 = vpop.permute.xlu0 %1196  ;;  %3246 = vmatmul.mubr.msk.bf16.vlgmr.msra.gmra.mrb[0].mxu0 %vm426_vm11, %v3244_v4 }
 0x1e4   : > { %v1195_v14 = vpop.permute.xlu1 %1194  ;;  %1346 = vmatprep.mubr.bf16.mxu0 %v5325_v1 }
 0x1e5   : > { %1494 = vrot.lane.b32.xlu0 %v4108_v18, %s3439_s25  ;;  %v1255_v20 = vsel %vm1254_vm15, %v1195_v14, %v1197_v3 }
 0x1e6   : > { %1492 = vrot.lane.b32.xlu1 %v4094_v17, %s3439_s25  ;;  %3248 = vmatmul.mubr.msk.bf16.vlgmr.msra.gmra.mrb[0].mxu1 %vm426_vm11, %v3244_v4  ;;  %v3249_v4 = vld [vmem:[%s5322_s1 + $0x10] sm:$0xf] }
 0x1e7   : > { %v1201_v9 = vpop.permute.xlu0 %1200  ;;  %1387 = vmatprep.mubr.bf16.mxu1 %v5325_v1 }
 0x1e8   : > { %v1199_v15 = vpop.permute.xlu1 %1198 }
 0x1e9   : > { %1502 = vrot.lane.b32.xlu0 %v4082_v7, %s3440_s26  ;;  %v1256_v19 = vsel %vm1254_vm15, %v1197_v3, %v1199_v15  ;;  %v1257_v28 = vsel %vm1254_vm15, %v1199_v15, %v1201_v9 }
 0x1ea   : > { %1500 = vrot.lane.b32.xlu1 %v4086_v11, %s3440_s26  ;;  %1314 = vmatprep.subr.bf16.mxu0 %v1256_v19 }
 0x1eb   : > { %1315 = vmatpush1.bf16.msra.mxu0 %v1255_v20  ;;  %v1205_v22 = vpop.permute.xlu0 %1204 }
 0x1ec   : > { %v1203_v25 = vpop.permute.xlu1 %1202 }
 0x1ed   : > { %1506 = vrot.lane.b32.xlu0 %v4094_v17, %s3440_s26  ;;  %v1258_v13 = vsel %vm1254_vm15, %v1201_v9, %v1203_v25 }
 0x1ee   : > { %1504 = vrot.lane.b32.xlu1 %v4099_v21, %s3440_s26  ;;  %1355 = vmatprep.subr.bf16.mxu1 %v1258_v13 }
 0x1ef   : > { %1356 = vmatpush1.bf16.msra.mxu1 %v1257_v28  ;;  %v1209_v29 = vpop.permute.xlu0 %1208 }
 0x1f0   : > { %v1207_v30 = vpop.permute.xlu1 %1206 }
 0x1f1   : > { %1514 = vrot.lane.b32.xlu0 %v4086_v11, %s3441_s27  ;;  %v1260_v23 = vsel %vm1254_vm15, %v1207_v30, %v1209_v29  ;;  %v1259_v24 = vsel %vm1254_vm15, %v1205_v22, %v1207_v30 }
 0x1f2   : > { %1508 = vrot.lane.b32.xlu1 %v4108_v18, %s3440_s26  ;;  %1316 = vmatprep.subr.bf16.mxu0 %v1260_v23 }
 0x1f3   : > { %1317 = vmatpush1.bf16.msra.mxu0 %v1259_v24  ;;  %v1213_v31 = vpop.permute.xlu0 %1212 }
 0x1f4   : > { %v1211_v32 = vpop.permute.xlu1 %1210 }
 0x1f5   : > { %1518 = vrot.lane.b32.xlu0 %v4099_v21, %s3441_s27  ;;  %v1262_v39 = vsel %vm1254_vm15, %v1211_v32, %v1213_v31  ;;  %v1261_v34 = vsel %vm1254_vm15, %v1209_v29, %v1211_v32 }
 0x1f6   : > { %1516 = vrot.lane.b32.xlu1 %v4082_v7, %s3441_s27  ;;  %1357 = vmatprep.subr.bf16.mxu1 %v1262_v39 }
 0x1f7   : > { %1358 = vmatpush1.bf16.msra.mxu1 %v1261_v34  ;;  %v1217_v16 = vpop.permute.xlu0 %1216 }
 0x1f8   : > { %v1215_v37 = vpop.permute.xlu1 %1214 }
 0x1f9   : > { %1522 = vrot.lane.b32.xlu0 %v4108_v18, %s3441_s27  ;;  %v1263_v41 = vsel %vm1254_vm15, %v1215_v37, %v1217_v16 }
 0x1fa   : > { %1520 = vrot.lane.b32.xlu1 %v4094_v17, %s3441_s27 }
 0x1fb   : > { %v1221_v47 = vpop.permute.xlu0 %1220 }
 0x1fc   : > { %v1219_v38 = vpop.permute.xlu1 %1218 }
 0x1fd   : > { %1530 = vrot.lane.b32.xlu0 %v4082_v7, %s3442_s28  ;;  %v1264_v40 = vsel %vm1254_vm15, %v1217_v16, %v1219_v38  ;;  %v1265_v61 = vsel %vm1254_vm15, %v1219_v38, %v1221_v47 }
 0x1fe   : > { %1528 = vrot.lane.b32.xlu1 %v4086_v11, %s3442_s28  ;;  %1318 = vmatprep.subr.bf16.mxu0 %v1264_v40 }
 0x1ff   : > { %1319 = vmatpush1.bf16.msra.mxu0 %v1263_v41  ;;  %v1225_v33 = vpop.permute.xlu0 %1224 }
 0x200   : > { %v1223_v46 = vpop.permute.xlu1 %1222 }
 0x201   : > { %1534 = vrot.lane.b32.xlu0 %v4094_v17, %s3442_s28  ;;  %v1266_v60 = vsel %vm1254_vm15, %v1221_v47, %v1223_v46 }
 0x202   : > { %1532 = vrot.lane.b32.xlu1 %v4099_v21, %s3442_s28  ;;  %1359 = vmatprep.subr.bf16.mxu1 %v1266_v60 }
 0x203   : > { %1360 = vmatpush1.bf16.msra.mxu1 %v1265_v61  ;;  %v1229_v43 = vpop.permute.xlu0 %1228 }
 0x204   : > { %v1227_v44 = vpop.permute.xlu1 %1226 }
 0x205   : > { %v1268_v5 = vsel %vm1254_vm15, %v1227_v44, %v1229_v43  ;;  %1542 = vrot.lane.b32.xlu0 %v4086_v11, %s3443_s29  ;;  %v1267_v6 = vsel %vm1254_vm15, %v1225_v33, %v1227_v44 }
 0x206   : > { %1536 = vrot.lane.b32.xlu1 %v4108_v18, %s3442_s28  ;;  %1320 = vmatprep.subr.bf16.mxu0 %v1268_v5 }
 0x207   : > { %1321 = vmatpush1.bf16.msra.mxu0 %v1267_v6  ;;  %v1233_v45 = vpop.permute.xlu0 %1232 }
 0x208   : > { %v1231_v48 = vpop.permute.xlu1 %1230 }
 0x209   : > { %v1270_v27 = vsel %vm1254_vm15, %v1231_v48, %v1233_v45  ;;  %1546 = vrot.lane.b32.xlu0 %v4099_v21, %s3443_s29  ;;  %v1269_v49 = vsel %vm1254_vm15, %v1229_v43, %v1231_v48 }
 0x20a   : > { %1361 = vmatprep.subr.bf16.mxu1 %v1270_v27  ;;  %1544 = vrot.lane.b32.xlu1 %v4082_v7, %s3443_s29 }
 0x20b   : > { %1362 = vmatpush1.bf16.msra.mxu1 %v1269_v49  ;;  %v1237_v10 = vpop.permute.xlu0 %1236 }
 0x20c   : > { %v1235_v50 = vpop.permute.xlu1 %1234 }
 0x20d   : > { %1550 = vrot.lane.b32.xlu0 %v4108_v18, %s3443_s29  ;;  %v1271_v52 = vsel %vm1254_vm15, %v1235_v50, %v1237_v10 }
 0x20e   : > { %1548 = vrot.lane.b32.xlu1 %v4094_v17, %s3443_s29 }
 0x20f   : > { %v1241_v36 = vpop.permute.xlu0 %1240 }
 0x210   : > { %v1239_v26 = vpop.permute.xlu1 %1238 }
 0x211   : > { %v1272_v51 = vsel %vm1254_vm15, %v1237_v10, %v1239_v26  ;;  %v1273_v55 = vsel %vm1254_vm15, %v1239_v26, %v1241_v36 }
 0x212   : > { %1322 = vmatprep.subr.bf16.mxu0 %v1272_v51 }
 0x213   : > { %1323 = vmatpush1.bf16.msra.mxu0 %v1271_v52  ;;  %v1245_v35 = vpop.permute.xlu0 %1244 }
 0x214   : > { %v1243_v42 = vpop.permute.xlu1 %1242 }
 0x215   : > { %v1274_v54 = vsel %vm1254_vm15, %v1241_v36, %v1243_v42 }
 0x216   : > { %1363 = vmatprep.subr.bf16.mxu1 %v1274_v54 }
 0x217   : > { %1364 = vmatpush1.bf16.msra.mxu1 %v1273_v55  ;;  %v1249_v53 = vpop.permute.xlu0 %1248 }
 0x218   : > { %v1247_v56 = vpop.permute.xlu1 %1246 }
 0x219   : > { %v1275_v0 = vsel %vm1254_vm15, %v1245_v35, %v1247_v56  ;;  %v1276_v2 = vsel %vm1254_vm15, %v1247_v56, %v1249_v53 }
 0x21a   : > { %3250 = vmatprep.subr.msk.bf16.mxu0 %vm344_vm1, %v1276_v2  ;;  %v1303_v57 = vsel %vm344_vm1, %v1275_v0, 0 }
 0x21b   : > { %1325 = vmatpush1.bf16.msra.mxu0 %v1303_v57  ;;  %v1253_v58 = vpop.permute.xlu0 %1252 }
 0x21c   : > { %v1251_v59 = vpop.permute.xlu1 %1250 }
 0x21d   : > { %v1277_v8 = vsel %vm1254_vm15, %v1249_v53, %v1251_v59  ;;  %v1278_v62 = vsel %vm1254_vm15, %v1251_v59, %v1253_v58 }
 0x21e   : > { %3252 = vmatprep.subr.msk.bf16.mxu1 %vm344_vm1, %v1278_v62  ;;  %v1309_v63 = vsel %vm344_vm1, %v1277_v8, 0  ;;  %3251 = vmatmul.mubr.msk.bf16.vlgmr.msra.gmra.mrb[0].mxu0 %vm426_vm11, %v3249_v4 }
 0x21f   : > { %1366 = vmatpush1.bf16.msra.mxu1 %v1309_v63  ;;  %v1419_v3 = vpop.permute.xlu0 %1418  ;;  %1809 = vmatprep.mubr.bf16.mxu0 %v5325_v1 }
 0x220   : > { %v1417_v14 = vpop.permute.xlu1 %1416 }
 0x221   : > { %v1426_v9 = vsel %vm204_vm0, %v1417_v14, %v1419_v3 }
 0x222   : > { %v4269_v15 = vsel %vm344_vm1, %v4086_v11, %v1426_v9  ;;  %3253 = vmatmul.mubr.msk.bf16.vlgmr.msra.gmra.mrb[0].mxu1 %vm426_vm11, %v3249_v4 }
 0x223   : > { %1658 = vrot.lane.b32.xlu1 %v4269_v15, %s3435_s21  ;;  %v1423_v19 = vpop.permute.xlu0 %1422  ;;  %1850 = vmatprep.mubr.bf16.mxu1 %v5325_v1 }
 0x224   : > { %v1421_v20 = vpop.permute.xlu1 %1420 }
 0x225   : > { %v1427_v22 = vsel %vm204_vm0, %v1419_v3, %v1421_v20  ;;  %v1428_v25 = vsel %vm204_vm0, %v1421_v20, %v1423_v19 }
 0x226   : > { %v4279_v13 = vsel %vm344_vm1, %v4082_v7, %v1427_v22  ;;  %v4283_v11 = vsel %vm344_vm1, %v4099_v21, %v1428_v25 }
 0x227   : > { %1660 = vrot.lane.b32.xlu0 %v4279_v13, %s3435_s21  ;;  %1662 = vrot.lane.b32.xlu1 %v4283_v11, %s3435_s21  ;;  %v1431_v28 = vpop.permute.xlu0 %1430 }
 0x228   : > { %v1425_v29 = vpop.permute.xlu1 %1424 }
 0x229   : > { %v1429_v30 = vsel %vm204_vm0, %v1423_v19, %v1425_v29  ;;  %v4292_v23 = vsel %vm344_vm1, %v4108_v18, %v1425_v29 }
 0x22a   : > { %v4296_v7 = vsel %vm344_vm1, %v4094_v17, %v1429_v30 }
 0x22b   : > { %1664 = vrot.lane.b32.xlu0 %v4296_v7, %s3435_s21  ;;  %1666 = vrot.lane.b32.xlu1 %v4292_v23, %s3435_s21  ;;  %v1435_v21 = vpop.permute.xlu0 %1434 }
 0x22c   : > { %v1433_v24 = vpop.permute.xlu1 %1432 }
 0x22d   : > { %v1440_v16 = vsel %vm219_vm2, %v1431_v28, %v1433_v24  ;;  %v1441_v38 = vsel %vm219_vm2, %v1433_v24, %v1435_v21 }
 0x22f   : > { %v1439_v31 = vpop.permute.xlu0 %1438 }
 0x230   : > { %v1437_v32 = vpop.permute.xlu1 %1436 }
 0x231   : > { %v1442_v40 = vsel %vm219_vm2, %v1435_v21, %v1437_v32  ;;  %v1443_v44 = vsel %vm219_vm2, %v1437_v32, %v1439_v31 }
 0x233   : > { %v1447_v39 = vpop.permute.xlu0 %1446 }
 0x234   : > { %v1445_v34 = vpop.permute.xlu1 %1444 }
 0x235   : > { %v1454_v18 = vsel %vm234_vm3, %v1445_v34, %v1447_v39 }
 0x236   : > { %v4305_v37 = vsel %vm344_vm1, %v1440_v16, %v1454_v18 }
 0x237   : > { %1668 = vrot.lane.b32.xlu0 %v4305_v37, %s3435_s21  ;;  %v1451_v17 = vpop.permute.xlu0 %1450 }
 0x238   : > { %v1449_v47 = vpop.permute.xlu1 %1448 }
 0x239   : > { %v1455_v41 = vsel %vm234_vm3, %v1447_v39, %v1449_v47  ;;  %v1456_v33 = vsel %vm234_vm3, %v1449_v47, %v1451_v17 }
 0x23a   : > { %v4314_v46 = vsel %vm344_vm1, %v1441_v38, %v1455_v41  ;;  %v4317_v60 = vsel %vm344_vm1, %v1442_v40, %v1456_v33 }
 0x23b   : > { %1670 = vrot.lane.b32.xlu1 %v4314_v46, %s3435_s21  ;;  %1672 = vrot.lane.b32.xlu0 %v4317_v60, %s3435_s21  ;;  %v1459_v61 = vpop.permute.xlu0 %1458 }
 0x23c   : > { %v1453_v43 = vpop.permute.xlu1 %1452 }
 0x23d   : > { %v1457_v5 = vsel %vm234_vm3, %v1451_v17, %v1453_v43  ;;  %v4326_v6 = vsel %vm344_vm1, %v1439_v31, %v1453_v43 }
 0x23e   : > { %v4329_v45 = vsel %vm344_vm1, %v1443_v44, %v1457_v5 }
 0x23f   : > { %1674 = vrot.lane.b32.xlu1 %v4329_v45, %s3435_s21  ;;  %1676 = vrot.lane.b32.xlu0 %v4326_v6, %s3435_s21  ;;  %v1463_v48 = vpop.permute.xlu0 %1462 }
 0x240   : > { %v1461_v27 = vpop.permute.xlu1 %1460 }
 0x241   : > { %v1468_v26 = vsel %vm249_vm4, %v1459_v61, %v1461_v27  ;;  %v1469_v54 = vsel %vm249_vm4, %v1461_v27, %v1463_v48 }
 0x243   : > { %v1467_v49 = vpop.permute.xlu0 %1466 }
 0x244   : > { %v1465_v10 = vpop.permute.xlu1 %1464 }
 0x245   : > { %v1470_v55 = vsel %vm249_vm4, %v1463_v48, %v1465_v10  ;;  %v1471_v59 = vsel %vm249_vm4, %v1465_v10, %v1467_v49 }
 0x247   : > { %v1475_v50 = vpop.permute.xlu0 %1474 }
 0x248   : > { %v1473_v36 = vpop.permute.xlu1 %1472 }
 0x249   : > { %v1482_v51 = vsel %vm264_vm5, %v1473_v36, %v1475_v50 }
 0x24a   : > { %v4338_v52 = vsel %vm344_vm1, %v1468_v26, %v1482_v51 }
 0x24b   : > { %1678 = vrot.lane.b32.xlu1 %v4338_v52, %s3435_s21  ;;  %v1479_v35 = vpop.permute.xlu0 %1478 }
 0x24c   : > { %v1477_v42 = vpop.permute.xlu1 %1476 }
 0x24d   : > { %v1483_v53 = vsel %vm264_vm5, %v1475_v50, %v1477_v42  ;;  %v1484_v56 = vsel %vm264_vm5, %v1477_v42, %v1479_v35 }
 0x24e   : > { %v4347_v0 = vsel %vm344_vm1, %v1469_v54, %v1483_v53  ;;  %v4350_v2 = vsel %vm344_vm1, %v1470_v55, %v1484_v56 }
 0x24f   : > { %1680 = vrot.lane.b32.xlu0 %v4347_v0, %s3435_s21  ;;  %1682 = vrot.lane.b32.xlu1 %v4350_v2, %s3435_s21  ;;  %v1487_v57 = vpop.permute.xlu0 %1486 }
 0x250   : > { %v1481_v58 = vpop.permute.xlu1 %1480 }
 0x251   : > { %v1485_v4 = vsel %vm264_vm5, %v1479_v35, %v1481_v58  ;;  %v4359_v8 = vsel %vm344_vm1, %v1467_v49, %v1481_v58 }
 0x252   : > { %v4362_v62 = vsel %vm344_vm1, %v1471_v59, %v1485_v4 }
 0x253   : > { %1684 = vrot.lane.b32.xlu0 %v4362_v62, %s3435_s21  ;;  %1686 = vrot.lane.b32.xlu1 %v4359_v8, %s3435_s21  ;;  %v1491_v63 = vpop.permute.xlu0 %1490 }
 0x254   : > { %v1489_v3 = vpop.permute.xlu1 %1488 }
 0x255   : > { %v1496_v22 = vsel %vm279_vm6, %v1487_v57, %v1489_v3  ;;  %v1497_v21 = vsel %vm279_vm6, %v1489_v3, %v1491_v63 }
 0x257   : > { %v1495_v14 = vpop.permute.xlu0 %1494 }
 0x258   : > { %v1493_v9 = vpop.permute.xlu1 %1492 }
 0x259   : > { %v1498_v24 = vsel %vm279_vm6, %v1491_v63, %v1493_v9  ;;  %v1499_v17 = vsel %vm279_vm6, %v1493_v9, %v1495_v14 }
 0x25b   : > { %v1503_v19 = vpop.permute.xlu0 %1502 }
 0x25c   : > { %v1501_v20 = vpop.permute.xlu1 %1500 }
 0x25d   : > { %v1510_v25 = vsel %vm294_vm7, %v1501_v20, %v1503_v19 }
 0x25e   : > { %v4371_v28 = vsel %vm344_vm1, %v1496_v22, %v1510_v25 }
 0x25f   : > { %1688 = vrot.lane.b32.xlu0 %v4371_v28, %s3435_s21  ;;  %v1507_v29 = vpop.permute.xlu0 %1506 }
 0x260   : > { %v1505_v30 = vpop.permute.xlu1 %1504 }
 0x261   : > { %v1511_v31 = vsel %vm294_vm7, %v1503_v19, %v1505_v30  ;;  %v1512_v32 = vsel %vm294_vm7, %v1505_v30, %v1507_v29 }
 0x262   : > { %v4380_v39 = vsel %vm344_vm1, %v1497_v21, %v1511_v31  ;;  %v4383_v34 = vsel %vm344_vm1, %v1498_v24, %v1512_v32 }
 0x263   : > { %1690 = vrot.lane.b32.xlu1 %v4380_v39, %s3435_s21  ;;  %1692 = vrot.lane.b32.xlu0 %v4383_v34, %s3435_s21  ;;  %v1515_v16 = vpop.permute.xlu0 %1514 }
 0x264   : > { %v1509_v18 = vpop.permute.xlu1 %1508 }
 0x265   : > { %v1513_v47 = vsel %vm294_vm7, %v1507_v29, %v1509_v18  ;;  %v4392_v38 = vsel %vm344_vm1, %v1495_v14, %v1509_v18 }
 0x266   : > { %v4395_v40 = vsel %vm344_vm1, %v1499_v17, %v1513_v47 }
 0x267   : > { %1694 = vrot.lane.b32.xlu1 %v4395_v40, %s3435_s21  ;;  %1696 = vrot.lane.b32.xlu0 %v4392_v38, %s3435_s21  ;;  %v1519_v41 = vpop.permute.xlu0 %1518 }
 0x268   : > { %v1517_v33 = vpop.permute.xlu1 %1516 }
 0x269   : > { %v1524_v48 = vsel %vm309_vm8, %v1515_v16, %v1517_v33  ;;  %v1525_v36 = vsel %vm309_vm8, %v1517_v33, %v1519_v41 }
 0x26b   : > { %v1523_v61 = vpop.permute.xlu0 %1522 }
 0x26c   : > { %v1521_v43 = vpop.permute.xlu1 %1520 }
 0x26d   : > { %v1526_v26 = vsel %vm309_vm8, %v1519_v41, %v1521_v43  ;;  %v1527_v56 = vsel %vm309_vm8, %v1521_v43, %v1523_v61 }
 0x26f   : > { %v1531_v44 = vpop.permute.xlu0 %1530 }
 0x270   : > { %v1529_v5 = vpop.permute.xlu1 %1528 }
 0x271   : > { %v1538_v27 = vsel %vm324_vm9, %v1529_v5, %v1531_v44 }
 0x272   : > { %v4404_v49 = vsel %vm344_vm1, %v1524_v48, %v1538_v27 }
 0x273   : > { %1698 = vrot.lane.b32.xlu1 %v4404_v49, %s3435_s21  ;;  %v1535_v10 = vpop.permute.xlu0 %1534 }
 0x274   : > { %v1533_v50 = vpop.permute.xlu1 %1532 }
 0x275   : > { %v1539_v51 = vsel %vm324_vm9, %v1531_v44, %v1533_v50  ;;  %v1540_v35 = vsel %vm324_vm9, %v1533_v50, %v1535_v10 }
 0x276   : > { %v4413_v42 = vsel %vm344_vm1, %v1525_v36, %v1539_v51  ;;  %v4416_v54 = vsel %vm344_vm1, %v1526_v26, %v1540_v35 }
 0x277   : > { %1700 = vrot.lane.b32.xlu0 %v4413_v42, %s3435_s21  ;;  %1702 = vrot.lane.b32.xlu1 %v4416_v54, %s3435_s21  ;;  %v1543_v55 = vpop.permute.xlu0 %1542 }
 0x278   : > { %v1537_v53 = vpop.permute.xlu1 %1536 }
 0x279   : > { %v1541_v57 = vsel %vm324_vm9, %v1535_v10, %v1537_v53  ;;  %v4425_v58 = vsel %vm344_vm1, %v1523_v61, %v1537_v53 }
 0x27a   : > { %v4428_v59 = vsel %vm344_vm1, %v1527_v56, %v1541_v57 }
 0x27b   : > { %1704 = vrot.lane.b32.xlu0 %v4428_v59, %s3435_s21  ;;  %1706 = vrot.lane.b32.xlu1 %v4425_v58, %s3435_s21  ;;  %v1547_v4 = vpop.permute.xlu0 %1546 }
 0x27c   : > { %v1545_v63 = vpop.permute.xlu1 %1544 }
 0x27d   : > { %v4435_v3 = vsel %vm339_vm10, %v1543_v55, %v1545_v63  ;;  %v4438_v14 = vsel %vm339_vm10, %v1545_v63, %v1547_v4 }
 0x27f   : > { %1708 = vrot.lane.b32.xlu0 %v4435_v3, %s3435_s21  ;;  %1710 = vrot.lane.b32.xlu1 %v4438_v14, %s3435_s21  ;;  %v4444_v9 = vpop.permute.xlu0 %1550 }
 0x280   : > { %v1549_v19 = vpop.permute.xlu1 %1548 }
 0x281   : > { %v4447_v20 = vsel %vm339_vm10, %v1547_v4, %v1549_v19  ;;  %v4451_v22 = vsel %vm339_vm10, %v1549_v19, %v4444_v9 }
 0x283   : > { %1712 = vrot.lane.b32.xlu0 %v4447_v20, %s3435_s21  ;;  %1714 = vrot.lane.b32.xlu1 %v4451_v22, %s3435_s21 }
 0x287   : > { %1865 = vrot.lane.b32.xlu1 %v4269_v15, %s3448_s30  ;;  %1716 = vrot.lane.b32.xlu0 %v4444_v9, %s3435_s21 }
 0x28b   : > { %1869 = vrot.lane.b32.xlu1 %v4283_v11, %s3448_s30  ;;  %1867 = vrot.lane.b32.xlu0 %v4279_v13, %s3448_s30 }
 0x28f   : > { %1873 = vrot.lane.b32.xlu1 %v4292_v23, %s3448_s30  ;;  %1871 = vrot.lane.b32.xlu0 %v4296_v7, %s3448_s30 }
 0x293   : > { %1879 = vrot.lane.b32.xlu1 %v4317_v60, %s3448_s30  ;;  %1877 = vrot.lane.b32.xlu0 %v4314_v46, %s3448_s30 }
 0x295   : > { %v1659_v25 = vpop.permute.xlu1 %1658 }
 0x297   : > { %1883 = vrot.lane.b32.xlu1 %v4326_v6, %s3448_s30  ;;  %1881 = vrot.lane.b32.xlu0 %v4329_v45, %s3448_s30 }
 0x299   : > { %v1663_v29 = vpop.permute.xlu1 %1662  ;;  %v1661_v30 = vpop.permute.xlu0 %1660 }
 0x29a   : > { %v1719_v21 = vsel %vm219_vm2, %v1661_v30, %v1663_v29  ;;  %v1718_v24 = vsel %vm219_vm2, %v1659_v25, %v1661_v30 }
 0x29b   : > { %1887 = vrot.lane.b32.xlu1 %v4347_v0, %s3448_s30  ;;  %1875 = vrot.lane.b32.xlu0 %v4305_v37, %s3448_s30 }
 0x29c   : > { %1777 = vmatprep.subr.bf16.mxu0 %v1719_v21 }
 0x29d   : > { %1778 = vmatpush1.bf16.msra.mxu0 %v1718_v24  ;;  %v1667_v31 = vpop.permute.xlu1 %1666  ;;  %v1665_v32 = vpop.permute.xlu0 %1664  ;;  %v2696_v24 = vld [vmem:[%s3492_s19 + $0x10] sm:$0xff] }
 0x29e   : > { %v1721_v16 = vsel %vm219_vm2, %v1665_v32, %v1667_v31  ;;  %v1720_v18 = vsel %vm219_vm2, %v1663_v29, %v1665_v32  ;;  %v2695_v31 = vld [vmem:[%s3492_s19 + $0x8] sm:$0xff] }
 0x29f   : > { %1891 = vrot.lane.b32.xlu1 %v4362_v62, %s3448_s30  ;;  %1889 = vrot.lane.b32.xlu0 %v4350_v2, %s3448_s30 }
 0x2a0   : > { %1818 = vmatprep.subr.bf16.mxu1 %v1721_v16  ;;  %v4575_v16 = vcombine.low %v2696_v24, %v2696_v24 }
 0x2a1   : > { %1819 = vmatpush1.bf16.msra.mxu1 %v1720_v18  ;;  %v4577_v18 = vcombine.high %v2695_v31, %v2695_v31 }
 0x2a3   : > { %1885 = vrot.lane.b32.xlu1 %v4338_v52, %s3448_s30  ;;  %1893 = vrot.lane.b32.xlu0 %v4359_v8, %s3448_s30 }
 0x2a7   : > { %1899 = vrot.lane.b32.xlu1 %v4383_v34, %s3448_s30  ;;  %1897 = vrot.lane.b32.xlu0 %v4380_v39, %s3448_s30 }
 0x2a9   : > { %v1669_v17 = vpop.permute.xlu0 %1668 }
 0x2ab   : > { %1903 = vrot.lane.b32.xlu1 %v4392_v38, %s3448_s30  ;;  %1901 = vrot.lane.b32.xlu0 %v4395_v40, %s3448_s30 }
 0x2ad   : > { %v1671_v47 = vpop.permute.xlu1 %1670  ;;  %v1673_v41 = vpop.permute.xlu0 %1672 }
 0x2ae   : > { %v1723_v33 = vsel %vm219_vm2, %v1671_v47, %v1673_v41  ;;  %v1722_v61 = vsel %vm219_vm2, %v1669_v17, %v1671_v47 }
 0x2af   : > { %1907 = vrot.lane.b32.xlu1 %v4413_v42, %s3448_s30  ;;  %1895 = vrot.lane.b32.xlu0 %v4371_v28, %s3448_s30 }
 0x2b0   : > { %1779 = vmatprep.subr.bf16.mxu0 %v1723_v33 }
 0x2b1   : > { %1780 = vmatpush1.bf16.msra.mxu0 %v1722_v61  ;;  %v1675_v43 = vpop.permute.xlu1 %1674  ;;  %v1677_v44 = vpop.permute.xlu0 %1676  ;;  %v4586_v61 = vld [vmem:[%s3492_s19 + $0x18] ss:$0 sps:$4 sm:$0xff]  }
 0x2b2   : > { %v1725_v5 = vsel %vm219_vm2, %v1675_v43, %v1677_v44  ;;  %v1724_v48 = vsel %vm219_vm2, %v1673_v41, %v1675_v43  ;;  %v4588_v43 = vcombine.high %v2696_v24, %v2696_v24 }
 0x2b3   : > { %1911 = vrot.lane.b32.xlu1 %v4428_v59, %s3448_s30  ;;  %1909 = vrot.lane.b32.xlu0 %v4416_v54, %s3448_s30 }
 0x2b4   : > { %1820 = vmatprep.subr.bf16.mxu1 %v1725_v5 }
 0x2b5   : > { %1821 = vmatpush1.bf16.msra.mxu1 %v1724_v48 }
 0x2b7   : > { %1905 = vrot.lane.b32.xlu1 %v4404_v49, %s3448_s30  ;;  %1913 = vrot.lane.b32.xlu0 %v4425_v58, %s3448_s30 }
 0x2bb   : > { %1917 = vrot.lane.b32.xlu1 %v4438_v14, %s3448_s30  ;;  %1915 = vrot.lane.b32.xlu0 %v4435_v3, %s3448_s30 }
 0x2bd   : > { %v1679_v27 = vpop.permute.xlu1 %1678 }
 0x2bf   : > { %1921 = vrot.lane.b32.xlu1 %v4451_v22, %s3448_s30  ;;  %1919 = vrot.lane.b32.xlu0 %v4447_v20, %s3448_s30 }
 0x2c1   : > { %v1683_v10 = vpop.permute.xlu1 %1682  ;;  %v1681_v50 = vpop.permute.xlu0 %1680 }
 0x2c2   : > { %v1727_v36 = vsel %vm219_vm2, %v1681_v50, %v1683_v10  ;;  %v1726_v26 = vsel %vm219_vm2, %v1679_v27, %v1681_v50 }
 0x2c3   : > { %2075 = vrot.lane.b32.xlu1 %v4279_v13, %s3449_s4  ;;  %1923 = vrot.lane.b32.xlu0 %v4444_v9, %s3448_s30 }
 0x2c4   : > { %1781 = vmatprep.subr.bf16.mxu0 %v1727_v36 }
 0x2c5   : > { %1782 = vmatpush1.bf16.msra.mxu0 %v1726_v26  ;;  %v1687_v51 = vpop.permute.xlu1 %1686  ;;  %v1685_v35 = vpop.permute.xlu0 %1684 }
 0x2c6   : > { %v1729_v55 = vsel %vm219_vm2, %v1685_v35, %v1687_v51  ;;  %v1728_v53 = vsel %vm219_vm2, %v1683_v10, %v1685_v35  ;;  %v4596_v10 = vcombine.low %v2695_v31, %v2695_v31 }
 0x2c7   : > { %2079 = vrot.lane.b32.xlu1 %v4296_v7, %s3449_s4  ;;  %2077 = vrot.lane.b32.xlu0 %v4283_v11, %s3449_s4 }
 0x2c8   : > { %1822 = vmatprep.subr.bf16.mxu1 %v1729_v55 }
 0x2c9   : > { %1823 = vmatpush1.bf16.msra.mxu1 %v1728_v53 }
 0x2cb   : > { %2073 = vrot.lane.b32.xlu1 %v4269_v15, %s3449_s4  ;;  %2081 = vrot.lane.b32.xlu0 %v4292_v23, %s3449_s4 }
 0x2cf   : > { %2087 = vrot.lane.b32.xlu1 %v4317_v60, %s3449_s4  ;;  %2085 = vrot.lane.b32.xlu0 %v4314_v46, %s3449_s4 }
 0x2d1   : > { %v1689_v56 = vpop.permute.xlu0 %1688 }
 0x2d3   : > { %2091 = vrot.lane.b32.xlu1 %v4326_v6, %s3449_s4  ;;  %2089 = vrot.lane.b32.xlu0 %v4329_v45, %s3449_s4 }
 0x2d5   : > { %v1691_v57 = vpop.permute.xlu1 %1690  ;;  %v1693_v4 = vpop.permute.xlu0 %1692 }
 0x2d6   : > { %v1731_v63 = vsel %vm219_vm2, %v1691_v57, %v1693_v4  ;;  %v1730_v19 = vsel %vm219_vm2, %v1689_v56, %v1691_v57 }
 0x2d7   : > { %2095 = vrot.lane.b32.xlu1 %v4347_v0, %s3449_s4  ;;  %2083 = vrot.lane.b32.xlu0 %v4305_v37, %s3449_s4 }
 0x2d8   : > { %1783 = vmatprep.subr.bf16.mxu0 %v1731_v63  ;;  %v3259_v63 = vld [vmem:[%s5322_s1 + $0x14] sm:$0xf] }
 0x2d9   : > { %1784 = vmatpush1.bf16.msra.mxu0 %v1730_v19  ;;  %v1695_v25 = vpop.permute.xlu1 %1694  ;;  %v1697_v29 = vpop.permute.xlu0 %1696 }
 0x2da   : > { %v1733_v30 = vsel %vm219_vm2, %v1695_v25, %v1697_v29  ;;  %v1732_v21 = vsel %vm219_vm2, %v1693_v4, %v1695_v25 }
 0x2db   : > { %2099 = vrot.lane.b32.xlu1 %v4362_v62, %s3449_s4  ;;  %2097 = vrot.lane.b32.xlu0 %v4350_v2, %s3449_s4 }
 0x2dc   : > { %1824 = vmatprep.subr.bf16.mxu1 %v1733_v30 }
 0x2dd   : > { %1825 = vmatpush1.bf16.msra.mxu1 %v1732_v21 }
 0x2df   : > { %2093 = vrot.lane.b32.xlu1 %v4338_v52, %s3449_s4  ;;  %2101 = vrot.lane.b32.xlu0 %v4359_v8, %s3449_s4 }
 0x2e3   : > { %2107 = vrot.lane.b32.xlu1 %v4383_v34, %s3449_s4  ;;  %2105 = vrot.lane.b32.xlu0 %v4380_v39, %s3449_s4 }
 0x2e5   : > { %v1699_v32 = vpop.permute.xlu1 %1698 }
 0x2e7   : > { %2111 = vrot.lane.b32.xlu1 %v4392_v38, %s3449_s4  ;;  %2109 = vrot.lane.b32.xlu0 %v4395_v40, %s3449_s4 }
 0x2e9   : > { %v1703_v17 = vpop.permute.xlu1 %1702  ;;  %v1701_v47 = vpop.permute.xlu0 %1700 }
 0x2ea   : > { %v1735_v41 = vsel %vm219_vm2, %v1701_v47, %v1703_v17  ;;  %v1734_v33 = vsel %vm219_vm2, %v1699_v32, %v1701_v47 }
 0x2eb   : > { %2715 = vrot.lane.b32.xlu1 %v4575_v16, %s3434_s20  ;;  %2713 = vrot.lane.b32.xlu0 %v4577_v18, %s3434_s20 }
 0x2ec   : > { %1785 = vmatprep.subr.bf16.mxu0 %v1735_v41 }
 0x2ed   : > { %1786 = vmatpush1.bf16.msra.mxu0 %v1734_v33  ;;  %v1707_v44 = vpop.permute.xlu1 %1706  ;;  %v1705_v5 = vpop.permute.xlu0 %1704 }
 0x2ee   : > { %v1737_v48 = vsel %vm219_vm2, %v1705_v5, %v1707_v44  ;;  %v1736_v27 = vsel %vm219_vm2, %v1703_v17, %v1705_v5 }
 0x2ef   : > { %2719 = vrot.lane.b32.xlu1 %v4586_v61, %s3434_s20  ;;  %2717 = vrot.lane.b32.xlu0 %v4588_v43, %s3434_s20 }
 0x2f0   : > { %1826 = vmatprep.subr.bf16.mxu1 %v1737_v48 }
 0x2f1   : > { %1827 = vmatpush1.bf16.msra.mxu1 %v1736_v27  ;;  %v1711_v50 = vpop.permute.xlu1 %1710  ;;  %v1709_v36 = vpop.permute.xlu0 %1708 }
 0x2f2   : > { %v1738_v26 = vsel %vm219_vm2, %v1709_v36, %v1711_v50 }
 0x2f3   : > { %2711 = vrot.lane.b32.xlu1 %v4596_v10, %s3434_s20  ;;  %2103 = vrot.lane.b32.xlu0 %v4371_v28, %s3449_s4  ;;  %v1766_v53 = vsel %vm344_vm1, %v1738_v26, 0 }
 0x2f5   : > { %v1715_v51 = vpop.permute.xlu1 %1714  ;;  %v1713_v35 = vpop.permute.xlu0 %1712 }
 0x2f6   : > { %v1739_v55 = vsel %vm219_vm2, %v1711_v50, %v1713_v35  ;;  %v1740_v56 = vsel %vm219_vm2, %v1713_v35, %v1715_v51 }
 0x2f7   : > { %2117 = vrot.lane.b32.xlu1 %v4416_v54, %s3449_s4  ;;  %2115 = vrot.lane.b32.xlu0 %v4413_v42, %s3449_s4  ;;  %v1772_v25 = vsel %vm344_vm1, %v1740_v56, 0 }
 0x2f8   : > { %3260 = vmatprep.subr.msk.bf16.mxu0 %vm344_vm1, %v1739_v55 }
 0x2f9   : > { %1788 = vmatpush1.bf16.msra.mxu0 %v1766_v53  ;;  %v1866_v57 = vpop.permute.xlu1 %1865  ;;  %v1717_v4 = vpop.permute.xlu0 %1716 }
 0x2fa   : > { %v1741_v19 = vsel %vm219_vm2, %v1715_v51, %v1717_v4 }
 0x2fb   : > { %2121 = vrot.lane.b32.xlu1 %v4425_v58, %s3449_s4  ;;  %2119 = vrot.lane.b32.xlu0 %v4428_v59, %s3449_s4 }
 0x2fc   : > { %3262 = vmatprep.subr.msk.bf16.mxu1 %vm344_vm1, %v1741_v19  ;;  %3261 = vmatmul.mubr.msk.bf16.vlgmr.msra.gmra.mrb[0].mxu0 %vm426_vm11, %v3259_v63 }
 0x2fd   : > { %1829 = vmatpush1.bf16.msra.mxu1 %v1772_v25  ;;  %v1870_v29 = vpop.permute.xlu1 %1869  ;;  %v1868_v30 = vpop.permute.xlu0 %1867  ;;  %2017 = vmatprep.mubr.bf16.mxu0 %v5325_v1 }
 0x2fe   : > { %v1927_v21 = vsel %vm1925_vm12, %v1868_v30, %v1870_v29  ;;  %v1926_v24 = vsel %vm1925_vm12, %v1866_v57, %v1868_v30 }
 0x2ff   : > { %2729 = vrot.lane.b32.xlu1 %v4575_v16, %s3435_s21  ;;  %2727 = vrot.lane.b32.xlu0 %v4577_v18, %s3435_s21 }
 0x300   : > { %1985 = vmatprep.subr.bf16.mxu0 %v1927_v21  ;;  %3263 = vmatmul.mubr.msk.bf16.vlgmr.msra.gmra.mrb[0].mxu1 %vm426_vm11, %v3259_v63 }
 0x301   : > { %1986 = vmatpush1.bf16.msra.mxu0 %v1926_v24  ;;  %v1874_v31 = vpop.permute.xlu1 %1873  ;;  %v1872_v32 = vpop.permute.xlu0 %1871  ;;  %2058 = vmatprep.mubr.bf16.mxu1 %v5325_v1 }
 0x302   : > { %v1929_v17 = vsel %vm1925_vm12, %v1872_v32, %v1874_v31  ;;  %v1928_v47 = vsel %vm1925_vm12, %v1870_v29, %v1872_v32 }
 0x303   : > { %2733 = vrot.lane.b32.xlu1 %v4586_v61, %s3435_s21  ;;  %2731 = vrot.lane.b32.xlu0 %v4588_v43, %s3435_s21 }
 0x304   : > { %2026 = vmatprep.subr.bf16.mxu1 %v1929_v17 }
 0x305   : > { %2027 = vmatpush1.bf16.msra.mxu1 %v1928_v47  ;;  %v1880_v41 = vpop.permute.xlu1 %1879  ;;  %v1878_v33 = vpop.permute.xlu0 %1877 }
 0x306   : > { %v1931_v44 = vsel %vm1925_vm12, %v1878_v33, %v1880_v41 }
 0x307   : > { %2743 = vrot.lane.b32.xlu1 %v4575_v16, %s3436_s22  ;;  %2741 = vrot.lane.b32.xlu0 %v4577_v18, %s3436_s22 }
 0x308   : > { %1987 = vmatprep.subr.bf16.mxu0 %v1931_v44 }
 0x309   : > { %v1884_v5 = vpop.permute.xlu1 %1883  ;;  %v1882_v48 = vpop.permute.xlu0 %1881 }
 0x30a   : > { %v1933_v27 = vsel %vm1925_vm12, %v1882_v48, %v1884_v5  ;;  %v1932_v50 = vsel %vm1925_vm12, %v1880_v41, %v1882_v48 }
 0x30b   : > { %2747 = vrot.lane.b32.xlu1 %v4586_v61, %s3436_s22  ;;  %2745 = vrot.lane.b32.xlu0 %v4588_v43, %s3436_s22 }
 0x30c   : > { %2028 = vmatprep.subr.bf16.mxu1 %v1933_v27 }
 0x30d   : > { %2029 = vmatpush1.bf16.msra.mxu1 %v1932_v50  ;;  %v1888_v36 = vpop.permute.xlu1 %1887  ;;  %v1876_v26 = vpop.permute.xlu0 %1875 }
 0x30e   : > { %v1930_v51 = vsel %vm1925_vm12, %v1876_v26, %v1878_v33 }
 0x30f   : > { %2725 = vrot.lane.b32.xlu1 %v4596_v10, %s3435_s21  ;;  %2113 = vrot.lane.b32.xlu0 %v4404_v49, %s3449_s4  ;;  %s3450_s21 = smov 48  }
 0x310   : > { %1988 = vmatpush1.bf16.msra.mxu0 %v1930_v51 }
 0x311   : > { %v1892_v35 = vpop.permute.xlu1 %1891  ;;  %v1890_v55 = vpop.permute.xlu0 %1889 }
 0x312   : > { %v1935_v53 = vsel %vm1925_vm12, %v1888_v36, %v1890_v55  ;;  %v1936_v19 = vsel %vm1925_vm12, %v1890_v55, %v1892_v35 }
 0x313   : > { %2123 = vrot.lane.b32.xlu1 %v4435_v3, %s3449_s4  ;;  %2739 = vrot.lane.b32.xlu0 %v4596_v10, %s3436_s22 }
 0x314   : > { %1989 = vmatprep.subr.bf16.mxu0 %v1935_v53 }
 0x315   : > { %v1886_v56 = vpop.permute.xlu1 %1885  ;;  %v1894_v57 = vpop.permute.xlu0 %1893 }
 0x316   : > { %v1934_v4 = vsel %vm1925_vm12, %v1886_v56, %v1888_v36  ;;  %v1937_v63 = vsel %vm1925_vm12, %v1892_v35, %v1894_v57 }
 0x317   : > { %2127 = vrot.lane.b32.xlu1 %v4447_v20, %s3449_s4  ;;  %2125 = vrot.lane.b32.xlu0 %v4438_v14, %s3449_s4 }
 0x318   : > { %1990 = vmatpush1.bf16.msra.mxu0 %v1934_v4  ;;  %2030 = vmatprep.subr.bf16.mxu1 %v1937_v63 }
 0x319   : > { %2031 = vmatpush1.bf16.msra.mxu1 %v1936_v19  ;;  %v1900_v25 = vpop.permute.xlu1 %1899  ;;  %v1898_v29 = vpop.permute.xlu0 %1897 }
 0x31a   : > { %v1939_v30 = vsel %vm1925_vm12, %v1898_v29, %v1900_v25 }
 0x31b   : > { %2131 = vrot.lane.b32.xlu1 %v4444_v9, %s3449_s4  ;;  %2129 = vrot.lane.b32.xlu0 %v4451_v22, %s3449_s4 }
 0x31c   : > { %1991 = vmatprep.subr.bf16.mxu0 %v1939_v30 }
 0x31d   : > { %v1904_v21 = vpop.permute.xlu1 %1903  ;;  %v1902_v24 = vpop.permute.xlu0 %1901 }
 0x31e   : > { %v1941_v31 = vsel %vm1925_vm12, %v1902_v24, %v1904_v21  ;;  %v1940_v32 = vsel %vm1925_vm12, %v1900_v25, %v1902_v24 }
 0x31f   : > { %2757 = vrot.lane.b32.xlu1 %v4575_v16, %s3437_s23  ;;  %2755 = vrot.lane.b32.xlu0 %v4577_v18, %s3437_s23 }
 0x320   : > { %2032 = vmatprep.subr.bf16.mxu1 %v1941_v31 }
 0x321   : > { %2033 = vmatpush1.bf16.msra.mxu1 %v1940_v32  ;;  %v1908_v17 = vpop.permute.xlu1 %1907  ;;  %v1896_v47 = vpop.permute.xlu0 %1895 }
 0x322   : > { %v1938_v41 = vsel %vm1925_vm12, %v1896_v47, %v1898_v29  ;;  %v3264_v29 = vld [vmem:[%s5322_s1 + $0x18] sm:$0xf] }
 0x323   : > { %2761 = vrot.lane.b32.xlu1 %v4586_v61, %s3437_s23  ;;  %2759 = vrot.lane.b32.xlu0 %v4588_v43, %s3437_s23 }
 0x324   : > { %1992 = vmatpush1.bf16.msra.mxu0 %v1938_v41 }
 0x325   : > { %v1912_v33 = vpop.permute.xlu1 %1911  ;;  %v1910_v44 = vpop.permute.xlu0 %1909 }
 0x326   : > { %v1943_v5 = vsel %vm1925_vm12, %v1908_v17, %v1910_v44  ;;  %v1944_v26 = vsel %vm1925_vm12, %v1910_v44, %v1912_v33 }
 0x327   : > { %2771 = vrot.lane.b32.xlu1 %v4575_v16, %s3438_s24  ;;  %2769 = vrot.lane.b32.xlu0 %v4577_v18, %s3438_s24 }
 0x328   : > { %1993 = vmatprep.subr.bf16.mxu0 %v1943_v5 }
 0x329   : > { %v1906_v48 = vpop.permute.xlu1 %1905  ;;  %v1914_v27 = vpop.permute.xlu0 %1913 }
 0x32a   : > { %v1942_v50 = vsel %vm1925_vm12, %v1906_v48, %v1908_v17  ;;  %v1945_v36 = vsel %vm1925_vm12, %v1912_v33, %v1914_v27 }
 0x32b   : > { %2775 = vrot.lane.b32.xlu1 %v4586_v61, %s3438_s24  ;;  %2773 = vrot.lane.b32.xlu0 %v4588_v43, %s3438_s24 }
 0x32c   : > { %1994 = vmatpush1.bf16.msra.mxu0 %v1942_v50  ;;  %2034 = vmatprep.subr.bf16.mxu1 %v1945_v36 }
 0x32d   : > { %2035 = vmatpush1.bf16.msra.mxu1 %v1944_v26  ;;  %v1918_v51 = vpop.permute.xlu1 %1917  ;;  %v1916_v35 = vpop.permute.xlu0 %1915 }
 0x32e   : > { %v1946_v55 = vsel %vm1925_vm12, %v1916_v35, %v1918_v51 }
 0x32f   : > { %2767 = vrot.lane.b32.xlu1 %v4596_v10, %s3438_s24  ;;  %2753 = vrot.lane.b32.xlu0 %v4596_v10, %s3437_s23  ;;  %v1974_v4 = vsel %vm344_vm1, %v1946_v55, 0 }
 0x331   : > { %v1922_v53 = vpop.permute.xlu1 %1921  ;;  %v1920_v56 = vpop.permute.xlu0 %1919 }
 0x332   : > { %v1947_v57 = vsel %vm1925_vm12, %v1918_v51, %v1920_v56  ;;  %v1948_v63 = vsel %vm1925_vm12, %v1920_v56, %v1922_v53 }
 0x333   : > { %2285 = vrot.lane.b32.xlu1 %v4283_v11, %s3450_s21  ;;  %2283 = vrot.lane.b32.xlu0 %v4279_v13, %s3450_s21  ;;  %v1980_v21 = vsel %vm344_vm1, %v1948_v63, 0 }
 0x334   : > { %3265 = vmatprep.subr.msk.bf16.mxu0 %vm344_vm1, %v1947_v57 }
 0x335   : > { %1996 = vmatpush1.bf16.msra.mxu0 %v1974_v4  ;;  %v2076_v19 = vpop.permute.xlu1 %2075  ;;  %v1924_v25 = vpop.permute.xlu0 %1923 }
 0x336   : > { %v1949_v30 = vsel %vm1925_vm12, %v1922_v53, %v1924_v25 }
 0x337   : > { %2289 = vrot.lane.b32.xlu1 %v4292_v23, %s3450_s21  ;;  %2287 = vrot.lane.b32.xlu0 %v4296_v7, %s3450_s21 }
 0x338   : > { %3267 = vmatprep.subr.msk.bf16.mxu1 %vm344_vm1, %v1949_v30  ;;  %3266 = vmatmul.mubr.msk.bf16.vlgmr.msra.gmra.mrb[0].mxu0 %vm426_vm11, %v3264_v29 }
 0x339   : > { %2037 = vmatpush1.bf16.msra.mxu1 %v1980_v21  ;;  %v2080_v24 = vpop.permute.xlu1 %2079  ;;  %v2078_v31 = vpop.permute.xlu0 %2077  ;;  %2225 = vmatprep.mubr.bf16.mxu0 %v5325_v1 }
 0x33a   : > { %v2135_v32 = vsel %vm2133_vm13, %v2076_v19, %v2078_v31  ;;  %v2136_v44 = vsel %vm2133_vm13, %v2078_v31, %v2080_v24 }
 0x33b   : > { %2785 = vrot.lane.b32.xlu1 %v4575_v16, %s3439_s25  ;;  %2783 = vrot.lane.b32.xlu0 %v4577_v18, %s3439_s25 }
 0x33c   : > { %2193 = vmatprep.subr.bf16.mxu0 %v2135_v32  ;;  %3268 = vmatmul.mubr.msk.bf16.vlgmr.msra.gmra.mrb[0].mxu1 %vm426_vm11, %v3264_v29 }
 0x33d   : > { %v2074_v17 = vpop.permute.xlu1 %2073  ;;  %v2082_v47 = vpop.permute.xlu0 %2081  ;;  %2266 = vmatprep.mubr.bf16.mxu1 %v5325_v1 }
 0x33e   : > { %v2134_v41 = vsel %vm2133_vm13, %v2074_v17, %v2076_v19  ;;  %v2137_v33 = vsel %vm2133_vm13, %v2080_v24, %v2082_v47 }
 0x33f   : > { %2789 = vrot.lane.b32.xlu1 %v4586_v61, %s3439_s25  ;;  %2787 = vrot.lane.b32.xlu0 %v4588_v43, %s3439_s25 }
 0x340   : > { %2194 = vmatpush1.bf16.msra.mxu0 %v2134_v41  ;;  %2234 = vmatprep.subr.bf16.mxu1 %v2137_v33 }
 0x341   : > { %2235 = vmatpush1.bf16.msra.mxu1 %v2136_v44  ;;  %v2088_v5 = vpop.permute.xlu1 %2087  ;;  %v2086_v48 = vpop.permute.xlu0 %2085 }
 0x342   : > { %v2139_v27 = vsel %vm2133_vm13, %v2086_v48, %v2088_v5 }
 0x343   : > { %2799 = vrot.lane.b32.xlu1 %v4575_v16, %s3440_s26  ;;  %2797 = vrot.lane.b32.xlu0 %v4577_v18, %s3440_s26 }
 0x344   : > { %2195 = vmatprep.subr.bf16.mxu0 %v2139_v27 }
 0x345   : > { %v2092_v50 = vpop.permute.xlu1 %2091  ;;  %v2090_v36 = vpop.permute.xlu0 %2089 }
 0x346   : > { %v2141_v26 = vsel %vm2133_vm13, %v2090_v36, %v2092_v50  ;;  %v2140_v51 = vsel %vm2133_vm13, %v2088_v5, %v2090_v36 }
 0x347   : > { %2803 = vrot.lane.b32.xlu1 %v4586_v61, %s3440_s26  ;;  %2801 = vrot.lane.b32.xlu0 %v4588_v43, %s3440_s26 }
 0x348   : > { %2236 = vmatprep.subr.bf16.mxu1 %v2141_v26 }
 0x349   : > { %2237 = vmatpush1.bf16.msra.mxu1 %v2140_v51  ;;  %v2096_v35 = vpop.permute.xlu1 %2095  ;;  %v2084_v55 = vpop.permute.xlu0 %2083 }
 0x34a   : > { %v2138_v53 = vsel %vm2133_vm13, %v2084_v55, %v2086_v48 }
 0x34b   : > { %2781 = vrot.lane.b32.xlu1 %v4596_v10, %s3439_s25  ;;  %2281 = vrot.lane.b32.xlu0 %v4269_v15, %s3450_s21 }
 0x34c   : > { %2196 = vmatpush1.bf16.msra.mxu0 %v2138_v53 }
 0x34d   : > { %v2100_v56 = vpop.permute.xlu1 %2099  ;;  %v2098_v57 = vpop.permute.xlu0 %2097 }
 0x34e   : > { %v2143_v4 = vsel %vm2133_vm13, %v2096_v35, %v2098_v57  ;;  %v2144_v30 = vsel %vm2133_vm13, %v2098_v57, %v2100_v56 }
 0x34f   : > { %2293 = vrot.lane.b32.xlu1 %v4314_v46, %s3450_s21  ;;  %2795 = vrot.lane.b32.xlu0 %v4596_v10, %s3440_s26 }
 0x350   : > { %2197 = vmatprep.subr.bf16.mxu0 %v2143_v4 }
 0x351   : > { %v2094_v63 = vpop.permute.xlu1 %2093  ;;  %v2102_v19 = vpop.permute.xlu0 %2101 }
 0x352   : > { %v2142_v25 = vsel %vm2133_vm13, %v2094_v63, %v2096_v35  ;;  %v2145_v29 = vsel %vm2133_vm13, %v2100_v56, %v2102_v19 }
 0x353   : > { %2297 = vrot.lane.b32.xlu1 %v4329_v45, %s3450_s21  ;;  %2295 = vrot.lane.b32.xlu0 %v4317_v60, %s3450_s21 }
 0x354   : > { %2198 = vmatpush1.bf16.msra.mxu0 %v2142_v25  ;;  %2238 = vmatprep.subr.bf16.mxu1 %v2145_v29 }
 0x355   : > { %2239 = vmatpush1.bf16.msra.mxu1 %v2144_v30  ;;  %v2108_v21 = vpop.permute.xlu1 %2107  ;;  %v2106_v24 = vpop.permute.xlu0 %2105 }
 0x356   : > { %v2147_v31 = vsel %vm2133_vm13, %v2106_v24, %v2108_v21 }
 0x357   : > { %2811 = vrot.lane.b32.xlu1 %v4577_v18, %s3441_s27  ;;  %2299 = vrot.lane.b32.xlu0 %v4326_v6, %s3450_s21 }
 0x358   : > { %2199 = vmatprep.subr.bf16.mxu0 %v2147_v31 }
 0x359   : > { %v2112_v32 = vpop.permute.xlu1 %2111  ;;  %v2110_v17 = vpop.permute.xlu0 %2109 }
 0x35a   : > { %v2149_v47 = vsel %vm2133_vm13, %v2110_v17, %v2112_v32  ;;  %v2148_v41 = vsel %vm2133_vm13, %v2108_v21, %v2110_v17 }
 0x35b   : > { %2815 = vrot.lane.b32.xlu1 %v4588_v43, %s3441_s27  ;;  %2813 = vrot.lane.b32.xlu0 %v4575_v16, %s3441_s27 }
 0x35c   : > { %2240 = vmatprep.subr.bf16.mxu1 %v2149_v47 }
 0x35d   : > { %2241 = vmatpush1.bf16.msra.mxu1 %v2148_v41  ;;  %v4771_v33 = vpop.permute.xlu1 %2715  ;;  %v4773_v44 = vpop.permute.xlu0 %2713 }
 0x35f   : > { %2825 = vrot.lane.b32.xlu1 %v4577_v18, %s3442_s28  ;;  %2817 = vrot.lane.b32.xlu0 %v4586_v61, %s3441_s27 }
 0x361   : > { %v4779_v5 = vpop.permute.xlu1 %2719  ;;  %v4781_v48 = vpop.permute.xlu0 %2717 }
 0x363   : > { %2829 = vrot.lane.b32.xlu1 %v4588_v43, %s3442_s28  ;;  %2827 = vrot.lane.b32.xlu0 %v4575_v16, %s3442_s28 }
 0x365   : > { %v4787_v27 = vpop.permute.xlu1 %2711  ;;  %v2104_v50 = vpop.permute.xlu0 %2103 }
 0x366   : > { %v2146_v36 = vsel %vm2133_vm13, %v2104_v50, %v2106_v24 }
 0x367   : > { %2291 = vrot.lane.b32.xlu1 %v4305_v37, %s3450_s21  ;;  %2831 = vrot.lane.b32.xlu0 %v4586_v61, %s3442_s28 }
 0x368   : > { %2200 = vmatpush1.bf16.msra.mxu0 %v2146_v36 }
 0x369   : > { %v2118_v26 = vpop.permute.xlu1 %2117  ;;  %v2116_v51 = vpop.permute.xlu0 %2115 }
 0x36a   : > { %v2151_v35 = vsel %vm2133_vm13, %v2116_v51, %v2118_v26 }
 0x36b   : > { %2823 = vrot.lane.b32.xlu1 %v4596_v10, %s3442_s28  ;;  %2809 = vrot.lane.b32.xlu0 %v4596_v10, %s3441_s27  ;;  %s3451_s27 = smov 22  }
 0x36c   : > { %2201 = vmatprep.subr.bf16.mxu0 %v2151_v35 }
 0x36d   : > { %v2122_v55 = vpop.permute.xlu1 %2121  ;;  %v2120_v53 = vpop.permute.xlu0 %2119 }
 0x36e   : > { %v2153_v56 = vsel %vm2133_vm13, %v2120_v53, %v2122_v55  ;;  %v2152_v57 = vsel %vm2133_vm13, %v2118_v26, %v2120_v53 }
 0x36f   : > { %2305 = vrot.lane.b32.xlu1 %v4350_v2, %s3450_s21  ;;  %2303 = vrot.lane.b32.xlu0 %v4347_v0, %s3450_s21 }
 0x370   : > { %2242 = vmatprep.subr.bf16.mxu1 %v2153_v56 }
 0x371   : > { %2243 = vmatpush1.bf16.msra.mxu1 %v2152_v57  ;;  %v4805_v4 = vpop.permute.xlu1 %2729  ;;  %v4807_v63 = vpop.permute.xlu0 %2727 }
 0x373   : > { %2309 = vrot.lane.b32.xlu1 %v4359_v8, %s3450_s21  ;;  %2307 = vrot.lane.b32.xlu0 %v4362_v62, %s3450_s21 }
 0x375   : > { %v4813_v19 = vpop.permute.xlu1 %2733  ;;  %v4815_v25 = vpop.permute.xlu0 %2731 }
 0x377   : > { %2837 = vrot.lane.b32.xlu1 %v4596_v10, %s3443_s29  ;;  %2301 = vrot.lane.b32.xlu0 %v4338_v52, %s3450_s21 }
 0x379   : > { %v4821_v29 = vpop.permute.xlu1 %2743  ;;  %v4823_v30 = vpop.permute.xlu0 %2741 }
 0x37b   : > { %2841 = vrot.lane.b32.xlu1 %v4575_v16, %s3443_s29  ;;  %2839 = vrot.lane.b32.xlu0 %v4577_v18, %s3443_s29 }
 0x37d   : > { %v4829_v21 = vpop.permute.xlu1 %2747  ;;  %v4831_v24 = vpop.permute.xlu0 %2745 }
 0x37f   : > { %2845 = vrot.lane.b32.xlu1 %v4586_v61, %s3443_s29  ;;  %2843 = vrot.lane.b32.xlu0 %v4588_v43, %s3443_s29 }
 0x381   : > { %v4837_v31 = vpop.permute.xlu1 %2725  ;;  %v2114_v32 = vpop.permute.xlu0 %2113 }
 0x382   : > { %v2150_v17 = vsel %vm2133_vm13, %v2114_v32, %v2116_v51 }
 0x383   : > { %2315 = vrot.lane.b32.xlu1 %v4383_v34, %s3450_s21  ;;  %2313 = vrot.lane.b32.xlu0 %v4380_v39, %s3450_s21 }
 0x384   : > { %2202 = vmatpush1.bf16.msra.mxu0 %v2150_v17  ;;  %v3269_v17 = vld [vmem:[%s5322_s1 + $0x1c] sm:$0xf] }
 0x385   : > { %v2124_v47 = vpop.permute.xlu1 %2123  ;;  %v4844_v41 = vpop.permute.xlu0 %2739 }
 0x387   : > { %2319 = vrot.lane.b32.xlu1 %v4392_v38, %s3450_s21  ;;  %2317 = vrot.lane.b32.xlu0 %v4395_v40, %s3450_s21 }
 0x389   : > { %v2128_v50 = vpop.permute.xlu1 %2127  ;;  %v2126_v36 = vpop.permute.xlu0 %2125 }
 0x38a   : > { %v2154_v26 = vsel %vm2133_vm13, %v2124_v47, %v2126_v36  ;;  %v2155_v51 = vsel %vm2133_vm13, %v2126_v36, %v2128_v50 }
 0x38b   : > { %2323 = vrot.lane.b32.xlu1 %v4413_v42, %s3450_s21  ;;  %2311 = vrot.lane.b32.xlu0 %v4371_v28, %s3450_s21  ;;  %v2182_v35 = vsel %vm344_vm1, %v2154_v26, 0 }
 0x38c   : > { %3270 = vmatprep.subr.msk.bf16.mxu0 %vm344_vm1, %v2155_v51 }
 0x38d   : > { %2204 = vmatpush1.bf16.msra.mxu0 %v2182_v35  ;;  %v2132_v55 = vpop.permute.xlu1 %2131  ;;  %v2130_v53 = vpop.permute.xlu0 %2129 }
 0x38e   : > { %v2156_v56 = vsel %vm2133_vm13, %v2128_v50, %v2130_v53  ;;  %v2157_v57 = vsel %vm2133_vm13, %v2130_v53, %v2132_v55 }
 0x38f   : > { %2327 = vrot.lane.b32.xlu1 %v4428_v59, %s3450_s21  ;;  %2325 = vrot.lane.b32.xlu0 %v4416_v54, %s3450_s21  ;;  %v2188_v32 = vsel %vm344_vm1, %v2156_v56, 0 }
 0x390   : > { %3272 = vmatprep.subr.msk.bf16.mxu1 %vm344_vm1, %v2157_v57  ;;  %3271 = vmatmul.mubr.msk.bf16.vlgmr.msra.gmra.mrb[0].mxu0 %vm426_vm11, %v3269_v17 }
 0x391   : > { %2245 = vmatpush1.bf16.msra.mxu1 %v2188_v32  ;;  %v4870_v47 = vpop.permute.xlu1 %2757  ;;  %v4872_v50 = vpop.permute.xlu0 %2755  ;;  %2433 = vmatprep.mubr.bf16.mxu0 %v5325_v1 }
 0x393   : > { %2321 = vrot.lane.b32.xlu1 %v4404_v49, %s3450_s21  ;;  %2329 = vrot.lane.b32.xlu0 %v4425_v58, %s3450_s21 }
 0x394   : > { %3273 = vmatmul.mubr.msk.bf16.vlgmr.msra.gmra.mrb[0].mxu1 %vm426_vm11, %v3269_v17 }
 0x395   : > { %v4880_v36 = vpop.permute.xlu1 %2761  ;;  %v4882_v26 = vpop.permute.xlu0 %2759  ;;  %2474 = vmatprep.mubr.bf16.mxu1 %v5325_v1 }
 0x397   : > { %2333 = vrot.lane.b32.xlu1 %v4438_v14, %s3450_s21  ;;  %2331 = vrot.lane.b32.xlu0 %v4435_v3, %s3450_s21 }
 0x399   : > { %v4889_v51 = vpop.permute.xlu1 %2771  ;;  %v4891_v35 = vpop.permute.xlu0 %2769 }
 0x39b   : > { %2337 = vrot.lane.b32.xlu1 %v4451_v22, %s3450_s21  ;;  %2335 = vrot.lane.b32.xlu0 %v4447_v20, %s3450_s21 }
 0x39d   : > { %v4897_v55 = vpop.permute.xlu1 %2775  ;;  %v4899_v53 = vpop.permute.xlu0 %2773 }
 0x39f   : > { %2491 = vrot.lane.b32.xlu1 %v4279_v13, %s3451_s27  ;;  %2339 = vrot.lane.b32.xlu0 %v4444_v9, %s3450_s21 }
 0x3a1   : > { %v4905_v56 = vpop.permute.xlu1 %2767  ;;  %v4907_v57 = vpop.permute.xlu0 %2753 }
 0x3a2   : > { %5329 = vst [vmem:[#allocation3_spill] sm:$0xff] %v4907_v57 }
 0x3a3   : > { %2495 = vrot.lane.b32.xlu1 %v4296_v7, %s3451_s27  ;;  %2493 = vrot.lane.b32.xlu0 %v4283_v11, %s3451_s27 }
 0x3a5   : > { %v2286_v32 = vpop.permute.xlu1 %2285  ;;  %v2284_v17 = vpop.permute.xlu0 %2283 }
 0x3a6   : > { %v2343_v1 = vsel %vm2341_vm14, %v2284_v17, %v2286_v32 }
 0x3a7   : > { %2489 = vrot.lane.b32.xlu1 %v4269_v15, %s3451_s27  ;;  %2497 = vrot.lane.b32.xlu0 %v4292_v23, %s3451_s27 }
 0x3a8   : > { %2401 = vmatprep.subr.bf16.mxu0 %v2343_v1 }
 0x3a9   : > { %v2290_v13 = vpop.permute.xlu1 %2289  ;;  %v2288_v12 = vpop.permute.xlu0 %2287 }
 0x3aa   : > { %v2345_v57 = vsel %vm2341_vm14, %v2288_v12, %v2290_v13  ;;  %v2344_v7 = vsel %vm2341_vm14, %v2286_v32, %v2288_v12 }
 0x3ab   : > { %2503 = vrot.lane.b32.xlu1 %v4317_v60, %s3451_s27  ;;  %2501 = vrot.lane.b32.xlu0 %v4314_v46, %s3451_s27 }
 0x3ac   : > { %2442 = vmatprep.subr.bf16.mxu1 %v2345_v57 }
 0x3ad   : > { %2443 = vmatpush1.bf16.msra.mxu1 %v2344_v7  ;;  %v4924_v11 = vpop.permute.xlu1 %2785  ;;  %v4926_v15 = vpop.permute.xlu0 %2783  ;;  %v2723_v7 = vsel %vm204_vm0, %v4771_v33, %v4781_v48 }
 0x3af   : > { %2507 = vrot.lane.b32.xlu1 %v4326_v6, %s3451_s27  ;;  %2505 = vrot.lane.b32.xlu0 %v4329_v45, %s3451_s27 }
 0x3b1   : > { %v4932_v1 = vpop.permute.xlu1 %2789  ;;  %v4934_v12 = vpop.permute.xlu0 %2787 }
 0x3b3   : > { %2511 = vrot.lane.b32.xlu1 %v4347_v0, %s3451_s27  ;;  %2499 = vrot.lane.b32.xlu0 %v4305_v37, %s3451_s27 }
 0x3b5   : > { %v4940_v23 = vpop.permute.xlu1 %2799  ;;  %v4942_v46 = vpop.permute.xlu0 %2797 }
 0x3b7   : > { %2515 = vrot.lane.b32.xlu1 %v4362_v62, %s3451_s27  ;;  %2513 = vrot.lane.b32.xlu0 %v4350_v2, %s3451_s27 }
 0x3b9   : > { %v4948_v60 = vpop.permute.xlu1 %2803  ;;  %v4950_v6 = vpop.permute.xlu0 %2801 }
 0x3bb   : > { %2509 = vrot.lane.b32.xlu1 %v4338_v52, %s3451_s27  ;;  %2517 = vrot.lane.b32.xlu0 %v4359_v8, %s3451_s27 }
 0x3bd   : > { %v4956_v37 = vpop.permute.xlu1 %2781  ;;  %v2282_v45 = vpop.permute.xlu0 %2281 }
 0x3be   : > { %v2342_v0 = vsel %vm2341_vm14, %v2282_v45, %v2284_v17  ;;  %v2724_v45 = vsel %vm204_vm0, %v4781_v48, %v4779_v5  ;;  %v2721_v48 = vsel %vm204_vm0, %v4787_v27, %v4773_v44 }
 0x3bf   : > { %2523 = vrot.lane.b32.xlu1 %v4383_v34, %s3451_s27  ;;  %2521 = vrot.lane.b32.xlu0 %v4380_v39, %s3451_s27 }
 0x3c0   : > { %2402 = vmatpush1.bf16.msra.mxu0 %v2342_v0 }
 0x3c1   : > { %v2294_v2 = vpop.permute.xlu1 %2293  ;;  %v4963_v62 = vpop.permute.xlu0 %2795 }
 0x3c3   : > { %2527 = vrot.lane.b32.xlu1 %v4392_v38, %s3451_s27  ;;  %2525 = vrot.lane.b32.xlu0 %v4395_v40, %s3451_s27 }
 0x3c5   : > { %v2298_v52 = vpop.permute.xlu1 %2297  ;;  %v2296_v8 = vpop.permute.xlu0 %2295 }
 0x3c6   : > { %v2347_v57 = vsel %vm2341_vm14, %v2294_v2, %v2296_v8  ;;  %v2348_v38 = vsel %vm2341_vm14, %v2296_v8, %v2298_v52 }
 0x3c7   : > { %2531 = vrot.lane.b32.xlu1 %v4413_v42, %s3451_s27  ;;  %2519 = vrot.lane.b32.xlu0 %v4371_v28, %s3451_s27 }
 0x3c8   : > { %2403 = vmatprep.subr.bf16.mxu0 %v2347_v57 }
 0x3c9   : > { %v4974_v39 = vpop.permute.xlu1 %2811  ;;  %v2300_v34 = vpop.permute.xlu0 %2299 }
 0x3ca   : > { %v2349_v32 = vsel %vm2341_vm14, %v2298_v52, %v2300_v34 }
 0x3cb   : > { %2535 = vrot.lane.b32.xlu1 %v4428_v59, %s3451_s27  ;;  %2533 = vrot.lane.b32.xlu0 %v4416_v54, %s3451_s27 }
 0x3cc   : > { %2444 = vmatprep.subr.bf16.mxu1 %v2349_v32  ;;  %v2752_v32 = vsel %vm234_vm3, %v4831_v24, %v4829_v21 }
 0x3cd   : > { %2445 = vmatpush1.bf16.msra.mxu1 %v2348_v38  ;;  %v4982_v40 = vpop.permute.xlu1 %2815  ;;  %v4984_v42 = vpop.permute.xlu0 %2813 }
 0x3cf   : > { %2529 = vrot.lane.b32.xlu1 %v4404_v49, %s3451_s27  ;;  %2537 = vrot.lane.b32.xlu0 %v4425_v58, %s3451_s27  ;;  %v2722_v49 = vsel %vm204_vm0, %v4773_v44, %v4771_v33  ;;  %v2859_v33 = vsel %vm344_vm1, %v4575_v16, %v2723_v7  ;;  %v2750_v16 = vsel %vm234_vm3, %v4823_v30, %v4821_v29  ;;  %vm2549_vm0 = vcmask 179200  }
 0x3d0   : > { %v2751_v44 = vsel %vm234_vm3, %v4821_v29, %v4831_v24  ;;  %v2735_v7 = vsel %vm219_vm2, %v4837_v31, %v4807_v63  ;;  %v2765_v31 = vsel %vm249_vm4, %v4870_v47, %v4882_v26 }
 0x3d1   : > { %v4990_v28 = vpop.permute.xlu1 %2825  ;;  %v4992_v59 = vpop.permute.xlu0 %2817 }
 0x3d3   : > { %2541 = vrot.lane.b32.xlu1 %v4438_v14, %s3451_s27  ;;  %2539 = vrot.lane.b32.xlu0 %v4435_v3, %s3451_s27  ;;  %v2856_v3 = vsel %vm344_vm1, %v4577_v18, %v2722_v49  ;;  %v2862_v18 = vsel %vm344_vm1, %v4588_v43, %v2724_v45  ;;  %v2865_v43 = vsel %vm344_vm1, %v4586_v61, %v4779_v5 }
 0x3d4   : > { %v2737_v61 = vsel %vm219_vm2, %v4805_v4, %v4815_v25 }
 0x3d5   : > { %v4998_v54 = vpop.permute.xlu1 %2829  ;;  %v5000_v17 = vpop.permute.xlu0 %2827  ;;  %v2874_v57 = vsel %vm344_vm1, %v2737_v61, %v2751_v44 }
 0x3d7   : > { %2545 = vrot.lane.b32.xlu1 %v4451_v22, %s3451_s27  ;;  %2543 = vrot.lane.b32.xlu0 %v4447_v20, %s3451_s27 }
 0x3d9   : > { %v2292_v58 = vpop.permute.xlu1 %2291  ;;  %v5009_v13 = vpop.permute.xlu0 %2831 }
 0x3da   : > { %v2346_v14 = vsel %vm2341_vm14, %v2292_v58, %v2294_v2  ;;  %v2853_v2 = vsel %vm344_vm1, %v4596_v10, %v2721_v48  ;;  %v2736_v10 = vsel %vm219_vm2, %v4807_v63, %v4805_v4  ;;  %v2738_v4 = vsel %vm219_vm2, %v4815_v25, %v4813_v19 }
 0x3db   : > { %2955 = vrot.lane.b32.xlu1 %v2856_v3, %s3437_s23  ;;  %2547 = vrot.lane.b32.xlu0 %v4444_v9, %s3451_s27  ;;  %v2871_v29 = vsel %vm344_vm1, %v2736_v10, %v2750_v16  ;;  %v2877_v24 = vsel %vm344_vm1, %v2738_v4, %v2752_v32  ;;  %v2749_v3 = vsel %vm234_vm3, %v4844_v41, %v4823_v30 }
 0x3dc   : > { %2404 = vmatpush1.bf16.msra.mxu0 %v2346_v14  ;;  %v2880_v14 = vsel %vm344_vm1, %v4813_v19, %v4829_v21  ;;  %v2778_v25 = vsel %vm264_vm5, %v4891_v35, %v4889_v51  ;;  %v2764_v19 = vsel %vm249_vm4, %v4872_v50, %v4870_v47  ;;  %v2868_v45 = vsel %vm344_vm1, %v2735_v7, %v2749_v3 }
 0x3dd   : > { %v5023_v20 = vpop.permute.xlu1 %2823  ;;  %v5025_v22 = vpop.permute.xlu0 %2809  ;;  %v2886_v41 = vsel %vm344_vm1, %v2764_v19, %v2778_v25  ;;  %v2780_v63 = vsel %vm264_vm5, %v4899_v53, %v4897_v55  ;;  %v2895_v16 = vsel %vm344_vm1, %v4880_v36, %v4897_v55  ;;  %v2805_v4 = vsel %vm294_vm7, %v4963_v62, %v4942_v46 }
 0x3de   : > { %v2822_v3 = vsel %vm309_vm8, %v4982_v40, %v4992_v59 }
 0x3df   : > { %2959 = vrot.lane.b32.xlu1 %v2862_v18, %s3437_s23  ;;  %2957 = vrot.lane.b32.xlu0 %v2859_v33, %s3437_s23  ;;  %v2779_v18 = vsel %vm264_vm5, %v4889_v51, %v4899_v53  ;;  %v2766_v33 = vsel %vm249_vm4, %v4882_v26, %v4880_v36  ;;  %v2793_v36 = vsel %vm279_vm6, %v4924_v11, %v4934_v12 }
 0x3e0   : > { %v2892_v51 = vsel %vm344_vm1, %v2766_v33, %v2780_v63  ;;  %v2889_v53 = vsel %vm344_vm1, %v2765_v31, %v2779_v18  ;;  %v2925_v31 = vsel %vm344_vm1, %v4992_v59, %v5009_v13 }
 0x3e1   : > { %v2306_v9 = vpop.permute.xlu1 %2305  ;;  %v2304_v0 = vpop.permute.xlu0 %2303 }
 0x3e2   : > { %v2351_v52 = vsel %vm2341_vm14, %v2304_v0, %v2306_v9 }
 0x3e3   : > { %2953 = vrot.lane.b32.xlu1 %v2853_v2, %s3437_s23  ;;  %2961 = vrot.lane.b32.xlu0 %v2865_v43, %s3437_s23  ;;  %v5330_v2 = vld [vmem:[#allocation3_spill] sm:$0xff] }
 0x3e4   : > { %2405 = vmatprep.subr.bf16.mxu0 %v2351_v52  ;;  %v2763_v47 = vsel %vm249_vm4, %v5330_v2, %v4872_v50  ;;  %v2807_v50 = vsel %vm294_vm7, %v4940_v23, %v4950_v6 }
 0x3e5   : > { %v2310_v5 = vpop.permute.xlu1 %2309  ;;  %v2308_v27 = vpop.permute.xlu0 %2307 }
 0x3e6   : > { %v2352_v8 = vsel %vm2341_vm14, %v2306_v9, %v2308_v27  ;;  %v2353_v34 = vsel %vm2341_vm14, %v2308_v27, %v2310_v5 }
 0x3e7   : > { %2967 = vrot.lane.b32.xlu1 %v2874_v57, %s3437_s23  ;;  %2965 = vrot.lane.b32.xlu0 %v2871_v29, %s3437_s23 }
 0x3e8   : > { %2446 = vmatprep.subr.bf16.mxu1 %v2353_v34 }
 0x3e9   : > { %2447 = vmatpush1.bf16.msra.mxu1 %v2352_v8  ;;  %v5068_v38 = vpop.permute.xlu1 %2837  ;;  %v2302_v49 = vpop.permute.xlu0 %2301  ;;  %v2808_v8 = vsel %vm294_vm7, %v4950_v6, %v4948_v60  ;;  %v2910_v6 = vsel %vm344_vm1, %v4932_v1, %v4948_v60 }
 0x3ea   : > { %v2350_v58 = vsel %vm2341_vm14, %v2302_v49, %v2304_v0  ;;  %v2777_v0 = vsel %vm264_vm5, %v4905_v56, %v4891_v35  ;;  %v2806_v35 = vsel %vm294_vm7, %v4942_v46, %v4940_v23  ;;  %v2792_v56 = vsel %vm279_vm6, %v4926_v15, %v4924_v11 }
 0x3eb   : > { %2971 = vrot.lane.b32.xlu1 %v2880_v14, %s3437_s23  ;;  %2969 = vrot.lane.b32.xlu0 %v2877_v24, %s3437_s23  ;;  %v2883_v52 = vsel %vm344_vm1, %v2763_v47, %v2777_v0  ;;  %v2901_v5 = vsel %vm344_vm1, %v2792_v56, %v2806_v35  ;;  %v2904_v23 = vsel %vm344_vm1, %v2793_v36, %v2807_v50 }
 0x3ec   : > { %2406 = vmatpush1.bf16.msra.mxu0 %v2350_v58  ;;  %v2794_v11 = vsel %vm279_vm6, %v4934_v12, %v4932_v1  ;;  %v2834_v49 = vsel %vm324_vm9, %v4990_v28, %v5000_v17  ;;  %v2791_v12 = vsel %vm279_vm6, %v4956_v37, %v4926_v15  ;;  %v2820_v1 = vsel %vm309_vm8, %v4974_v39, %v4984_v42 }
 0x3ed   : > { %v5089_v21 = vpop.permute.xlu1 %2841  ;;  %v5091_v30 = vpop.permute.xlu0 %2839  ;;  %v2907_v32 = vsel %vm344_vm1, %v2794_v11, %v2808_v8  ;;  %v2898_v46 = vsel %vm344_vm1, %v2791_v12, %v2805_v4  ;;  %v2916_v62 = vsel %vm344_vm1, %v2820_v1, %v2834_v49  ;;  %v2835_v24 = vsel %vm324_vm9, %v5000_v17, %v4998_v54 }
 0x3ee   : > { %v2836_v15 = vsel %vm324_vm9, %v4998_v54, %v5009_v13  ;;  %v2821_v37 = vsel %vm309_vm8, %v4984_v42, %v4982_v40  ;;  %v2819_v42 = vsel %vm309_vm8, %v5025_v22, %v4974_v39  ;;  %v2847_v33 = vsel %vm339_vm10, %v5068_v38, %v5091_v30  ;;  %v3274_v38 = vld [vmem:[%s5322_s1 + $0x20] sm:$0xf] }
 0x3ef   : > { %2975 = vrot.lane.b32.xlu1 %v2886_v41, %s3437_s23  ;;  %2963 = vrot.lane.b32.xlu0 %v2868_v45, %s3437_s23  ;;  %v2919_v19 = vsel %vm344_vm1, %v2821_v37, %v2835_v24  ;;  %v2922_v54 = vsel %vm344_vm1, %v2822_v3, %v2836_v15  ;;  %v2833_v45 = vsel %vm324_vm9, %v5023_v20, %v4990_v28 }
 0x3f0   : > { %v2913_v28 = vsel %vm344_vm1, %v2819_v42, %v2833_v45 }
 0x3f1   : > { %v5109_v48 = vpop.permute.xlu1 %2845  ;;  %v5111_v9 = vpop.permute.xlu0 %2843 }
 0x3f2   : > { %v2850_v47 = vsel %vm339_vm10, %v5111_v9, %v5109_v48 }
 0x3f3   : > { %2979 = vrot.lane.b32.xlu1 %v2892_v51, %s3437_s23  ;;  %2977 = vrot.lane.b32.xlu0 %v2889_v53, %s3437_s23  ;;  %v2848_v51 = vsel %vm339_vm10, %v5091_v30, %v5089_v21  ;;  %v2849_v30 = vsel %vm339_vm10, %v5089_v21, %v5111_v9 }
 0x3f5   : > { %v2316_v26 = vpop.permute.xlu1 %2315  ;;  %v2314_v43 = vpop.permute.xlu0 %2313 }
 0x3f6   : > { %v2355_v44 = vsel %vm2341_vm14, %v2314_v43, %v2316_v26 }
 0x3f7   : > { %2973 = vrot.lane.b32.xlu1 %v2883_v52, %s3437_s23  ;;  %2981 = vrot.lane.b32.xlu0 %v2895_v16, %s3437_s23  ;;  %v5331_v16 = vmov 0  }
 0x3f8   : > { %2407 = vmatprep.subr.bf16.mxu0 %v2355_v44 }
 0x3f9   : > { %v2320_v55 = vpop.permute.xlu1 %2319  ;;  %v2318_v10 = vpop.permute.xlu0 %2317 }
 0x3fa   : > { %v2356_v61 = vsel %vm2341_vm14, %v2316_v26, %v2318_v10  ;;  %v2357_v27 = vsel %vm2341_vm14, %v2318_v10, %v2320_v55 }
 0x3fb   : > { %2985 = vrot.lane.b32.xlu0 %v2901_v5, %s3437_s23  ;;  %2987 = vrot.lane.b32.xlu1 %v2904_v23, %s3437_s23 }
 0x3fc   : > { %2448 = vmatprep.subr.bf16.mxu1 %v2357_v27 }
 0x3fd   : > { %2449 = vmatpush1.bf16.msra.mxu1 %v2356_v61  ;;  %v2324_v57 = vpop.permute.xlu1 %2323  ;;  %v2312_v29 = vpop.permute.xlu0 %2311 }
 0x3fe   : > { %v2354_v34 = vsel %vm2341_vm14, %v2312_v29, %v2314_v43 }
 0x3ff   : > { %2989 = vrot.lane.b32.xlu0 %v2907_v32, %s3437_s23  ;;  %2991 = vrot.lane.b32.xlu1 %v2910_v6, %s3437_s23 }
 0x400   : > { %2408 = vmatpush1.bf16.msra.mxu0 %v2354_v34 }
 0x401   : > { %v2328_v60 = vpop.permute.xlu1 %2327  ;;  %v2326_v58 = vpop.permute.xlu0 %2325 }
 0x402   : > { %v2359_v14 = vsel %vm2341_vm14, %v2324_v57, %v2326_v58  ;;  %v2360_v40 = vsel %vm2341_vm14, %v2326_v58, %v2328_v60 }
 0x403   : > { %2983 = vrot.lane.b32.xlu0 %v2898_v46, %s3437_s23  ;;  %2995 = vrot.lane.b32.xlu1 %v2916_v62, %s3437_s23 }
 0x404   : > { %2409 = vmatprep.subr.bf16.mxu0 %v2359_v14 }
 0x405   : > { %v2322_v25 = vpop.permute.xlu1 %2321  ;;  %v2330_v7 = vpop.permute.xlu0 %2329 }
 0x406   : > { %v2358_v17 = vsel %vm2341_vm14, %v2322_v25, %v2324_v57  ;;  %v2361_v41 = vsel %vm2341_vm14, %v2328_v60, %v2330_v7 }
 0x407   : > { %2997 = vrot.lane.b32.xlu0 %v2919_v19, %s3437_s23  ;;  %2999 = vrot.lane.b32.xlu1 %v2922_v54, %s3437_s23 }
 0x408   : > { %2410 = vmatpush1.bf16.msra.mxu0 %v2358_v17  ;;  %2450 = vmatprep.subr.bf16.mxu1 %v2361_v41 }
 0x409   : > { %2451 = vmatpush1.bf16.msra.mxu1 %v2360_v40  ;;  %v2334_v18 = vpop.permute.xlu1 %2333  ;;  %v2332_v63 = vpop.permute.xlu0 %2331 }
 0x40a   : > { %v2362_v39 = vsel %vm2341_vm14, %v2332_v63, %v2334_v18 }
 0x40b   : > { %3001 = vrot.lane.b32.xlu0 %v2925_v31, %s3437_s23  ;;  %2993 = vrot.lane.b32.xlu1 %v2913_v28, %s3437_s23  ;;  %v2390_v13 = vsel %vm344_vm1, %v2362_v39, 0 }
 0x40d   : > { %v2338_v20 = vpop.permute.xlu1 %2337  ;;  %v2336_v22 = vpop.permute.xlu0 %2335 }
 0x40e   : > { %v2363_v59 = vsel %vm2341_vm14, %v2334_v18, %v2336_v22  ;;  %v2364_v53 = vsel %vm2341_vm14, %v2336_v22, %v2338_v20 }
 0x40f   : > { %3005 = vrot.lane.b32.xlu1 %v2848_v51, %s3437_s23  ;;  %3003 = vrot.lane.b32.xlu0 %v2847_v33, %s3437_s23  ;;  %v2396_v43 = vsel %vm344_vm1, %v2364_v53, 0  ;;  %v3279_v51 = vld [vmem:[%s5322_s1 + $0x24] sm:$0xf] }
 0x410   : > { %3275 = vmatprep.subr.msk.bf16.mxu0 %vm344_vm1, %v2363_v59 }
 0x411   : > { %2412 = vmatpush1.bf16.msra.mxu0 %v2390_v13  ;;  %v2492_v0 = vpop.permute.xlu1 %2491  ;;  %v2340_v2 = vpop.permute.xlu0 %2339 }
 0x412   : > { %v2365_v26 = vsel %vm2341_vm14, %v2338_v20, %v2340_v2 }
 0x413   : > { %3009 = vrot.lane.b32.xlu1 %v2850_v47, %s3437_s23  ;;  %3007 = vrot.lane.b32.xlu0 %v2849_v30, %s3437_s23 }
 0x414   : > { %3277 = vmatprep.subr.msk.bf16.mxu1 %vm344_vm1, %v2365_v26  ;;  %3276 = vmatmul.mubr.msk.bf16.vlgmr.msra.gmra.mrb[0].mxu0 %vm426_vm11, %v3274_v38 }
 0x415   : > { %2453 = vmatpush1.bf16.msra.mxu1 %v2396_v43  ;;  %v2496_v52 = vpop.permute.xlu1 %2495  ;;  %v2494_v21 = vpop.permute.xlu0 %2493  ;;  %2641 = vmatprep.mubr.bf16.mxu0 %v5331_v16 }
 0x416   : > { %v2551_v9 = vsel %vm2549_vm0, %v2492_v0, %v2494_v21  ;;  %v2552_v36 = vsel %vm2549_vm0, %v2494_v21, %v2496_v52 }
 0x417   : > { %3011 = vrot.lane.b32.xlu0 %v5109_v48, %s3437_s23  ;;  %2609 = vmatprep.subr.bf16.mxu0 %v2551_v9 }
 0x418   : > { %3278 = vmatmul.mubr.msk.bf16.vlgmr.msra.gmra.mrb[0].mxu1 %vm426_vm11, %v3274_v38 }
 0x419   : > { %v2490_v44 = vpop.permute.xlu1 %2489  ;;  %v2498_v35 = vpop.permute.xlu0 %2497  ;;  %2682 = vmatprep.mubr.bf16.mxu1 %v5331_v16 }
 0x41a   : > { %v2550_v50 = vsel %vm2549_vm0, %v2490_v44, %v2492_v0  ;;  %v2553_v56 = vsel %vm2549_vm0, %v2496_v52, %v2498_v35 }
 0x41b   : > { %2610 = vmatpush1.bf16.msra.mxu0 %v2550_v50  ;;  %2650 = vmatprep.subr.bf16.mxu1 %v2553_v56 }
 0x41c   : > { %2651 = vmatpush1.bf16.msra.mxu1 %v2552_v36 }
 0x41d   : > { %v2504_v55 = vpop.permute.xlu1 %2503  ;;  %v2502_v10 = vpop.permute.xlu0 %2501 }
 0x41e   : > { %v2555_v48 = vsel %vm2549_vm0, %v2502_v10, %v2504_v55 }
 0x41f   : > { %2611 = vmatprep.subr.bf16.mxu0 %v2555_v48 }
 0x421   : > { %v2508_v61 = vpop.permute.xlu1 %2507  ;;  %v2506_v5 = vpop.permute.xlu0 %2505 }
 0x422   : > { %v2556_v23 = vsel %vm2549_vm0, %v2504_v55, %v2506_v5  ;;  %v2557_v27 = vsel %vm2549_vm0, %v2506_v5, %v2508_v61 }
 0x423   : > { %2652 = vmatprep.subr.bf16.mxu1 %v2557_v27 }
 0x424   : > { %2653 = vmatpush1.bf16.msra.mxu1 %v2556_v23 }
 0x425   : > { %v2512_v8 = vpop.permute.xlu1 %2511  ;;  %v2500_v11 = vpop.permute.xlu0 %2499 }
 0x426   : > { %v2554_v57 = vsel %vm2549_vm0, %v2500_v11, %v2502_v10 }
 0x427   : > { %2612 = vmatpush1.bf16.msra.mxu0 %v2554_v57 }
 0x429   : > { %v2516_v29 = vpop.permute.xlu1 %2515  ;;  %v2514_v34 = vpop.permute.xlu0 %2513 }
 0x42a   : > { %v2559_v32 = vsel %vm2549_vm0, %v2512_v8, %v2514_v34  ;;  %v2560_v1 = vsel %vm2549_vm0, %v2514_v34, %v2516_v29 }
 0x42b   : > { %2613 = vmatprep.subr.bf16.mxu0 %v2559_v32 }
 0x42d   : > { %v2510_v6 = vpop.permute.xlu1 %2509  ;;  %v2518_v4 = vpop.permute.xlu0 %2517 }
 0x42e   : > { %v2558_v49 = vsel %vm2549_vm0, %v2510_v6, %v2512_v8  ;;  %v2561_v12 = vsel %vm2549_vm0, %v2516_v29, %v2518_v4 }
 0x42f   : > { %2614 = vmatpush1.bf16.msra.mxu0 %v2558_v49  ;;  %2654 = vmatprep.subr.bf16.mxu1 %v2561_v12 }
 0x430   : > { %2655 = vmatpush1.bf16.msra.mxu1 %v2560_v1 }
 0x431   : > { %v2524_v60 = vpop.permute.xlu1 %2523  ;;  %v2522_v58 = vpop.permute.xlu0 %2521 }
 0x432   : > { %v2563_v46 = vsel %vm2549_vm0, %v2522_v58, %v2524_v60 }
 0x433   : > { %2615 = vmatprep.subr.bf16.mxu0 %v2563_v46 }
 0x435   : > { %v2528_v62 = vpop.permute.xlu1 %2527  ;;  %v2526_v14 = vpop.permute.xlu0 %2525 }
 0x436   : > { %v2564_v24 = vsel %vm2549_vm0, %v2524_v60, %v2526_v14  ;;  %v2565_v15 = vsel %vm2549_vm0, %v2526_v14, %v2528_v62 }
 0x437   : > { %2656 = vmatprep.subr.bf16.mxu1 %v2565_v15 }
 0x438   : > { %2657 = vmatpush1.bf16.msra.mxu1 %v2564_v24 }
 0x439   : > { %v2532_v37 = vpop.permute.xlu1 %2531  ;;  %v2520_v3 = vpop.permute.xlu0 %2519 }
 0x43a   : > { %v2562_v25 = vsel %vm2549_vm0, %v2520_v3, %v2522_v58 }
 0x43b   : > { %2616 = vmatpush1.bf16.msra.mxu0 %v2562_v25 }
 0x43d   : > { %v2536_v7 = vpop.permute.xlu1 %2535  ;;  %v2534_v17 = vpop.permute.xlu0 %2533 }
 0x43e   : > { %v2567_v19 = vsel %vm2549_vm0, %v2532_v37, %v2534_v17  ;;  %v2568_v40 = vsel %vm2549_vm0, %v2534_v17, %v2536_v7 }
 0x43f   : > { %2617 = vmatprep.subr.bf16.mxu0 %v2567_v19 }
 0x441   : > { %v2530_v54 = vpop.permute.xlu1 %2529  ;;  %v2538_v41 = vpop.permute.xlu0 %2537 }
 0x442   : > { %v2566_v45 = vsel %vm2549_vm0, %v2530_v54, %v2532_v37  ;;  %v2569_v42 = vsel %vm2549_vm0, %v2536_v7, %v2538_v41 }
 0x443   : > { %2618 = vmatpush1.bf16.msra.mxu0 %v2566_v45  ;;  %2658 = vmatprep.subr.bf16.mxu1 %v2569_v42 }
 0x444   : > { %2659 = vmatpush1.bf16.msra.mxu1 %v2568_v40 }
 0x445   : > { %v2542_v18 = vpop.permute.xlu1 %2541  ;;  %v2540_v63 = vpop.permute.xlu0 %2539 }
 0x446   : > { %v2570_v31 = vsel %vm2549_vm0, %v2540_v63, %v2542_v18  ;;  %v3289_v63 = vld [vmem:[%s5322_s1 + $0x28] sm:$0xf] }
 0x447   : > { %v2598_v22 = vsel %vm344_vm1, %v2570_v31, 0 }
 0x449   : > { %v2546_v28 = vpop.permute.xlu1 %2545  ;;  %v2544_v39 = vpop.permute.xlu0 %2543 }
 0x44a   : > { %v2571_v20 = vsel %vm2549_vm0, %v2542_v18, %v2544_v39  ;;  %v2572_v33 = vsel %vm2549_vm0, %v2544_v39, %v2546_v28 }
 0x44b   : > { %3280 = vmatprep.subr.msk.bf16.mxu0 %vm344_vm1, %v2571_v20  ;;  %v2604_v0 = vsel %vm344_vm1, %v2572_v33, 0 }
 0x44c   : > { %2620 = vmatpush1.bf16.msra.mxu0 %v2598_v22  ;;  %v5332_v22 = vld [vmem:[#allocation2_spill] sm:$0xff] }
 0x44d   : > { %v2956_v59 = vpop.permute.xlu1 %2955  ;;  %v2548_v13 = vpop.permute.xlu0 %2547 }
 0x44e   : > { %v2573_v53 = vsel %vm2549_vm0, %v2546_v28, %v2548_v13 }
 0x44f   : > { %3282 = vmatprep.subr.msk.bf16.mxu1 %vm344_vm1, %v2573_v53  ;;  %3281 = vmatmul.mubr.msk.bf16.vlgmr.msra.gmra.mrb[0].mxu0 %vm426_vm11, %v3279_v51 }
 0x450   : > { %2661 = vmatpush1.bf16.msra.mxu1 %v2604_v0  ;;  %3104 = vmatprep.mubr.bf16.mxu0 %v5331_v16 }
 0x451   : > { %v2960_v2 = vpop.permute.xlu1 %2959  ;;  %v2958_v38 = vpop.permute.xlu0 %2957 }
 0x452   : > { %v3014_v30 = vsel %vm249_vm4, %v2956_v59, %v2958_v38  ;;  %v3015_v21 = vsel %vm249_vm4, %v2958_v38, %v2960_v2 }
 0x453   : > { %3072 = vmatprep.subr.bf16.mxu0 %v3014_v30  ;;  %3283 = vmatmul.mubr.msk.bf16.vlgmr.msra.gmra.mrb[0].mxu1 %vm426_vm11, %v3279_v51 }
 0x454   : > { %3145 = vmatprep.mubr.bf16.mxu1 %v5331_v16 }
 0x455   : > { %v2954_v47 = vpop.permute.xlu1 %2953  ;;  %v2962_v26 = vpop.permute.xlu0 %2961 }
 0x456   : > { %v3013_v43 = vsel %vm249_vm4, %v2954_v47, %v2956_v59  ;;  %v3016_v52 = vsel %vm249_vm4, %v2960_v2, %v2962_v26 }
 0x457   : > { %3073 = vmatpush1.bf16.msra.mxu0 %v3013_v43  ;;  %3113 = vmatprep.subr.bf16.mxu1 %v3016_v52 }
 0x458   : > { %3114 = vmatpush1.bf16.msra.mxu1 %v3015_v21 }
 0x459   : > { %v2968_v9 = vpop.permute.xlu1 %2967  ;;  %v2966_v44 = vpop.permute.xlu0 %2965 }
 0x45a   : > { %v3018_v35 = vsel %vm249_vm4, %v2966_v44, %v2968_v9 }
 0x45b   : > { %3074 = vmatprep.subr.bf16.mxu0 %v3018_v35 }
 0x45d   : > { %v2972_v50 = vpop.permute.xlu1 %2971  ;;  %v2970_v56 = vpop.permute.xlu0 %2969 }
 0x45e   : > { %v3019_v16 = vsel %vm249_vm4, %v2968_v9, %v2970_v56  ;;  %v3020_v36 = vsel %vm249_vm4, %v2970_v56, %v2972_v50 }
 0x45f   : > { %3115 = vmatprep.subr.bf16.mxu1 %v3020_v36 }
 0x460   : > { %3116 = vmatpush1.bf16.msra.mxu1 %v3019_v16 }
 0x461   : > { %v2976_v55 = vpop.permute.xlu1 %2975  ;;  %v2964_v10 = vpop.permute.xlu0 %2963 }
 0x462   : > { %v3017_v48 = vsel %vm249_vm4, %v2964_v10, %v2966_v44 }
 0x463   : > { %3075 = vmatpush1.bf16.msra.mxu0 %v3017_v48 }
 0x465   : > { %v2980_v61 = vpop.permute.xlu1 %2979  ;;  %v2978_v5 = vpop.permute.xlu0 %2977 }
 0x466   : > { %v3022_v23 = vsel %vm249_vm4, %v2976_v55, %v2978_v5  ;;  %v3023_v29 = vsel %vm249_vm4, %v2978_v5, %v2980_v61 }
 0x467   : > { %3076 = vmatprep.subr.bf16.mxu0 %v3022_v23 }
 0x469   : > { %v2974_v27 = vpop.permute.xlu1 %2973  ;;  %v2982_v8 = vpop.permute.xlu0 %2981 }
 0x46a   : > { %v3021_v11 = vsel %vm249_vm4, %v2974_v27, %v2976_v55  ;;  %v3024_v57 = vsel %vm249_vm4, %v2980_v61, %v2982_v8 }
 0x46b   : > { %3077 = vmatpush1.bf16.msra.mxu0 %v3021_v11  ;;  %3117 = vmatprep.subr.bf16.mxu1 %v3024_v57 }
 0x46c   : > { %3118 = vmatpush1.bf16.msra.mxu1 %v3023_v29 }
 0x46d   : > { %v2988_v34 = vpop.permute.xlu1 %2987  ;;  %v2986_v32 = vpop.permute.xlu0 %2985 }
 0x46e   : > { %v3026_v6 = vsel %vm249_vm4, %v2986_v32, %v2988_v34 }
 0x46f   : > { %3078 = vmatprep.subr.bf16.mxu0 %v3026_v6 }
 0x471   : > { %v2992_v4 = vpop.permute.xlu1 %2991  ;;  %v2990_v49 = vpop.permute.xlu0 %2989 }
 0x472   : > { %v3027_v12 = vsel %vm249_vm4, %v2988_v34, %v2990_v49  ;;  %v3028_v1 = vsel %vm249_vm4, %v2990_v49, %v2992_v4 }
 0x473   : > { %3119 = vmatprep.subr.bf16.mxu1 %v3028_v1 }
 0x474   : > { %3120 = vmatpush1.bf16.msra.mxu1 %v3027_v12 }
 0x475   : > { %v2996_v60 = vpop.permute.xlu1 %2995  ;;  %v2984_v58 = vpop.permute.xlu0 %2983 }
 0x476   : > { %v3025_v46 = vsel %vm249_vm4, %v2984_v58, %v2986_v32 }
 0x477   : > { %3079 = vmatpush1.bf16.msra.mxu0 %v3025_v46 }
 0x479   : > { %v3000_v62 = vpop.permute.xlu1 %2999  ;;  %v2998_v14 = vpop.permute.xlu0 %2997 }
 0x47a   : > { %v3030_v24 = vsel %vm249_vm4, %v2996_v60, %v2998_v14  ;;  %v3031_v7 = vsel %vm249_vm4, %v2998_v14, %v3000_v62 }
 0x47b   : > { %3080 = vmatprep.subr.bf16.mxu0 %v3030_v24 }
 0x47d   : > { %v2994_v15 = vpop.permute.xlu1 %2993  ;;  %v3002_v37 = vpop.permute.xlu0 %3001 }
 0x47e   : > { %v3029_v3 = vsel %vm249_vm4, %v2994_v15, %v2996_v60  ;;  %v3032_v25 = vsel %vm249_vm4, %v3000_v62, %v3002_v37 }
 0x47f   : > { %3081 = vmatpush1.bf16.msra.mxu0 %v3029_v3  ;;  %3121 = vmatprep.subr.bf16.mxu1 %v3032_v25 }
 0x480   : > { %3122 = vmatpush1.bf16.msra.mxu1 %v3031_v7 }
 0x481   : > { %v3006_v17 = vpop.permute.xlu1 %3005  ;;  %v3004_v19 = vpop.permute.xlu0 %3003 }
 0x482   : > { %v3033_v54 = vsel %vm249_vm4, %v3004_v19, %v3006_v17 }
 0x483   : > { %v3061_v40 = vsel %vm344_vm1, %v3033_v54, 0 }
 0x485   : > { %v3010_v41 = vpop.permute.xlu1 %3009  ;;  %v3008_v45 = vpop.permute.xlu0 %3007 }
 0x486   : > { %v3034_v42 = vsel %vm249_vm4, %v3006_v17, %v3008_v45  ;;  %v3035_v18 = vsel %vm249_vm4, %v3008_v45, %v3010_v41 }
 0x487   : > { %3290 = vmatprep.subr.msk.bf16.mxu0 %vm344_vm1, %v3034_v42  ;;  %v3067_v39 = vsel %vm344_vm1, %v3035_v18, 0 }
 0x488   : > { %3083 = vmatpush1.bf16.msra.mxu0 %v3061_v40 }
 0x489   : > { %v3012_v31 = vpop.permute.xlu0 %3011 }
 0x48a   : > { %v3036_v28 = vsel %vm249_vm4, %v3010_v41, %v3012_v31 }
 0x48b   : > { %3291 = vmatmul.mubr.msk.bf16.vlgmr.msra.gmra.mrb[0].mxu0 %vm426_vm11, %v3289_v63  ;;  %3292 = vmatprep.subr.msk.bf16.mxu1 %vm344_vm1, %v3036_v28 }
 0x48c   : > { %3124 = vmatpush1.bf16.msra.mxu1 %v3067_v39 }
 0x48f   : > { %3293 = vmatmul.mubr.msk.bf16.vlgmr.msra.gmra.mrb[0].mxu1 %vm426_vm11, %v3289_v63 }
 0x55e   : > { %v3106_v20 = vpop.f32.mrb[0].mxu0 }
 0x55f   : > { %v3297_v33 = vadd.f32 %v3106_v20, %v5332_v22  ;;  %v3108_v51 = vpop.f32.mrb[1].mxu0 }
 0x560   : > { %v3298_v59 = vadd.f32 %v3108_v51, %v5332_v22  ;;  %v3110_v13 = vpop.f32.mrb[2].mxu0 }
 0x561   : > { %3158 = vst [vmem:[%s170_s11] sm:$0xff] %v3297_v33  ;;  %v3111_v53 = vpop.f32.mrb[3].mxu0 }
 0x562   : > { %3159 = vst [vmem:[%s170_s11 + $0x8] sm:$0xff] %v3298_v59  ;;  %v3147_v0 = vpop.f32.mrb[0].mxu1 }
 0x563   : > { %v3299_v2 = vadd.f32 %v3147_v0, %v5332_v22  ;;  %v3149_v38 = vpop.f32.mrb[1].mxu1 }
 0x564   : > { %v3300_v30 = vadd.f32 %v3149_v38, %v5332_v22  ;;  %v3151_v47 = vpop.f32.mrb[2].mxu1 }
 0x565   : > { %3160 = vst [vmem:[%s170_s11 + $0x10] sm:$0xff] %v3299_v2  ;;  %v3152_v26 = vpop.f32.mrb[3].mxu1 }
 0x566   : > { %3161 = vst [vmem:[%s170_s11 + $0x18] sm:$0xff] %v3300_v30 }
 0x567 PF: > { %s13_s12 = sadd.s32 1, %s3431_s12  }
 0x568   : > { %p10_p4 = scmp.ge.s32.totalorder %s13_s12, 4  }
 0x56a   :  { %12 = sbr.rel (!%p10_p4) target bundleno = 1 (0x1), region = 72 }

</bundles_post_ra>
